<compile_context>
chip_gen: v6e
topology: v6e:2x2x1
jax: 0.10.0
libtpu: 0.0.40
codegen_flags: <defaults>
</compile_context>

<pallas_src>
import numpy as np

import jax
import jax.numpy as jnp
from jax import lax
from jax.experimental import pallas as pl
from jax.experimental.pallas import tpu as pltpu

_HP1 = 256   # conv1 pooled half-width  (real 12*20 = 240), == A1 lane width
_HP2 = 256   # conv2 pooled half-width  (real  4*50 = 200), == A2 lane width
_HP3 = 128   # conv3 pooled half-width  (real  2*50 = 100), == A3 lane width
_FCH = 512   # padded fc1 hidden width  (real 500)


# --------------------------- fused whole-net kernel -------------------------


def _make_kernel(n_tile):
    """Whole-net kernel for one batch tile of `n_tile` images (rows=(y,n))."""
    R = 28 * n_tile
    K2 = 5 * _HP1          # stacked K for conv2 (5 y-taps)
    K3 = 3 * _HP2          # stacked K for conv3 (3 y-taps)
    f32 = jnp.float32
    bf16 = jnp.bfloat16

    def shift_rows(v, k):
        # out[r] = v[(r + k) % R]; wrapped rows only ever land in dont-care rows.
        k = k % R
        if k == 0:
            return v
        return jnp.concatenate([v[k:, :], v[:k, :]], axis=0)

    def store_shifted(dst_ref, col, v, k, width):
        # dst[r, col:col+width] = v[(r + k) % R, :]   (static slices only)
        k = k % R
        if k == 0:
            dst_ref[:, col:col + width] = v
            return
        dst_ref[0:R - k, col:col + width] = v[k:, :]
        dst_ref[R - k:R, col:col + width] = v[:k, :]

    def kernel(x_ref, mask_ref, w1_ref, b1_ref, w2_ref, b2_ref, w3_ref, b3_ref,
               wf1_ref, bf1_ref, wf2_ref, bf2_ref, o_ref, lhs_ref):
        nt = n_tile
        x = x_ref[0]                                            # (R, 28) bf16

        # ---- conv1 (5x5, 1->20) + bias + relu + 2x2 max-pool ----
        d1 = jnp.dot(x, w1_ref[0], preferred_element_type=f32)
        for i in range(1, 5):
            d1 = d1 + jnp.dot(shift_rows(x, i * nt), w1_ref[i],
                              preferred_element_type=f32)
        e1 = jnp.maximum(d1[:, :_HP1], d1[:, _HP1:])            # max over pool-dx
        a1 = jnp.maximum(jnp.maximum(e1, shift_rows(e1, nt)) + b1_ref[...], 0.0)
        a1 = a1.astype(bf16)                                    # valid rows: y even

        # ---- conv2 (5x5, 20->50) + bias + relu + pool: one stacked-K matmul ----
        for i in range(5):
            store_shifted(lhs_ref, i * _HP1, a1, 2 * i * nt, _HP1)
        d2 = jnp.dot(lhs_ref[:, :K2], w2_ref[...], preferred_element_type=f32)
        e2 = jnp.maximum(d2[:, :_HP2], d2[:, _HP2:])
        a2 = jnp.maximum(jnp.maximum(e2, shift_rows(e2, 2 * nt)) + b2_ref[...], 0.0)
        # zero every non-valid row (y not in {0,4,8,12}); this also provides
        # conv3's y-padding of zeros.
        a2 = (a2 * mask_ref[...]).astype(bf16)

        # ---- conv3 (3x3, 50->50, pad 1) + bias + relu + pool ----
        for i in range(3):
            store_shifted(lhs_ref, i * _HP2, a2, 4 * (i - 1) * nt, _HP2)
        d3 = jnp.dot(lhs_ref[:, :K3], w3_ref[...], preferred_element_type=f32)
        e3 = jnp.maximum(d3[:, :_HP3], d3[:, _HP3:])
        a3 = jnp.maximum(jnp.maximum(e3, shift_rows(e3, 4 * nt)) + b3_ref[...], 0.0)
        a3 = a3.astype(bf16)                                    # valid rows: y in {0, 8}

        # ---- fc1 + relu + fc2 + log_softmax (only the n_tile valid images) ----
        h = (jnp.dot(a3[0:nt, :], wf1_ref[0], preferred_element_type=f32)
             + jnp.dot(a3[8 * nt:9 * nt, :], wf1_ref[1], preferred_element_type=f32)
             + bf1_ref[...])
        h = jnp.maximum(h, 0.0).astype(bf16)                    # (nt, 512)
        logits = jnp.dot(h, wf2_ref[...], preferred_element_type=f32) + bf2_ref[...]
        m = jnp.max(logits, axis=-1, keepdims=True)
        s = logits - m
        lse = jnp.log(jnp.sum(jnp.exp(s), axis=-1, keepdims=True))
        o_ref[0] = s - lse                                      # (nt, 10) f32

    return kernel


# ----------------------- weight re-layout (init-time, numpy) ----------------


def _build_conv_tap_mats(w_oihw, w_in, l_in_pad, w_pool, half_pad, x_pad):
    """Per-y-tap banded matrices folding x-taps, 2x2-pool x-companions & channels.

    Input lanes:  x_in * Cin + ci  (x_in in [0, w_in)),  padded to l_in_pad.
    Output lanes: dx * half_pad + xp * Cout + co  (xp in [0, w_pool), dx in {0,1}).
    """
    w = np.asarray(w_oihw, np.float32)
    cout, cin, kh, kw = w.shape
    mats = np.zeros((kh, l_in_pad, 2 * half_pad), np.float32)
    for i in range(kh):
        for j in range(kw):
            blk = w[:, :, i, j].T                       # (cin, cout)
            for dx in range(2):
                for xp in range(w_pool):
                    x_in = 2 * xp + dx + j - x_pad
                    if 0 <= x_in < w_in:                # out-of-range == zero pad
                        r0 = x_in * cin
                        c0 = dx * half_pad + xp * cout
                        mats[i, r0:r0 + cin, c0:c0 + cout] += blk
    return mats


def init_raw_params(key):
    """Deterministic synthetic params, PyTorch-default-style uniform init."""
    ks = jax.random.split(key, 10)

    def u(k, shape, fan_in):
        bound = 1.0 / float(fan_in) ** 0.5
        return jax.random.uniform(k, shape, jnp.float32, -bound, bound)

    return {
        "conv1_w": u(ks[0], (20, 1, 5, 5), 1 * 5 * 5),
        "conv1_b": u(ks[1], (20,), 1 * 5 * 5),
        "conv2_w": u(ks[2], (50, 20, 5, 5), 20 * 5 * 5),
        "conv2_b": u(ks[3], (50,), 20 * 5 * 5),
        "conv3_w": u(ks[4], (50, 50, 3, 3), 50 * 3 * 3),
        "conv3_b": u(ks[5], (50,), 50 * 3 * 3),
        "fc1_w": u(ks[6], (500, 2 * 2 * 50), 2 * 2 * 50),   # (out, in) like torch
        "fc1_b": u(ks[7], (500,), 2 * 2 * 50),
        "fc2_w": u(ks[8], (10, 500), 500),
        "fc2_b": u(ks[9], (10,), 500),
    }


def prepare_params(raw):
    """Hoist every weight re-layout out of the forward (matmul-ready, once)."""
    g = lambda a: np.asarray(jax.device_get(a), np.float32)
    w1, b1 = g(raw["conv1_w"]), g(raw["conv1_b"])
    w2, b2 = g(raw["conv2_w"]), g(raw["conv2_b"])
    w3, b3 = g(raw["conv3_w"]), g(raw["conv3_b"])
    fw1, fb1 = g(raw["fc1_w"]), g(raw["fc1_b"])
    fw2, fb2 = g(raw["fc2_w"]), g(raw["fc2_b"])

    m1 = _build_conv_tap_mats(w1, 28, 28, 12, _HP1, 0)                 # (5, 28, 512)
    m2 = _build_conv_tap_mats(w2, 12, _HP1, 4, _HP2, 0).reshape(5 * _HP1, 2 * _HP2)
    m3 = _build_conv_tap_mats(w3, 4, _HP2, 2, _HP3, 1).reshape(3 * _HP2, 2 * _HP3)

    b1r = np.zeros((1, _HP1), np.float32); b1r[0, :240] = np.tile(b1, 12)
    b2r = np.zeros((1, _HP2), np.float32); b2r[0, :200] = np.tile(b2, 4)
    b3r = np.zeros((1, _HP3), np.float32); b3r[0, :100] = np.tile(b3, 2)

    # fc1: fold PyTorch's NCHW view(-1, 200) feature order (c, y, x) into the
    # weight, split by the two y' rows (our features per row are lanes (x, c)).
    wf1 = np.zeros((2, _HP3, _FCH), np.float32)
    for y in range(2):
        for xx in range(2):
            for c in range(50):
                wf1[y, xx * 50 + c, :500] = fw1[:, c * 4 + y * 2 + xx]
    bf1 = np.zeros((1, _FCH), np.float32); bf1[0, :500] = fb1
    wf2 = np.zeros((_FCH, 10), np.float32); wf2[:500, :] = fw2.T
    bf2 = fb2.reshape(1, 10)

    bf16 = jnp.bfloat16
    return {
        "w1": jnp.asarray(m1, bf16), "b1": jnp.asarray(b1r),
        "w2": jnp.asarray(m2, bf16), "b2": jnp.asarray(b2r),
        "w3": jnp.asarray(m3, bf16), "b3": jnp.asarray(b3r),
        "wf1": jnp.asarray(wf1, bf16), "bf1": jnp.asarray(bf1),
        "wf2": jnp.asarray(wf2, bf16), "bf2": jnp.asarray(bf2),
    }


# --------------------------------- forward ----------------------------------


def net_m_forward(params, x_nchw):
    """Forward pass of Net_m.  x_nchw: (N, 1, 28, 28) f32 -> (N, 10) log-probs."""
    N = x_nchw.shape[0]
    n_tile = max(1, min(8, N // 2))          # grid >= 2 whenever N >= 2 (v7x)
    G = -(-N // n_tile)
    Npad = G * n_tile
    R = 28 * n_tile

    x = x_nchw.reshape(N, 28, 28).astype(jnp.bfloat16)
    if Npad != N:
        x = jnp.pad(x, ((0, Npad - N), (0, 0), (0, 0)))
    # Rows inside a tile are (y, n): row = y*n_tile + n  (valid head rows lead).
    x = x.reshape(G, n_tile, 28, 28).transpose(0, 2, 1, 3).reshape(G, R, 28)

    # Row-validity mask for the pooled conv2 output (y in {0,4,8,12}); also
    # supplies conv3's zero y-padding.
    yv = np.zeros((28,), np.float32)
    yv[[0, 4, 8, 12]] = 1.0
    mask = jnp.asarray(np.repeat(yv, n_tile).reshape(R, 1))

    def resident_spec(a):
        nd = a.ndim
        return pl.BlockSpec(a.shape, lambda g, _nd=nd: (0,) * _nd)

    in_specs = [
        pl.BlockSpec((1, R, 28), lambda g: (g, 0, 0)),     # image tile
        resident_spec(mask),
        resident_spec(params["w1"]), resident_spec(params["b1"]),
        resident_spec(params["w2"]), resident_spec(params["b2"]),
        resident_spec(params["w3"]), resident_spec(params["b3"]),
        resident_spec(params["wf1"]), resident_spec(params["bf1"]),
        resident_spec(params["wf2"]), resident_spec(params["bf2"]),
    ]
    out_specs = pl.BlockSpec((1, n_tile, 10), lambda g: (g, 0, 0))

    param_bytes = sum(int(v.size) * v.dtype.itemsize for v in params.values())
    macs_per_step = (R * (5 * 28 * 2 * _HP1 + 5 * _HP1 * 2 * _HP2
                          + 3 * _HP2 * 2 * _HP3)
                     + n_tile * (2 * _HP3 * _FCH + _FCH * 10))
    cost = pl.CostEstimate(
        flops=int(2 * G * macs_per_step),
        transcendentals=int(G * n_tile * 16),
        bytes_accessed=int(x.size * 2 + mask.size * 4 + param_bytes
                           + Npad * 10 * 4),
    )

    out = pl.pallas_call(
        _make_kernel(n_tile),
        out_shape=jax.ShapeDtypeStruct((G, n_tile, 10), jnp.float32),
        grid=(G,),
        in_specs=in_specs,
        out_specs=out_specs,
        scratch_shapes=[pltpu.VMEM((R, 5 * _HP1), jnp.bfloat16)],
        compiler_params=pltpu.CompilerParams(
            dimension_semantics=("parallel",)),
        cost_estimate=cost,
    )(x, mask, params["w1"], params["b1"], params["w2"], params["b2"],
      params["w3"], params["b3"], params["wf1"], params["bf1"],
      params["wf2"], params["bf2"])

    return out.reshape(Npad, 10)[:N]


# ----------------------- pure-XLA reference (f32) ---------------------------


def reference_forward(raw, x_nchw):
    dn = ("NCHW", "OIHW", "NCHW")

    def pool(y):
        return lax.reduce_window(y, -jnp.inf, lax.max,
                                 (1, 1, 2, 2), (1, 1, 2, 2), "VALID")

    y = lax.conv_general_dilated(x_nchw, raw["conv1_w"], (1, 1), "VALID",
                                 dimension_numbers=dn)
    y = pool(jnp.maximum(y + raw["conv1_b"][None, :, None, None], 0.0))
    y = lax.conv_general_dilated(y, raw["conv2_w"], (1, 1), "VALID",
                                 dimension_numbers=dn)
    y = pool(jnp.maximum(y + raw["conv2_b"][None, :, None, None], 0.0))
    y = lax.conv_general_dilated(y, raw["conv3_w"], (1, 1), ((1, 1), (1, 1)),
                                 dimension_numbers=dn)
    y = pool(jnp.maximum(y + raw["conv3_b"][None, :, None, None], 0.0))
    z = y.reshape(y.shape[0], 2 * 2 * 50)
    h = jnp.maximum(z @ raw["fc1_w"].T + raw["fc1_b"], 0.0)
    logits = h @ raw["fc2_w"].T + raw["fc2_b"]
    return jax.nn.log_softmax(logits, axis=-1)


# ------------------------------ module wrapper ------------------------------


class NetM:
    """Thin stateful wrapper mirroring Net_m.number bookkeeping (host-side)."""

    def __init__(self, key):
        self.number = 0
        self.raw_params = init_raw_params(key)
        self.params = prepare_params(self.raw_params)
        self._fwd = jax.jit(net_m_forward)

    def __call__(self, x, sign=0):
        if sign == 0:
            self.number += 1
        return self._fwd(self.params, x)

    def get_number(self):
        return self.number


if __name__ == "__main__":
    key = jax.random.PRNGKey(0)
    k_param, k_x = jax.random.split(key)

    net = NetM(k_param)
    # Spatial size must be 28x28 so the 2*2*50 flatten matches the module.
    x = jax.random.normal(k_x, (2, 1, 28, 28), dtype=jnp.float32)

    out = jax.block_until_ready(net(x))            # (2, 10) log-probabilities

    assert out.shape == (2, 10)
    assert bool(jnp.all(jnp.isfinite(out)))
    # log_softmax rows sum (in prob space) to ~1
    assert jnp.allclose(jnp.sum(jnp.exp(out), axis=1), 1.0, atol=1e-3)
    # Tolerance-check against the f32 XLA reference (covers bf16 operand error).
    ref = jax.block_until_ready(reference_forward(net.raw_params, x))
    err = float(jnp.max(jnp.abs(out - ref)))
    assert err < 0.15, f"kernel/reference mismatch: max |diff| = {err}"
    assert net.get_number() == 1

    print("KERNEL_OK")
</pallas_src>

<mosaic_0001>
module attributes {stable_mosaic.version = 11 : i64} {
  func.func @kernel(%arg0: i32, %arg1: memref<1x28x28xbf16, #tpu.memory_space<vmem>>, %arg2: memref<28x1xf32, #tpu.memory_space<vmem>>, %arg3: memref<5x28x512xbf16, #tpu.memory_space<vmem>>, %arg4: memref<1x256xf32, #tpu.memory_space<vmem>>, %arg5: memref<1280x512xbf16, #tpu.memory_space<vmem>>, %arg6: memref<1x256xf32, #tpu.memory_space<vmem>>, %arg7: memref<768x256xbf16, #tpu.memory_space<vmem>>, %arg8: memref<1x128xf32, #tpu.memory_space<vmem>>, %arg9: memref<2x128x512xbf16, #tpu.memory_space<vmem>>, %arg10: memref<1x512xf32, #tpu.memory_space<vmem>>, %arg11: memref<512x10xbf16, #tpu.memory_space<vmem>>, %arg12: memref<1x10xf32, #tpu.memory_space<vmem>>, %arg13: memref<1x1x10xf32, #tpu.memory_space<vmem>>, %arg14: memref<28x1280xbf16, #tpu.memory_space<vmem>>) attributes {dimension_semantics = [#tpu.dimension_semantics<parallel>], iteration_bounds = array<i64: 2>, scalar_prefetch = 0 : i64, scratch_operands = 1 : i64, tpu.core_type = #tpu.core_type<tc>, window_params = [{transform_indices = @transform_0, window_bounds = array<i64: 1, 28, 28>}, {pipeline_mode = #tpu.pipeline_mode<synchronous>, transform_indices = @transform_1, window_bounds = array<i64: 28, 1>}, {pipeline_mode = #tpu.pipeline_mode<synchronous>, transform_indices = @transform_2, window_bounds = array<i64: 5, 28, 512>}, {pipeline_mode = #tpu.pipeline_mode<synchronous>, transform_indices = @transform_3, window_bounds = array<i64: 1, 256>}, {pipeline_mode = #tpu.pipeline_mode<synchronous>, transform_indices = @transform_4, window_bounds = array<i64: 1280, 512>}, {pipeline_mode = #tpu.pipeline_mode<synchronous>, transform_indices = @transform_5, window_bounds = array<i64: 1, 256>}, {pipeline_mode = #tpu.pipeline_mode<synchronous>, transform_indices = @transform_6, window_bounds = array<i64: 768, 256>}, {pipeline_mode = #tpu.pipeline_mode<synchronous>, transform_indices = @transform_7, window_bounds = array<i64: 1, 128>}, {pipeline_mode = #tpu.pipeline_mode<synchronous>, transform_indices = @transform_8, window_bounds = array<i64: 2, 128, 512>}, {pipeline_mode = #tpu.pipeline_mode<synchronous>, transform_indices = @transform_9, window_bounds = array<i64: 1, 512>}, {pipeline_mode = #tpu.pipeline_mode<synchronous>, transform_indices = @transform_10, window_bounds = array<i64: 512, 10>}, {pipeline_mode = #tpu.pipeline_mode<synchronous>, transform_indices = @transform_11, window_bounds = array<i64: 1, 10>}, {transform_indices = @transform_12, window_bounds = array<i64: 1, 1, 10>}]} {
    %c0 = arith.constant 0 : index
    %c0_0 = arith.constant 0 : index
    %c0_1 = arith.constant 0 : index
    %0 = vector.load %arg1[%c0, %c0_0, %c0_1] : memref<1x28x28xbf16, #tpu.memory_space<vmem>>, vector<1x28x28xbf16>
    %1 = vector.shape_cast %0 : vector<1x28x28xbf16> to vector<28x28xbf16>
    %c0_2 = arith.constant 0 : index
    %c0_3 = arith.constant 0 : index
    %c0_4 = arith.constant 0 : index
    %2 = vector.load %arg3[%c0_2, %c0_3, %c0_4] : memref<5x28x512xbf16, #tpu.memory_space<vmem>>, vector<1x28x512xbf16>
    %3 = vector.shape_cast %2 : vector<1x28x512xbf16> to vector<28x512xbf16>
    %cst = arith.constant dense<0.000000e+00> : vector<28x512xf32>
    %4 = tpu.matmul %1, %3, %cst {dimension_numbers = #tpu.dot_dimension_numbers<[1], [0], [0], [1], [0, 0, 1, 1], [], []>} : vector<28x28xbf16>, vector<28x512xbf16>, vector<28x512xf32> -> vector<28x512xf32>
    %5 = vector.extract_strided_slice %1 {offsets = [1, 0], sizes = [27, 28], strides = [1, 1]} : vector<28x28xbf16> to vector<27x28xbf16>
    %6 = vector.extract_strided_slice %1 {offsets = [0, 0], sizes = [1, 28], strides = [1, 1]} : vector<28x28xbf16> to vector<1x28xbf16>
    %7 = tpu.concatenate %5, %6 in 0 : vector<27x28xbf16>, vector<1x28xbf16> -> vector<28x28xbf16>
    %c1 = arith.constant 1 : index
    %c0_5 = arith.constant 0 : index
    %c0_6 = arith.constant 0 : index
    %8 = vector.load %arg3[%c1, %c0_5, %c0_6] : memref<5x28x512xbf16, #tpu.memory_space<vmem>>, vector<1x28x512xbf16>
    %9 = vector.shape_cast %8 : vector<1x28x512xbf16> to vector<28x512xbf16>
    %cst_7 = arith.constant dense<0.000000e+00> : vector<28x512xf32>
    %10 = tpu.matmul %7, %9, %cst_7 {dimension_numbers = #tpu.dot_dimension_numbers<[1], [0], [0], [1], [0, 0, 1, 1], [], []>} : vector<28x28xbf16>, vector<28x512xbf16>, vector<28x512xf32> -> vector<28x512xf32>
    %11 = arith.addf %4, %10 : vector<28x512xf32>
    %12 = vector.extract_strided_slice %1 {offsets = [2, 0], sizes = [26, 28], strides = [1, 1]} : vector<28x28xbf16> to vector<26x28xbf16>
    %13 = vector.extract_strided_slice %1 {offsets = [0, 0], sizes = [2, 28], strides = [1, 1]} : vector<28x28xbf16> to vector<2x28xbf16>
    %14 = tpu.concatenate %12, %13 in 0 : vector<26x28xbf16>, vector<2x28xbf16> -> vector<28x28xbf16>
    %c2 = arith.constant 2 : index
    %c0_8 = arith.constant 0 : index
    %c0_9 = arith.constant 0 : index
    %15 = vector.load %arg3[%c2, %c0_8, %c0_9] : memref<5x28x512xbf16, #tpu.memory_space<vmem>>, vector<1x28x512xbf16>
    %16 = vector.shape_cast %15 : vector<1x28x512xbf16> to vector<28x512xbf16>
    %cst_10 = arith.constant dense<0.000000e+00> : vector<28x512xf32>
    %17 = tpu.matmul %14, %16, %cst_10 {dimension_numbers = #tpu.dot_dimension_numbers<[1], [0], [0], [1], [0, 0, 1, 1], [], []>} : vector<28x28xbf16>, vector<28x512xbf16>, vector<28x512xf32> -> vector<28x512xf32>
    %18 = arith.addf %11, %17 : vector<28x512xf32>
    %19 = vector.extract_strided_slice %1 {offsets = [3, 0], sizes = [25, 28], strides = [1, 1]} : vector<28x28xbf16> to vector<25x28xbf16>
    %20 = vector.extract_strided_slice %1 {offsets = [0, 0], sizes = [3, 28], strides = [1, 1]} : vector<28x28xbf16> to vector<3x28xbf16>
    %21 = tpu.concatenate %19, %20 in 0 : vector<25x28xbf16>, vector<3x28xbf16> -> vector<28x28xbf16>
    %c3 = arith.constant 3 : index
    %c0_11 = arith.constant 0 : index
    %c0_12 = arith.constant 0 : index
    %22 = vector.load %arg3[%c3, %c0_11, %c0_12] : memref<5x28x512xbf16, #tpu.memory_space<vmem>>, vector<1x28x512xbf16>
    %23 = vector.shape_cast %22 : vector<1x28x512xbf16> to vector<28x512xbf16>
    %cst_13 = arith.constant dense<0.000000e+00> : vector<28x512xf32>
    %24 = tpu.matmul %21, %23, %cst_13 {dimension_numbers = #tpu.dot_dimension_numbers<[1], [0], [0], [1], [0, 0, 1, 1], [], []>} : vector<28x28xbf16>, vector<28x512xbf16>, vector<28x512xf32> -> vector<28x512xf32>
    %25 = arith.addf %18, %24 : vector<28x512xf32>
    %26 = vector.extract_strided_slice %1 {offsets = [4, 0], sizes = [24, 28], strides = [1, 1]} : vector<28x28xbf16> to vector<24x28xbf16>
    %27 = vector.extract_strided_slice %1 {offsets = [0, 0], sizes = [4, 28], strides = [1, 1]} : vector<28x28xbf16> to vector<4x28xbf16>
    %28 = tpu.concatenate %26, %27 in 0 : vector<24x28xbf16>, vector<4x28xbf16> -> vector<28x28xbf16>
    %c4 = arith.constant 4 : index
    %c0_14 = arith.constant 0 : index
    %c0_15 = arith.constant 0 : index
    %29 = vector.load %arg3[%c4, %c0_14, %c0_15] : memref<5x28x512xbf16, #tpu.memory_space<vmem>>, vector<1x28x512xbf16>
    %30 = vector.shape_cast %29 : vector<1x28x512xbf16> to vector<28x512xbf16>
    %cst_16 = arith.constant dense<0.000000e+00> : vector<28x512xf32>
    %31 = tpu.matmul %28, %30, %cst_16 {dimension_numbers = #tpu.dot_dimension_numbers<[1], [0], [0], [1], [0, 0, 1, 1], [], []>} : vector<28x28xbf16>, vector<28x512xbf16>, vector<28x512xf32> -> vector<28x512xf32>
    %32 = arith.addf %25, %31 : vector<28x512xf32>
    %33 = vector.extract_strided_slice %32 {offsets = [0, 0], sizes = [28, 256], strides = [1, 1]} : vector<28x512xf32> to vector<28x256xf32>
    %34 = vector.extract_strided_slice %32 {offsets = [0, 256], sizes = [28, 256], strides = [1, 1]} : vector<28x512xf32> to vector<28x256xf32>
    %35 = arith.maximumf %33, %34 : vector<28x256xf32>
    %36 = vector.extract_strided_slice %35 {offsets = [1, 0], sizes = [27, 256], strides = [1, 1]} : vector<28x256xf32> to vector<27x256xf32>
    %37 = vector.extract_strided_slice %35 {offsets = [0, 0], sizes = [1, 256], strides = [1, 1]} : vector<28x256xf32> to vector<1x256xf32>
    %38 = tpu.concatenate %36, %37 in 0 : vector<27x256xf32>, vector<1x256xf32> -> vector<28x256xf32>
    %39 = arith.maximumf %35, %38 : vector<28x256xf32>
    %c0_17 = arith.constant 0 : index
    %c0_18 = arith.constant 0 : index
    %40 = vector.load %arg4[%c0_17, %c0_18] : memref<1x256xf32, #tpu.memory_space<vmem>>, vector<1x256xf32>
    %41 = vector.broadcast %40 : vector<1x256xf32> to vector<28x256xf32>
    %42 = arith.addf %39, %41 : vector<28x256xf32>
    %cst_19 = arith.constant 0.000000e+00 : f32
    %43 = vector.broadcast %cst_19 : f32 to vector<28x256xf32>
    %44 = arith.maximumf %42, %43 : vector<28x256xf32>
    %45 = arith.truncf %44 : vector<28x256xf32> to vector<28x256xbf16>
    %c0_20 = arith.constant 0 : index
    %c0_21 = arith.constant 0 : index
    %46 = vector.load %arg14[%c0_20, %c0_21] : memref<28x1280xbf16, #tpu.memory_space<vmem>>, vector<28x256xbf16>
    tpu.vector_store %arg14[%c0_20, %c0_21], %45 {strides = array<i32>} : memref<28x1280xbf16, #tpu.memory_space<vmem>>, vector<28x256xbf16>,
    %47 = vector.extract_strided_slice %45 {offsets = [2, 0], sizes = [26, 256], strides = [1, 1]} : vector<28x256xbf16> to vector<26x256xbf16>
    %c0_22 = arith.constant 0 : index
    %c256 = arith.constant 256 : index
    %48 = vector.load %arg14[%c0_22, %c256] : memref<28x1280xbf16, #tpu.memory_space<vmem>>, vector<26x256xbf16>
    tpu.vector_store %arg14[%c0_22, %c256], %47 {strides = array<i32>} : memref<28x1280xbf16, #tpu.memory_space<vmem>>, vector<26x256xbf16>,
    %49 = vector.extract_strided_slice %45 {offsets = [0, 0], sizes = [2, 256], strides = [1, 1]} : vector<28x256xbf16> to vector<2x256xbf16>
    %c26 = arith.constant 26 : index
    %c256_23 = arith.constant 256 : index
    %50 = vector.load %arg14[%c26, %c256_23] : memref<28x1280xbf16, #tpu.memory_space<vmem>>, vector<2x256xbf16>
    tpu.vector_store %arg14[%c26, %c256_23], %49 {strides = array<i32>} : memref<28x1280xbf16, #tpu.memory_space<vmem>>, vector<2x256xbf16>,
    %51 = vector.extract_strided_slice %45 {offsets = [4, 0], sizes = [24, 256], strides = [1, 1]} : vector<28x256xbf16> to vector<24x256xbf16>
    %c0_24 = arith.constant 0 : index
    %c512 = arith.constant 512 : index
    %52 = vector.load %arg14[%c0_24, %c512] : memref<28x1280xbf16, #tpu.memory_space<vmem>>, vector<24x256xbf16>
    tpu.vector_store %arg14[%c0_24, %c512], %51 {strides = array<i32>} : memref<28x1280xbf16, #tpu.memory_space<vmem>>, vector<24x256xbf16>,
    %53 = vector.extract_strided_slice %45 {offsets = [0, 0], sizes = [4, 256], strides = [1, 1]} : vector<28x256xbf16> to vector<4x256xbf16>
    %c24 = arith.constant 24 : index
    %c512_25 = arith.constant 512 : index
    %54 = vector.load %arg14[%c24, %c512_25] : memref<28x1280xbf16, #tpu.memory_space<vmem>>, vector<4x256xbf16>
    tpu.vector_store %arg14[%c24, %c512_25], %53 {strides = array<i32>} : memref<28x1280xbf16, #tpu.memory_space<vmem>>, vector<4x256xbf16>,
    %55 = vector.extract_strided_slice %45 {offsets = [6, 0], sizes = [22, 256], strides = [1, 1]} : vector<28x256xbf16> to vector<22x256xbf16>
    %c0_26 = arith.constant 0 : index
    %c768 = arith.constant 768 : index
    %56 = vector.load %arg14[%c0_26, %c768] : memref<28x1280xbf16, #tpu.memory_space<vmem>>, vector<22x256xbf16>
    tpu.vector_store %arg14[%c0_26, %c768], %55 {strides = array<i32>} : memref<28x1280xbf16, #tpu.memory_space<vmem>>, vector<22x256xbf16>,
    %57 = vector.extract_strided_slice %45 {offsets = [0, 0], sizes = [6, 256], strides = [1, 1]} : vector<28x256xbf16> to vector<6x256xbf16>
    %c22 = arith.constant 22 : index
    %c768_27 = arith.constant 768 : index
    %58 = vector.load %arg14[%c22, %c768_27] : memref<28x1280xbf16, #tpu.memory_space<vmem>>, vector<6x256xbf16>
    tpu.vector_store %arg14[%c22, %c768_27], %57 {strides = array<i32>} : memref<28x1280xbf16, #tpu.memory_space<vmem>>, vector<6x256xbf16>,
    %59 = vector.extract_strided_slice %45 {offsets = [8, 0], sizes = [20, 256], strides = [1, 1]} : vector<28x256xbf16> to vector<20x256xbf16>
    %c0_28 = arith.constant 0 : index
    %c1024 = arith.constant 1024 : index
    %60 = vector.load %arg14[%c0_28, %c1024] : memref<28x1280xbf16, #tpu.memory_space<vmem>>, vector<20x256xbf16>
    tpu.vector_store %arg14[%c0_28, %c1024], %59 {strides = array<i32>} : memref<28x1280xbf16, #tpu.memory_space<vmem>>, vector<20x256xbf16>,
    %61 = vector.extract_strided_slice %45 {offsets = [0, 0], sizes = [8, 256], strides = [1, 1]} : vector<28x256xbf16> to vector<8x256xbf16>
    %c20 = arith.constant 20 : index
    %c1024_29 = arith.constant 1024 : index
    %62 = vector.load %arg14[%c20, %c1024_29] : memref<28x1280xbf16, #tpu.memory_space<vmem>>, vector<8x256xbf16>
    tpu.vector_store %arg14[%c20, %c1024_29], %61 {strides = array<i32>} : memref<28x1280xbf16, #tpu.memory_space<vmem>>, vector<8x256xbf16>,
    %c0_30 = arith.constant 0 : index
    %c0_31 = arith.constant 0 : index
    %63 = vector.load %arg14[%c0_30, %c0_31] : memref<28x1280xbf16, #tpu.memory_space<vmem>>, vector<28x1280xbf16>
    %c0_32 = arith.constant 0 : index
    %c0_33 = arith.constant 0 : index
    %64 = vector.load %arg5[%c0_32, %c0_33] : memref<1280x512xbf16, #tpu.memory_space<vmem>>, vector<1280x512xbf16>
    %cst_34 = arith.constant dense<0.000000e+00> : vector<28x512xf32>
    %65 = tpu.matmul %63, %64, %cst_34 {dimension_numbers = #tpu.dot_dimension_numbers<[1], [0], [0], [1], [0, 0, 1, 1], [], []>} : vector<28x1280xbf16>, vector<1280x512xbf16>, vector<28x512xf32> -> vector<28x512xf32>
    %66 = vector.extract_strided_slice %65 {offsets = [0, 0], sizes = [28, 256], strides = [1, 1]} : vector<28x512xf32> to vector<28x256xf32>
    %67 = vector.extract_strided_slice %65 {offsets = [0, 256], sizes = [28, 256], strides = [1, 1]} : vector<28x512xf32> to vector<28x256xf32>
    %68 = arith.maximumf %66, %67 : vector<28x256xf32>
    %69 = vector.extract_strided_slice %68 {offsets = [2, 0], sizes = [26, 256], strides = [1, 1]} : vector<28x256xf32> to vector<26x256xf32>
    %70 = vector.extract_strided_slice %68 {offsets = [0, 0], sizes = [2, 256], strides = [1, 1]} : vector<28x256xf32> to vector<2x256xf32>
    %71 = tpu.concatenate %69, %70 in 0 : vector<26x256xf32>, vector<2x256xf32> -> vector<28x256xf32>
    %72 = arith.maximumf %68, %71 : vector<28x256xf32>
    %c0_35 = arith.constant 0 : index
    %c0_36 = arith.constant 0 : index
    %73 = vector.load %arg6[%c0_35, %c0_36] : memref<1x256xf32, #tpu.memory_space<vmem>>, vector<1x256xf32>
    %74 = vector.broadcast %73 : vector<1x256xf32> to vector<28x256xf32>
    %75 = arith.addf %72, %74 : vector<28x256xf32>
    %cst_37 = arith.constant 0.000000e+00 : f32
    %76 = vector.broadcast %cst_37 : f32 to vector<28x256xf32>
    %77 = arith.maximumf %75, %76 : vector<28x256xf32>
    %c0_38 = arith.constant 0 : index
    %c0_39 = arith.constant 0 : index
    %78 = vector.load %arg2[%c0_38, %c0_39] : memref<28x1xf32, #tpu.memory_space<vmem>>, vector<28x1xf32>
    %79 = vector.broadcast %78 : vector<28x1xf32> to vector<28x256xf32>
    %80 = arith.mulf %77, %79 : vector<28x256xf32>
    %81 = arith.truncf %80 : vector<28x256xf32> to vector<28x256xbf16>
    %82 = vector.extract_strided_slice %81 {offsets = [24, 0], sizes = [4, 256], strides = [1, 1]} : vector<28x256xbf16> to vector<4x256xbf16>
    %c0_40 = arith.constant 0 : index
    %c0_41 = arith.constant 0 : index
    %83 = vector.load %arg14[%c0_40, %c0_41] : memref<28x1280xbf16, #tpu.memory_space<vmem>>, vector<4x256xbf16>
    tpu.vector_store %arg14[%c0_40, %c0_41], %82 {strides = array<i32>} : memref<28x1280xbf16, #tpu.memory_space<vmem>>, vector<4x256xbf16>,
    %84 = vector.extract_strided_slice %81 {offsets = [0, 0], sizes = [24, 256], strides = [1, 1]} : vector<28x256xbf16> to vector<24x256xbf16>
    %c4_42 = arith.constant 4 : index
    %c0_43 = arith.constant 0 : index
    %85 = vector.load %arg14[%c4_42, %c0_43] : memref<28x1280xbf16, #tpu.memory_space<vmem>>, vector<24x256xbf16>
    tpu.vector_store %arg14[%c4_42, %c0_43], %84 {strides = array<i32>} : memref<28x1280xbf16, #tpu.memory_space<vmem>>, vector<24x256xbf16>,
    %c0_44 = arith.constant 0 : index
    %c256_45 = arith.constant 256 : index
    %86 = vector.load %arg14[%c0_44, %c256_45] : memref<28x1280xbf16, #tpu.memory_space<vmem>>, vector<28x256xbf16>
    tpu.vector_store %arg14[%c0_44, %c256_45], %81 {strides = array<i32>} : memref<28x1280xbf16, #tpu.memory_space<vmem>>, vector<28x256xbf16>,
    %87 = vector.extract_strided_slice %81 {offsets = [4, 0], sizes = [24, 256], strides = [1, 1]} : vector<28x256xbf16> to vector<24x256xbf16>
    %c0_46 = arith.constant 0 : index
    %c512_47 = arith.constant 512 : index
    %88 = vector.load %arg14[%c0_46, %c512_47] : memref<28x1280xbf16, #tpu.memory_space<vmem>>, vector<24x256xbf16>
    tpu.vector_store %arg14[%c0_46, %c512_47], %87 {strides = array<i32>} : memref<28x1280xbf16, #tpu.memory_space<vmem>>, vector<24x256xbf16>,
    %89 = vector.extract_strided_slice %81 {offsets = [0, 0], sizes = [4, 256], strides = [1, 1]} : vector<28x256xbf16> to vector<4x256xbf16>
    %c24_48 = arith.constant 24 : index
    %c512_49 = arith.constant 512 : index
    %90 = vector.load %arg14[%c24_48, %c512_49] : memref<28x1280xbf16, #tpu.memory_space<vmem>>, vector<4x256xbf16>
    tpu.vector_store %arg14[%c24_48, %c512_49], %89 {strides = array<i32>} : memref<28x1280xbf16, #tpu.memory_space<vmem>>, vector<4x256xbf16>,
    %c0_50 = arith.constant 0 : index
    %c0_51 = arith.constant 0 : index
    %91 = vector.load %arg14[%c0_50, %c0_51] : memref<28x1280xbf16, #tpu.memory_space<vmem>>, vector<28x768xbf16>
    %c0_52 = arith.constant 0 : index
    %c0_53 = arith.constant 0 : index
    %92 = vector.load %arg7[%c0_52, %c0_53] : memref<768x256xbf16, #tpu.memory_space<vmem>>, vector<768x256xbf16>
    %cst_54 = arith.constant dense<0.000000e+00> : vector<28x256xf32>
    %93 = tpu.matmul %91, %92, %cst_54 {dimension_numbers = #tpu.dot_dimension_numbers<[1], [0], [0], [1], [0, 0, 1, 1], [], []>} : vector<28x768xbf16>, vector<768x256xbf16>, vector<28x256xf32> -> vector<28x256xf32>
    %94 = vector.extract_strided_slice %93 {offsets = [0, 0], sizes = [28, 128], strides = [1, 1]} : vector<28x256xf32> to vector<28x128xf32>
    %95 = vector.extract_strided_slice %93 {offsets = [0, 128], sizes = [28, 128], strides = [1, 1]} : vector<28x256xf32> to vector<28x128xf32>
    %96 = arith.maximumf %94, %95 : vector<28x128xf32>
    %97 = vector.extract_strided_slice %96 {offsets = [4, 0], sizes = [24, 128], strides = [1, 1]} : vector<28x128xf32> to vector<24x128xf32>
    %98 = vector.extract_strided_slice %96 {offsets = [0, 0], sizes = [4, 128], strides = [1, 1]} : vector<28x128xf32> to vector<4x128xf32>
    %99 = tpu.concatenate %97, %98 in 0 : vector<24x128xf32>, vector<4x128xf32> -> vector<28x128xf32>
    %100 = arith.maximumf %96, %99 : vector<28x128xf32>
    %c0_55 = arith.constant 0 : index
    %c0_56 = arith.constant 0 : index
    %101 = vector.load %arg8[%c0_55, %c0_56] : memref<1x128xf32, #tpu.memory_space<vmem>>, vector<1x128xf32>
    %102 = vector.broadcast %101 : vector<1x128xf32> to vector<28x128xf32>
    %103 = arith.addf %100, %102 : vector<28x128xf32>
    %cst_57 = arith.constant 0.000000e+00 : f32
    %104 = vector.broadcast %cst_57 : f32 to vector<28x128xf32>
    %105 = arith.maximumf %103, %104 : vector<28x128xf32>
    %106 = arith.truncf %105 : vector<28x128xf32> to vector<28x128xbf16>
    %107 = vector.extract_strided_slice %106 {offsets = [0, 0], sizes = [1, 128], strides = [1, 1]} : vector<28x128xbf16> to vector<1x128xbf16>
    %c0_58 = arith.constant 0 : index
    %c0_59 = arith.constant 0 : index
    %c0_60 = arith.constant 0 : index
    %108 = vector.load %arg9[%c0_58, %c0_59, %c0_60] : memref<2x128x512xbf16, #tpu.memory_space<vmem>>, vector<1x128x512xbf16>
    %109 = vector.shape_cast %108 : vector<1x128x512xbf16> to vector<128x512xbf16>
    %cst_61 = arith.constant dense<0.000000e+00> : vector<1x512xf32>
    %110 = tpu.matmul %107, %109, %cst_61 {dimension_numbers = #tpu.dot_dimension_numbers<[1], [0], [0], [1], [0, 0, 1, 1], [], []>} : vector<1x128xbf16>, vector<128x512xbf16>, vector<1x512xf32> -> vector<1x512xf32>
    %111 = vector.extract_strided_slice %106 {offsets = [8, 0], sizes = [1, 128], strides = [1, 1]} : vector<28x128xbf16> to vector<1x128xbf16>
    %c1_62 = arith.constant 1 : index
    %c0_63 = arith.constant 0 : index
    %c0_64 = arith.constant 0 : index
    %112 = vector.load %arg9[%c1_62, %c0_63, %c0_64] : memref<2x128x512xbf16, #tpu.memory_space<vmem>>, vector<1x128x512xbf16>
    %113 = vector.shape_cast %112 : vector<1x128x512xbf16> to vector<128x512xbf16>
    %cst_65 = arith.constant dense<0.000000e+00> : vector<1x512xf32>
    %114 = tpu.matmul %111, %113, %cst_65 {dimension_numbers = #tpu.dot_dimension_numbers<[1], [0], [0], [1], [0, 0, 1, 1], [], []>} : vector<1x128xbf16>, vector<128x512xbf16>, vector<1x512xf32> -> vector<1x512xf32>
    %115 = arith.addf %110, %114 : vector<1x512xf32>
    %c0_66 = arith.constant 0 : index
    %c0_67 = arith.constant 0 : index
    %116 = vector.load %arg10[%c0_66, %c0_67] : memref<1x512xf32, #tpu.memory_space<vmem>>, vector<1x512xf32>
    %117 = arith.addf %115, %116 : vector<1x512xf32>
    %cst_68 = arith.constant 0.000000e+00 : f32
    %118 = vector.broadcast %cst_68 : f32 to vector<1x512xf32>
    %119 = arith.maximumf %117, %118 : vector<1x512xf32>
    %120 = arith.truncf %119 : vector<1x512xf32> to vector<1x512xbf16>
    %c0_69 = arith.constant 0 : index
    %c0_70 = arith.constant 0 : index
    %121 = vector.load %arg11[%c0_69, %c0_70] : memref<512x10xbf16, #tpu.memory_space<vmem>>, vector<512x10xbf16>
    %cst_71 = arith.constant dense<0.000000e+00> : vector<1x10xf32>
    %122 = tpu.matmul %120, %121, %cst_71 {dimension_numbers = #tpu.dot_dimension_numbers<[1], [0], [0], [1], [0, 0, 1, 1], [], []>} : vector<1x512xbf16>, vector<512x10xbf16>, vector<1x10xf32> -> vector<1x10xf32>
    %c0_72 = arith.constant 0 : index
    %c0_73 = arith.constant 0 : index
    %123 = vector.load %arg12[%c0_72, %c0_73] : memref<1x10xf32, #tpu.memory_space<vmem>>, vector<1x10xf32>
    %124 = arith.addf %122, %123 : vector<1x10xf32>
    %cst_74 = arith.constant dense<0xFF800000> : vector<1xf32>
    %125 = vector.multi_reduction <maximumf>, %124, %cst_74 [1] : vector<1x10xf32> to vector<1xf32>
    %126 = vector.shape_cast %125 : vector<1xf32> to vector<1x1xf32>
    %127 = vector.broadcast %126 : vector<1x1xf32> to vector<1x10xf32>
    %128 = arith.subf %124, %127 : vector<1x10xf32>
    %129 = math.exp %128 : vector<1x10xf32>
    %cst_75 = arith.constant dense<0.000000e+00> : vector<1xf32>
    %130 = vector.multi_reduction <add>, %129, %cst_75 [1] : vector<1x10xf32> to vector<1xf32>
    %131 = vector.shape_cast %130 : vector<1xf32> to vector<1x1xf32>
    %132 = math.log %131 : vector<1x1xf32>
    %133 = vector.broadcast %132 : vector<1x1xf32> to vector<1x10xf32>
    %134 = arith.subf %128, %133 : vector<1x10xf32>
    %c0_76 = arith.constant 0 : index
    %c0_77 = arith.constant 0 : index
    %c0_78 = arith.constant 0 : index
    %135 = vector.load %arg13[%c0_76, %c0_77, %c0_78] : memref<1x1x10xf32, #tpu.memory_space<vmem>>, vector<1x1x10xf32>
    %136 = vector.shape_cast %135 : vector<1x1x10xf32> to vector<1x10xf32>
    %137 = vector.shape_cast %134 : vector<1x10xf32> to vector<1x1x10xf32>
    tpu.vector_store %arg13[%c0_76, %c0_77, %c0_78], %137 {strides = array<i32>} : memref<1x1x10xf32, #tpu.memory_space<vmem>>, vector<1x1x10xf32>,
    return
  }
  func.func @transform_0(%arg0: i32) -> (i32, i32, i32) {
    %c0_i32 = arith.constant 0 : i32
    %c0_i32_0 = arith.constant 0 : i32
    %c0_i32_1 = arith.constant 0 : i32
    return %arg0, %c0_i32, %c0_i32_0 : i32, i32, i32
  }
  func.func @transform_1(%arg0: i32) -> (i32, i32) {
    %c0_i32 = arith.constant 0 : i32
    %c0_i32_0 = arith.constant 0 : i32
    %c0_i32_1 = arith.constant 0 : i32
    return %c0_i32, %c0_i32_0 : i32, i32
  }
  func.func @transform_2(%arg0: i32) -> (i32, i32, i32) {
    %c0_i32 = arith.constant 0 : i32
    %c0_i32_0 = arith.constant 0 : i32
    %c0_i32_1 = arith.constant 0 : i32
    %c0_i32_2 = arith.constant 0 : i32
    return %c0_i32, %c0_i32_0, %c0_i32_1 : i32, i32, i32
  }
  func.func @transform_3(%arg0: i32) -> (i32, i32) {
    %c0_i32 = arith.constant 0 : i32
    %c0_i32_0 = arith.constant 0 : i32
    %c0_i32_1 = arith.constant 0 : i32
    return %c0_i32, %c0_i32_0 : i32, i32
  }
  func.func @transform_4(%arg0: i32) -> (i32, i32) {
    %c0_i32 = arith.constant 0 : i32
    %c0_i32_0 = arith.constant 0 : i32
    %c0_i32_1 = arith.constant 0 : i32
    return %c0_i32, %c0_i32_0 : i32, i32
  }
  func.func @transform_5(%arg0: i32) -> (i32, i32) {
    %c0_i32 = arith.constant 0 : i32
    %c0_i32_0 = arith.constant 0 : i32
    %c0_i32_1 = arith.constant 0 : i32
    return %c0_i32, %c0_i32_0 : i32, i32
  }
  func.func @transform_6(%arg0: i32) -> (i32, i32) {
    %c0_i32 = arith.constant 0 : i32
    %c0_i32_0 = arith.constant 0 : i32
    %c0_i32_1 = arith.constant 0 : i32
    return %c0_i32, %c0_i32_0 : i32, i32
  }
  func.func @transform_7(%arg0: i32) -> (i32, i32) {
    %c0_i32 = arith.constant 0 : i32
    %c0_i32_0 = arith.constant 0 : i32
    %c0_i32_1 = arith.constant 0 : i32
    return %c0_i32, %c0_i32_0 : i32, i32
  }
  func.func @transform_8(%arg0: i32) -> (i32, i32, i32) {
    %c0_i32 = arith.constant 0 : i32
    %c0_i32_0 = arith.constant 0 : i32
    %c0_i32_1 = arith.constant 0 : i32
    %c0_i32_2 = arith.constant 0 : i32
    return %c0_i32, %c0_i32_0, %c0_i32_1 : i32, i32, i32
  }
  func.func @transform_9(%arg0: i32) -> (i32, i32) {
    %c0_i32 = arith.constant 0 : i32
    %c0_i32_0 = arith.constant 0 : i32
    %c0_i32_1 = arith.constant 0 : i32
    return %c0_i32, %c0_i32_0 : i32, i32
  }
  func.func @transform_10(%arg0: i32) -> (i32, i32) {
    %c0_i32 = arith.constant 0 : i32
    %c0_i32_0 = arith.constant 0 : i32
    %c0_i32_1 = arith.constant 0 : i32
    return %c0_i32, %c0_i32_0 : i32, i32
  }
  func.func @transform_11(%arg0: i32) -> (i32, i32) {
    %c0_i32 = arith.constant 0 : i32
    %c0_i32_0 = arith.constant 0 : i32
    %c0_i32_1 = arith.constant 0 : i32
    return %c0_i32, %c0_i32_0 : i32, i32
  }
  func.func @transform_12(%arg0: i32) -> (i32, i32, i32) {
    %c0_i32 = arith.constant 0 : i32
    %c0_i32_0 = arith.constant 0 : i32
    %c0_i32_1 = arith.constant 0 : i32
    return %arg0, %c0_i32, %c0_i32_0 : i32, i32, i32
  }
}

</mosaic_0001>

<bundles_post_ra>
// kernel: net_m_forward.1
= control target key start
LH: loop header
LB: loop body
LE: loop exit
PB: predicated region body
PF: predicated region fallthrough
CT: control target
= control target key end

     0   :  { %s9394_s0 = inlined_call_operand.vmem [shape: bf16[2,28,28], index: 0, kind: input, shape index: {}]   ;;  %s9395_s1 = inlined_call_operand.hbm [shape: f32[28,1], index: 1, kind: input, shape index: {}]   ;;  %s9396_s2 = inlined_call_operand.hbm [shape: bf16[5,28,512], index: 2, kind: input, shape index: {}]   ;;  %s9397_s3 = inlined_call_operand.hbm [shape: f32[1,256], index: 3, kind: input, shape index: {}]   ;;  %s9398_s4 = inlined_call_operand.hbm [shape: bf16[1280,512], index: 4, kind: input, shape index: {}]   ;;  %s9399_s5 = inlined_call_operand.hbm [shape: f32[1,256], index: 5, kind: input, shape index: {}]   ;;  %s9400_s6 = inlined_call_operand.hbm [shape: bf16[768,256], index: 6, kind: input, shape index: {}]   ;;  %s9401_s7 = inlined_call_operand.hbm [shape: f32[1,128], index: 7, kind: input, shape index: {}]   ;;  %s9402_s8 = inlined_call_operand.hbm [shape: bf16[2,128,512], index: 8, kind: input, shape index: {}]   ;;  %s9403_s9 = inlined_call_operand.hbm [shape: f32[1,512], index: 9, kind: input, shape index: {}]   ;;  %s9404_s10 = inlined_call_operand.vmem [shape: bf16[512,10], index: 10, kind: input, shape index: {}]   ;;  %s9405_s11 = inlined_call_operand.hbm [shape: f32[1,10], index: 11, kind: input, shape index: {}]   ;;  %s9406_s12 = inlined_call_operand.hbm [shape: f32[2,1,10], index: 12, kind: output, shape index: {}]  }
   0x1   :  { %9425 = sst [smem:[#allocation44_spill]] %s9396_s2 }
   0x2   :  { %17 = vsyncpa [#allocation4], 0 }
   0x3   :  { %18 = vsyncpa [#allocation7], 0 }
   0x4   :  { %19 = vsyncpa [#allocation10], 0 }
   0x5   :  { %20 = vsyncpa [#allocation13], 0 }
   0x6   :  { %21 = vsyncpa [#allocation16], 0 }
   0x7   :  { %22 = vsyncpa [#allocation19], 0 }
   0x8   :  { %23 = vsyncpa [#allocation5], 0 }
   0x9   :  { %25 = vsyncpa [#allocation5 + $0x1], 0  ;;  %s8473_s21 = smov 0   ;;  %s8475_s22 = smov 0  }
   0xa   :  { %s8477_s23 = smov 0   ;;  %s8479_s24 = smov 0  }
   0xb LB: > { %9426 = sst [smem:[#allocation28_spill]] %s8386_s23  ;;  %s8494_s25 = sadd.s32 4294967295, %s8390_s24   ;;  %s8390_s24 = sphi %s8479_s24, %s9502_s24   ;;  %s8386_s23 = sphi %s8477_s23, %s9504_s23   ;;  %s8382_s22 = sphi %s8475_s22, %s9506_s22   ;;  %s8378_s21 = sphi %s8473_s21, %s9505_s21  }
   0xc   : > { %s6363_s26 = sadd.s32 4294967294, %s8390_s24   ;;  %s8498_s27 = sadd.s32 1, %s8390_s24  }
   0xd   : > { %9427 = sst [smem:[#allocation29_spill]] %s8498_s27  ;;  %s295_s28 = sadd.s32 1, %s8386_s23 }
   0xe   : > { %s292_s29 = ssub.s32 %s8390_s24, %s8498_s27  ;;  %p305_p0 = scmp.ne.s32.totalorder %s8386_s23, %s8382_s22 }
   0xf   : > { %p293_p1 = scmp.eq.s32.totalorder %s292_s29, 0  ;;  %p306_p2 = scmp.eq.s32.totalorder %s8494_s25, 1 }
  0x10   : > { %p311_p3 = scmp.ne.s32.totalorder %s8382_s22, %s8378_s21  ;;  %p312_p4 = scmp.eq.s32.totalorder %s6363_s26, 1 }
  0x11   : > { %s8509_s30 = scalar_select %p293_p1, %s8386_s23, %s295_s28  }
  0x12   : > { %p8511_p5 = por %p306_p2, %p305_p0  ;;  %p8515_p6 = por %p312_p4, %p311_p3 }
  0x13   : > { %9428 = sst [smem:[#allocation30_spill]] %s8509_s30  ;;  %p6364_p7 = scmp.ge.s32.totalorder %s8390_s24, 1 }
  0x14   : > { %s9429_s13 = scalar_select %p8511_p5, 1, 0 }
  0x15   : > { %s9430_s14 = scalar_select %p8515_p6, 1, 0 }
  0x16   : > { %p319_p8 = scmp.lt.s32.totalorder %s8390_s24, 3  ;;  %p9412_p9 = scmp.eq.s32.totalorder %s8494_s25, 0 }
  0x17   : > { %9431 = sst [smem:[#allocation31_spill]] %s9430_s14  ;;  %s8392_s16 = smov [#allocation6]  }
  0x18   : > { %p8522_p10 = pnand %p6364_p7, %p319_p8  ;;  %s344_s17 = sshll.u32 %s8392_s16, 4  ;;  %s345_s17 = int_to_ptr.vmem [resolvable:$true] %s344_s17 }
  0x19   : > { %s8393_s19 = smov [#allocation9]   ;;  %s8057_s28 = scalar_lea.vmem %s345_s17, 5120 }
  0x1a   : > { %s9432_s15 = scalar_select %p8522_p10, 1, 0 }
  0x1b   : > { %p7113_p11 = pneg %p8522_p10  ;;  %s368_s20 = sshll.u32 %s8393_s19, 4  ;;  %s369_s20 = int_to_ptr.vmem [resolvable:$true] %s368_s20 }
  0x1c   : > { %p8058_p0 = scmp.ne.s32.totalorder %s345_s17, %s8057_s28  ;;  %p8065_p3 = scmp.lt.s32.totalorder %s345_s17, %s345_s17 }
  0x1d   : > { %p8530_p12 = pnand %p9412_p9, %p7113_p11  ;;  %p8066_p4 = scmp.lt.s32.totalorder %s8057_s28, %s8057_s28 }
  0x1f   : > { %p8536_p13 = pneg %p8530_p12  ;;  %p8067_p7 = por %p8066_p4, %p8065_p3 }
  0x21   : > { %p8060_p1 = pnand %p8058_p0, %p8536_p13 }
  0x23   : > { %p8061_p2 = pneg %p8060_p1 }
  0x25   : > { %p8068_p8 = pnand %p8067_p7, %p8061_p2 }
  0x27   : > { %8071 = shalt.err (!%p8068_p8)
}
  0x28   : > { %s8394_s29 = smov 256   ;;  %s8395_s16 = smov 16  }
  0x29   : > { %s9435_s2 = sld [smem:[#allocation44_spill]]  ;;  %s8083_s23 = scalar_lea.vmem %s369_s20, 40960 }
  0x2a   : > { %p8084_p11 = scmp.ne.s32.totalorder %s369_s20, %s8083_s23  ;;  %p8091_p3 = scmp.lt.s32.totalorder %s369_s20, %s369_s20 }
  0x2b   : > { %p8092_p2 = scmp.lt.s32.totalorder %s8083_s23, %s8083_s23 }
  0x2c   : > { %p8086_p0 = pnand %p8084_p11, %p8536_p13 }
  0x2d   : > { %p8093_p4 = por %p8092_p2, %p8091_p3 }
  0x2e   : > { %p8087_p1 = pneg %p8086_p0 }
  0x2f   : > { %7119 = dma.hbm_to_vmem [thread:$0]  (!%p8530_p12), %s9435_s2, 5120, %s345_s17, [#allocation7], %s8394_s29, %s8394_s29, %s8395_s16  }
  0x30   : > { %p8094_p7 = pnand %p8093_p4, %p8087_p1 }
  0x32   : > { %8097 = shalt.err (!%p8094_p7)
}
  0x33   : > { %7125 = dma.hbm_to_vmem [thread:$0]  (!%p8530_p12), %s9398_s4, 40960, %s369_s20, [#allocation10], %s8394_s29, %s8394_s29, %s8395_s16  }
  0x34   : > { %s8396_s30 = smov [#allocation12]   ;;  %s8397_s19 = smov [#allocation15]  }
  0x35   : > { %s392_s17 = sshll.u32 %s8396_s30, 4  ;;  %s416_s2 = sshll.u32 %s8397_s19, 4  ;;  %s393_s17 = int_to_ptr.vmem [resolvable:$true] %s392_s17  ;;  %s417_s2 = int_to_ptr.vmem [resolvable:$true] %s416_s2 }
  0x36   : > { %s8109_s23 = scalar_lea.vmem %s393_s17, 12288  ;;  %p8117_p1 = scmp.lt.s32.totalorder %s393_s17, %s393_s17 }
  0x37   : > { %p8110_p8 = scmp.ne.s32.totalorder %s393_s17, %s8109_s23  ;;  %p8118_p3 = scmp.lt.s32.totalorder %s8109_s23, %s8109_s23 }
  0x39   : > { %p8112_p11 = pnand %p8110_p8, %p8536_p13  ;;  %p8119_p2 = por %p8118_p3, %p8117_p1 }
  0x3b   : > { %p8113_p0 = pneg %p8112_p11 }
  0x3d   : > { %p8120_p4 = pnand %p8119_p2, %p8113_p0 }
  0x3f   : > { %8123 = shalt.err (!%p8120_p4)
}
  0x40   : > { %s9411_s14 = smov 128   ;;  %s8399_s27 = smov 8  }
  0x41   : > { %7131 = dma.hbm_to_vmem [thread:$0]  (!%p8530_p12), %s9400_s6, 12288, %s393_s17, [#allocation13], %s9411_s14, %s9411_s14, %s8399_s27  }
  0x42   : > { %s8135_s30 = scalar_lea.vmem %s417_s2, 8192  ;;  %p8143_p1 = scmp.lt.s32.totalorder %s417_s2, %s417_s2 }
  0x43   : > { %p8136_p7 = scmp.ne.s32.totalorder %s417_s2, %s8135_s30  ;;  %p8144_p0 = scmp.lt.s32.totalorder %s8135_s30, %s8135_s30 }
  0x45   : > { %p8138_p8 = pnand %p8136_p7, %p8536_p13  ;;  %p8145_p3 = por %p8144_p0, %p8143_p1 }
  0x47   : > { %p8139_p11 = pneg %p8138_p8 }
  0x49   : > { %p8146_p2 = pnand %p8145_p3, %p8139_p11 }
  0x4b   : > { %8149 = shalt.err (!%p8146_p2)
}
  0x4c   : > { %7137 = dma.hbm_to_vmem [thread:$0]  (!%p8530_p12), %s9402_s8, 8192, %s417_s2, [#allocation16], %s8394_s29, %s8394_s29, %s8395_s16  }
  0x4d   : > { %s8400_s17 = smov [#allocation3]   ;;  %s8401_s28 = smov [#allocation8]  }
  0x4e   : > { %s331_s20 = sshll.u32 %s8400_s17, 4  ;;  %s358_s14 = sshll.u32 %s8401_s28, 4  ;;  %s332_s20 = int_to_ptr.vmem [resolvable:$true] %s331_s20  ;;  %s359_s14 = int_to_ptr.vmem [resolvable:$true] %s358_s14 }
  0x4f   : > { %s8161_s30 = scalar_lea.vmem %s332_s20, 512  ;;  %p8169_p11 = scmp.lt.s32.totalorder %s332_s20, %s332_s20 }
  0x50   : > { %p8162_p4 = scmp.ne.s32.totalorder %s332_s20, %s8161_s30  ;;  %p8170_p1 = scmp.lt.s32.totalorder %s8161_s30, %s8161_s30 }
  0x52   : > { %p8164_p7 = pnand %p8162_p4, %p8536_p13  ;;  %p8171_p0 = por %p8170_p1, %p8169_p11 }
  0x54   : > { %p8165_p8 = pneg %p8164_p7 }
  0x56   : > { %p8172_p3 = pnand %p8171_p0, %p8165_p8 }
  0x58   : > { %8175 = shalt.err (!%p8172_p3)
}
  0x59   : > { %s9436_s2 = smov 128   ;;  %s8187_s19 = scalar_lea.vmem %s359_s14, 32 }
  0x5a   : > { %7116 = dma.hbm_to_vmem [thread:$0]  (!%p8530_p12), %s9395_s1, 512, %s332_s20, [#allocation4], %s9436_s2, %s9436_s2, %s8399_s27  }
  0x5b   : > { %p8188_p2 = scmp.ne.s32.totalorder %s359_s14, %s8187_s19  ;;  %p8195_p9 = scmp.lt.s32.totalorder %s359_s14, %s359_s14 }
  0x5c   : > { %p8196_p6 = scmp.lt.s32.totalorder %s8187_s19, %s8187_s19 }
  0x5d   : > { %p8190_p4 = pnand %p8188_p2, %p8536_p13 }
  0x5e   : > { %p8197_p11 = por %p8196_p6, %p8195_p9 }
  0x5f   : > { %p8191_p7 = pneg %p8190_p4 }
  0x61   : > { %p8198_p8 = pnand %p8197_p11, %p8191_p7 }
  0x63   : > { %8201 = shalt.err (!%p8198_p8)
}
  0x64   : > { %7122 = dma.hbm_to_vmem [thread:$0]  (!%p8530_p12), %s9397_s3, 32, %s359_s14, [#allocation7]  }
  0x65   : > { %s8402_s28 = smov [#allocation11]   ;;  %s8403_s27 = smov [#allocation14]  }
  0x66   : > { %s382_s30 = sshll.u32 %s8402_s28, 4  ;;  %s406_s20 = sshll.u32 %s8403_s27, 4  ;;  %s383_s30 = int_to_ptr.vmem [resolvable:$true] %s382_s30  ;;  %s407_s20 = int_to_ptr.vmem [resolvable:$true] %s406_s20 }
  0x67   : > { %s8213_s2 = scalar_lea.vmem %s383_s30, 32  ;;  %p8221_p9 = scmp.lt.s32.totalorder %s383_s30, %s383_s30 }
  0x68   : > { %p8214_p1 = scmp.ne.s32.totalorder %s383_s30, %s8213_s2  ;;  %p8222_p3 = scmp.lt.s32.totalorder %s8213_s2, %s8213_s2 }
  0x6a   : > { %p8216_p0 = pnand %p8214_p1, %p8536_p13  ;;  %p8223_p2 = por %p8222_p3, %p8221_p9 }
  0x6c   : > { %p8217_p6 = pneg %p8216_p0 }
  0x6e   : > { %p8224_p4 = pnand %p8223_p2, %p8217_p6 }
  0x70   : > { %8227 = shalt.err (!%p8224_p4)
}
  0x71   : > { %7128 = dma.hbm_to_vmem [thread:$0]  (!%p8530_p12), %s9399_s5, 32, %s383_s30, [#allocation10]  }
  0x72   : > { %s8239_s16 = scalar_lea.vmem %s407_s20, 16  ;;  %s8246_s19 = scalar_lea.vmem %s407_s20, 32 }
  0x73   : > { %p8240_p7 = scmp.ne.s32.totalorder %s407_s20, %s8239_s16  ;;  %p8247_p1 = scmp.lt.s32.totalorder %s407_s20, %s407_s20 }
  0x74   : > { %p8248_p0 = scmp.lt.s32.totalorder %s8246_s19, %s8239_s16 }
  0x75   : > { %p8242_p11 = pnand %p8240_p7, %p8536_p13 }
  0x76   : > { %p8249_p5 = por %p8248_p0, %p8247_p1 }
  0x77   : > { %p8243_p8 = pneg %p8242_p11 }
  0x79   : > { %p8250_p10 = pnand %p8249_p5, %p8243_p8 }
  0x7b   : > { %8253 = shalt.err (!%p8250_p10)
}
  0x7c   : > { %7134 = dma.hbm_to_vmem [thread:$0]  (!%p8530_p12), %s9401_s7, 16, %s407_s20, [#allocation13]  }
  0x7d   : > { %s8404_s28 = smov [#allocation17]   ;;  %s8405_s27 = smov [#allocation18]  }
  0x7e   : > { %s430_s30 = sshll.u32 %s8404_s28, 4  ;;  %s444_s2 = sshll.u32 %s8405_s27, 4  ;;  %s431_s30 = int_to_ptr.vmem [resolvable:$true] %s430_s30  ;;  %s445_s2 = int_to_ptr.vmem [resolvable:$true] %s444_s2 }
  0x7f   : > { %s8265_s29 = scalar_lea.vmem %s431_s30, 64  ;;  %p8273_p5 = scmp.lt.s32.totalorder %s431_s30, %s431_s30 }
  0x80   : > { %p8266_p6 = scmp.ne.s32.totalorder %s431_s30, %s8265_s29  ;;  %p8274_p10 = scmp.lt.s32.totalorder %s8265_s29, %s8265_s29 }
  0x82   : > { %p8268_p9 = pnand %p8266_p6, %p8536_p13  ;;  %p8275_p2 = por %p8274_p10, %p8273_p5 }
  0x84   : > { %p8269_p3 = pneg %p8268_p9 }
  0x86   : > { %p8276_p4 = pnand %p8275_p2, %p8269_p3 }
  0x88   : > { %8279 = shalt.err (!%p8276_p4)
}
  0x89   : > { %7140 = dma.hbm_to_vmem [thread:$0]  (!%p8530_p12), %s9403_s9, 64, %s431_s30, [#allocation16]  }
  0x8a   : > { %s8291_s16 = scalar_lea.vmem %s445_s2, 16  ;;  %s8298_s19 = scalar_lea.vmem %s445_s2, 32 }
  0x8b   : > { %p8292_p7 = scmp.ne.s32.totalorder %s445_s2, %s8291_s16  ;;  %p8299_p1 = scmp.lt.s32.totalorder %s445_s2, %s445_s2 }
  0x8c   : > { %p8300_p0 = scmp.lt.s32.totalorder %s8298_s19, %s8291_s16 }
  0x8d   : > { %p8294_p11 = pnand %p8292_p7, %p8536_p13 }
  0x8e   : > { %p8301_p6 = por %p8300_p0, %p8299_p1 }
  0x8f   : > { %p8295_p8 = pneg %p8294_p11 }
  0x91   : > { %p8302_p9 = pnand %p8301_p6, %p8295_p8 }
  0x93   : > { %8305 = shalt.err (!%p8302_p9)
}
  0x94   : > { %7143 = dma.hbm_to_vmem [thread:$0]  (!%p8530_p12), %s9405_s11, 16, %s445_s2, [#allocation19]  }
  0x95   : > { %p9437_p3 = scmp.ne.s32.totalorder %s9432_s15, 0 }
  0x97   : > { %465 = sbr.rel (%p9437_p3) target bundleno = 2056 (0x808), region = 68 }
  0x9c   : > { %p9438_p5 = scmp.eq.s32.totalorder %s8494_s25, 0 }
  0x9e   : > { %8349 = dma.done.wait (%p9438_p5), [#allocation4], 512   ;;  %p9439_p13 = pmov %p9438_p5 }
  0x9f   : > { %p9440_p10 = pmov %p9438_p5 }
  0xa0   : > { %8351 = vsyncadd (%p9439_p13), [#allocation4], 4294966784 }
  0xa1   : > { %8353 = dma.done.wait (%p9440_p10), [#allocation7], 5152   ;;  %p9441_p2 = pmov %p9438_p5 }
  0xa3   : > { %8355 = vsyncadd (%p9441_p2), [#allocation7], 4294962144  ;;  %p9442_p4 = pmov %p9441_p2 }
  0xa4   : > { %p9443_p12 = pmov %p9441_p2 }
  0xa5   : > { %8357 = dma.done.wait (%p9442_p4), [#allocation10], 40992  }
  0xa6   : > { %8359 = vsyncadd (%p9443_p12), [#allocation10], 4294926304  ;;  %p9444_p7 = pmov %p9441_p2 }
  0xa7   : > { %p9445_p11 = pmov %p9441_p2 }
  0xa8   : > { %8361 = dma.done.wait (%p9444_p7), [#allocation13], 12304  }
  0xa9   : > { %8363 = vsyncadd (%p9445_p11), [#allocation13], 4294954992  ;;  %p9446_p8 = pmov %p9441_p2 }
  0xaa   : > { %p9447_p1 = pmov %p9441_p2 }
  0xab   : > { %8365 = dma.done.wait (%p9446_p8), [#allocation16], 8256  }
  0xac   : > { %8367 = vsyncadd (%p9447_p1), [#allocation16], 4294959040  ;;  %p9448_p0 = pmov %p9447_p1 }
  0xae   : > { %8369 = dma.done.wait (%p9448_p0), [#allocation19], 16   ;;  %p9449_p6 = pmov %p9448_p0 }
  0xaf   : > { %p542_p9 = scmp.lt.s32.totalorder %s8494_s25, 1  ;;  %v9415_v0 = vmov 0   ;;  %vm593_vm0 = vcmask 1045504   ;;  %v7218_v1 = vld [vmem:[#allocation6 + $0x64] ss:$16 sps:$4 sm:$0x3f]  }
  0xb0   : > { %8371 = vsyncadd (%p9449_p6), [#allocation19], 4294967280  ;;  %694 = vmatprep.mubr.bf16.mxu0 %v9415_v0  ;;  %747 = vmatprep.mubr.bf16.mxu1 %v9415_v0  ;;  %v7220_v2 = vld [vmem:[#allocation6 + $0x6c] ss:$16 sps:$4 sm:$0x3f]   ;;  %vm642_vm2 = vcmask 228352  }
  0xb1   : > { %s543_s15 = scalar_select %p542_p9, %s8494_s25, 1  ;;  %7216 = vset.pattern.permute.xlu0 %v9415_v0  ;;  %7217 = vset.pattern.permute.xlu1 %v9415_v0  ;;  %v7222_v3 = vld [vmem:[#allocation6 + $0x60] ss:$16 sps:$4 sm:$0x3f]   ;;  %v7224_v5 = vld [vmem:[#allocation6 + $0x44] ss:$16 sps:$4 sm:$0xff]  }
  0xb2   : > { %6400 = vmatprep.subr.msk.bf16.mxu0 %vm593_vm0, %v7218_v1  ;;  %v7223_v4 = vld [vmem:[#allocation6 + $0x68] ss:$16 sps:$4 sm:$0x3f]   ;;  %6403 = vmatprep.subr.msk.bf16.mxu1 %vm593_vm0, %v7220_v2  ;;  %v651_v6 = vsel %vm593_vm0, %v7222_v3, 0  ;;  %v7226_v8 = vld [vmem:[#allocation6 + $0x4c] ss:$16 sps:$4 sm:$0xff]  }
  0xb3   : > { %s7018_s18 = sshll.u32 %s543_s15, 4  ;;  %v657_v7 = vsel %vm593_vm0, %v7223_v4, 0  ;;  %675 = vmatpush1.bf16.msra.mxu0 %v651_v6  ;;  %v7228_v9 = vld [vmem:[#allocation6 + $0x40] ss:$16 sps:$4 sm:$0xff]   ;;  %v7229_v10 = vld [vmem:[#allocation6 + $0x48] ss:$16 sps:$4 sm:$0xff]  }
  0xb4   : > { %s546_s30 = scalar_lea.vmem %s9394_s0, %s7018_s18  ;;  %728 = vmatpush1.bf16.msra.mxu1 %v657_v7  ;;  %676 = vmatprep.subr.bf16.mxu0 %v7224_v5  ;;  %v7232_v15 = vld [vmem:[#allocation6 + $0x24] ss:$16 sps:$4 sm:$0x3f]   ;;  %v7234_v19 = vld [vmem:[#allocation6 + $0x2c] ss:$16 sps:$4 sm:$0x3f]  }
  0xb5   : > { %v548_v11 = vld [vmem:[%s546_s30] sm:$0xf]  ;;  %729 = vmatprep.subr.bf16.mxu1 %v7226_v8  ;;  %v549_v12 = vld [vmem:[%s546_s30 + $0x4] sm:$0xf]  ;;  %v8666_v14 = vld [vmem:[%s546_s30 + $0x8] sm:$0x3f]  }
  0xb6   : > { %v8664_v13 = vcombine.low %v548_v11, %v549_v12  ;;  %v579_v18 = vshll.u32 %v8666_v14, 16  ;;  %v8671_v20 = vcombine.low %v548_v11, %v548_v11  ;;  %v7236_v21 = vld [vmem:[#allocation6 + $0x20] ss:$16 sps:$4 sm:$0x3f]   ;;  %vm570_vm1 = vsmask.f32 7424 }
  0xb7   : > { %677 = vmatpush1.bf16.msra.mxu0 %v7228_v9  ;;  %v7237_v22 = vld [vmem:[#allocation6 + $0x28] ss:$16 sps:$4 sm:$0x3f]   ;;  %v583_v26 = vshrl.u32 %v8666_v14, 16  ;;  %v809_v28 = vsel %vm593_vm0, %v7236_v21, 0  ;;  %vm1326_vm5 = vcmask 1043456  }
  0xb8   : > { %730 = vmatpush1.bf16.msra.mxu1 %v7229_v10  ;;  %v572_v16 = vshrl.u32 %v8664_v13, 16  ;;  %v574_v17 = vshll.u32 %v8664_v13, 16  ;;  %6414 = vmatprep.subr.msk.bf16.mxu0 %vm593_vm0, %v7232_v15  ;;  %v581_v24 = vrot.slane %v579_v18, 1  ;;  %v589_v27 = vshll.u32 %v8671_v20, 16  ;;  %v7241_v31 = vld [vmem:[#allocation6 + $0x4] ss:$16 sps:$4 sm:$0xff]  }
  0xb9   : > { %6417 = vmatprep.subr.msk.bf16.mxu1 %vm593_vm0, %v7234_v19  ;;  %v815_v29 = vsel %vm593_vm0, %v7237_v22, 0  ;;  %vm594_vm3 = vsmask.f32 5376  ;;  %v7244_v32 = vld [vmem:[#allocation6 + $0xc] ss:$16 sps:$4 sm:$0xff]   ;;  %v1323_v45 = vrot.slane %v8664_v13, 2 }
  0xba   : > { %v576_v23 = vrot.slane %v574_v17, 1  ;;  %v7239_v33 = vld [vmem:[#allocation6] ss:$16 sps:$4 sm:$0xff]   ;;  %v585_v34 = vor.u32 %v583_v26, %v581_v24  ;;  %v591_v35 = vrot.slane %v589_v27, 3  ;;  %vm595_vm4 = vmand %vm593_vm0, %vm594_vm3  ;;  %v7242_v36 = vld [vmem:[#allocation6 + $0x8] ss:$16 sps:$4 sm:$0xff]  }
  0xbb   : > { %v7245_v37 = vld [vmem:[#allocation6 + $0xa4] ss:$16 sps:$4 sm:$0x3f]   ;;  %v7247_v38 = vld [vmem:[#allocation6 + $0xac] ss:$16 sps:$4 sm:$0x3f]  }
  0xbc   : > { %v577_v25 = vor.u32 %v576_v23, %v572_v16  ;;  %v596_v39 = vsel %vm595_vm4, %v585_v34, %v591_v35  ;;  %v7249_v40 = vld [vmem:[#allocation6 + $0xa0] ss:$16 sps:$4 sm:$0x3f]   ;;  %v7250_v41 = vld [vmem:[#allocation6 + $0xa8] ss:$16 sps:$4 sm:$0x3f]  }
  0xbd   : > { %v986_v42 = vsel %vm593_vm0, %v7249_v40, 0  ;;  %v992_v43 = vsel %vm593_vm0, %v7250_v41, 0  ;;  %v7253_v44 = vld [vmem:[#allocation6 + $0x84] ss:$16 sps:$4 sm:$0xff]   ;;  %v7251_v46 = vld [vmem:[#allocation6 + $0x80] ss:$16 sps:$4 sm:$0xff]  }
  0xbe   : > { %v582_v30 = vsel %vm570_vm1, %v577_v25, %v581_v24  ;;  %v7254_v47 = vld [vmem:[#allocation6 + $0x88] ss:$16 sps:$4 sm:$0xff]   ;;  %v7256_v48 = vld [vmem:[#allocation6 + $0x8c] ss:$16 sps:$4 sm:$0xff]   ;;  %v1324_v51 = vrot.slane %v8666_v14, 2  ;;  %v927_v56 = vrot.slane %v8664_v13, 1 }
  0xbf   : > { %6401 = vmatmul.mubr.msk.bf16.vlgmr.msra.gmra.mxu0 %vm642_vm2, %v582_v30  ;;  %6404 = vmatmul.mubr.msk.bf16.vlgmr.msra.gmra.mxu1 %vm642_vm2, %v582_v30  ;;  %v7257_v49 = vld [vmem:[#allocation6 + $0xe4] ss:$16 sps:$4 sm:$0x3f]   ;;  %v7259_v50 = vld [vmem:[#allocation6 + $0xec] ss:$16 sps:$4 sm:$0x3f]  }
  0xc0   : > { %833 = vmatpush1.bf16.msra.mxu0 %v809_v28  ;;  %886 = vmatpush1.bf16.msra.mxu1 %v815_v29  ;;  %v8711_v52 = vsel %vm593_vm0, %v1323_v45, %v1324_v51  ;;  %v8715_v53 = vsel %vm1326_vm5, %v1324_v51, %v8671_v20  ;;  %v7261_v54 = vld [vmem:[#allocation6 + $0xe0] ss:$16 sps:$4 sm:$0x3f]   ;;  %v7262_v55 = vld [vmem:[#allocation6 + $0xe8] ss:$16 sps:$4 sm:$0x3f]  }
  0xc1   : > { %704 = vmatprep.mubr.bf16.mxu0 %v9415_v0  ;;  %757 = vmatprep.mubr.bf16.mxu1 %v9415_v0  ;;  %v928_v57 = vrot.slane %v8666_v14, 1  ;;  %vm926_vm6 = vcmask 1046528   ;;  %v7265_v59 = vld [vmem:[#allocation6 + $0xc4] ss:$16 sps:$4 sm:$0xff]   ;;  %v7268_v60 = vld [vmem:[#allocation6 + $0xcc] ss:$16 sps:$4 sm:$0xff]  }
  0xc2   : > { %834 = vmatprep.subr.bf16.mxu0 %v7241_v31  ;;  %887 = vmatprep.subr.bf16.mxu1 %v7244_v32  ;;  %v1190_v61 = vsel %vm593_vm0, %v7261_v54, 0  ;;  %v1196_v62 = vsel %vm593_vm0, %v7262_v55, 0  ;;  %v7263_v63 = vld [vmem:[#allocation6 + $0xc0] ss:$16 sps:$4 sm:$0xff]   ;;  %v7266_v1 = vld [vmem:[#allocation6 + $0xc8] ss:$16 sps:$4 sm:$0xff]  }
  0xc3   : > { %v929_v58 = vsel %vm926_vm6, %v927_v56, %v928_v57  ;;  %v7269_v2 = vld [vmem:[#allocation6 + $0x124] ss:$16 sps:$4 sm:$0x3f]   ;;  %v7271_v3 = vld [vmem:[#allocation6 + $0x12c] ss:$16 sps:$4 sm:$0x3f]  }
  0xc4   : > { %835 = vmatpush1.bf16.msra.mxu0 %v7239_v33  ;;  %888 = vmatpush1.bf16.msra.mxu1 %v7242_v36  ;;  %v930_v4 = vrot.slane %v8671_v20, 3  ;;  %vm931_vm7 = vcmask 1044480   ;;  %v1120_v5 = vrot.slane %v572_v16, 1  ;;  %v1121_v6 = vrot.slane %v574_v17, 2  ;;  %v7277_v19 = vld [vmem:[#allocation6 + $0x104] ss:$16 sps:$4 sm:$0xff]  }
  0xc5   : > { %6428 = vmatprep.subr.msk.bf16.mxu0 %vm593_vm0, %v7245_v37  ;;  %6431 = vmatprep.subr.msk.bf16.mxu1 %vm593_vm0, %v7247_v38  ;;  %v1124_v7 = vrot.slane %v579_v18, 2  ;;  %v1123_v8 = vrot.slane %v583_v26, 1  ;;  %vm1135_vm8 = vsmask.f32 4352  ;;  %vm1119_vm9 = vsmask.f32 6400 }
  0xc6   : > { %v934_v9 = vsel %vm931_vm7, %v928_v57, %v930_v4  ;;  %v7273_v10 = vld [vmem:[#allocation6 + $0x120] ss:$16 sps:$4 sm:$0x3f]   ;;  %v7274_v11 = vld [vmem:[#allocation6 + $0x128] ss:$16 sps:$4 sm:$0x3f]   ;;  %v1122_v12 = vor.u32 %v1121_v6, %v1120_v5  ;;  %vm8752_vm10 = vmand %vm931_vm7, %vm1135_vm8 }
  0xc7   : > { %6402 = vmatmul.mubr.msk.bf16.gmra.mxu0 %vm642_vm2, %v596_v39  ;;  %6405 = vmatmul.mubr.msk.bf16.gmra.mxu1 %vm642_vm2, %v596_v39  ;;  %v1131_v18 = vrot.slane %v589_v27, 4  ;;  %v7280_v21 = vld [vmem:[#allocation6 + $0x10c] ss:$16 sps:$4 sm:$0xff]   ;;  %v1380_v22 = vsel %vm593_vm0, %v7273_v10, 0  ;;  %v1386_v23 = vsel %vm593_vm0, %v7274_v11, 0  ;;  %vm1556_vm11 = vcmask 1042432  }
  0xc8   : > { %852 = vmatprep.mubr.bf16.mxu0 %v9415_v0  ;;  %905 = vmatprep.mubr.bf16.mxu1 %v9415_v0  ;;  %v7275_v24 = vld [vmem:[#allocation6 + $0x100] ss:$16 sps:$4 sm:$0xff]   ;;  %v7278_v25 = vld [vmem:[#allocation6 + $0x108] ss:$16 sps:$4 sm:$0xff]   ;;  %vm1668_vm12 = vcmask 1040384   ;;  %vm1669_vm13 = vcmask 1044484  }
  0xc9   : > { %v7283_v27 = vld [vmem:[#allocation9 + $0xe4] ss:$16 sps:$4 sm:$0xff]   ;;  %v7281_v28 = vld [vmem:[#allocation9 + $0xe0] ss:$16 sps:$4 sm:$0xff]   ;;  %vm8927_vm14 = vmor %vm1668_vm12, %vm1669_vm13  ;;  %vm1624_vm15 = vcmask 1046532   ;;  %vm1648_vm1 = vcmask 1041408  }
  0xca   : > { %v7286_v29 = vld [vmem:[#allocation9 + $0xc4] ss:$16 sps:$4 sm:$0xff]   ;;  %v7284_v30 = vld [vmem:[#allocation9 + $0xc0] ss:$16 sps:$4 sm:$0xff]   ;;  %vm8949_vm3 = vmor %vm1556_vm11, %vm1624_vm15  ;;  %s540_s17 = sand.u32 1, %s8382_s22   ;;  %s7015_s15 = sshll.u32 %s8494_s25, 4 }
  0xcb   : > { %v7289_v31 = vld [vmem:[#allocation9 + $0x2e4] ss:$16 sps:$4 sm:$0xff]   ;;  %v7287_v32 = vld [vmem:[#allocation9 + $0x2e0] ss:$16 sps:$4 sm:$0xff]   ;;  %s541_s18 = scalar_lea.vmem [#allocation20], %s540_s17  ;;  %s6208_s27 = scalar_lea.hbm %s9406_s12, %s7015_s15 }
  0xcc   : > { %v7292_v33 = vld [vmem:[#allocation9 + $0xa4] ss:$16 sps:$4 sm:$0xff]   ;;  %v7290_v34 = vld [vmem:[#allocation9 + $0xa0] ss:$16 sps:$4 sm:$0xff]   ;;  %s6210_s26 = sshll.u32 %s541_s18, 4  ;;  %s6198_s2 = scalar_lea.sflag [#allocation5], %s540_s17  ;;  %s6211_s26 = int_to_ptr.vmem [resolvable:$true] %s6210_s26 }
  0xcd   : > { %v7295_v35 = vld [vmem:[#allocation9 + $0x2c4] ss:$16 sps:$4 sm:$0xff]   ;;  %v7293_v36 = vld [vmem:[#allocation9 + $0x2c0] ss:$16 sps:$4 sm:$0xff]   ;;  %s8306_s29 = scalar_lea.vmem %s6211_s26, 16  ;;  %p9499_p5 = scmp.ne.s32.totalorder %s9429_s13, 0 }
  0xce   : > { %v7298_v37 = vld [vmem:[#allocation9 + $0x84] ss:$16 sps:$4 sm:$0xff]   ;;  %v7296_v38 = vld [vmem:[#allocation9 + $0x80] ss:$16 sps:$4 sm:$0xff]   ;;  %p8307_p3 = scmp.ne.s32.totalorder %s6211_s26, %s8306_s29  ;;  %s8407_s14 = smov [#allocation20]  }
  0xcf   : > { %6415 = vmatmul.mubr.msk.bf16.vlgmr.msra.gmra.mxu0 %vm642_vm2, %v8664_v13  ;;  %6418 = vmatmul.mubr.msk.bf16.vlgmr.msra.gmra.mxu1 %vm642_vm2, %v8664_v13  ;;  %v1125_v13 = vor.u32 %v1124_v7, %v1123_v8  ;;  %v7301_v39 = vld [vmem:[#allocation9 + $0x2a4] ss:$16 sps:$4 sm:$0xff]   ;;  %v7299_v40 = vld [vmem:[#allocation9 + $0x2a0] ss:$16 sps:$4 sm:$0xff]   ;;  %s8310_s20 = sshll.u32 %s8407_s14, 4  ;;  %s8311_s20 = int_to_ptr.vmem [resolvable:$false] %s8310_s20 }
  0xd0   : > { %1010 = vmatpush1.bf16.msra.mxu0 %v986_v42  ;;  %1063 = vmatpush1.bf16.msra.mxu1 %v992_v43  ;;  %v7304_v41 = vld [vmem:[#allocation9 + $0x64] ss:$16 sps:$4 sm:$0xff]   ;;  %v7302_v42 = vld [vmem:[#allocation9 + $0x60] ss:$16 sps:$4 sm:$0xff]   ;;  %p8308_p13 = pnand %p8307_p3, %p9499_p5  ;;  %s8312_s25 = scalar_lea.vmem %s8311_s20, 32 }
  0xd1   : > { %862 = vmatprep.mubr.bf16.mxu0 %v9415_v0  ;;  %915 = vmatprep.mubr.bf16.mxu1 %v9415_v0  ;;  %v1126_v16 = vsel %vm1119_vm9, %v1122_v12, %v1125_v13  ;;  %v7307_v43 = vld [vmem:[#allocation9 + $0x284] ss:$16 sps:$4 sm:$0xff]   ;;  %v7320_v54 = vld [vmem:[#allocation9] ss:$16 sps:$4 sm:$0xff]   ;;  %p8313_p2 = scmp.lt.s32.totalorder %s6211_s26, %s8311_s20  ;;  %p8314_p4 = scmp.lt.s32.totalorder %s8312_s25, %s8306_s29 }
  0xd2   : > { %1011 = vmatprep.subr.bf16.mxu0 %v7253_v44  ;;  %1064 = vmatprep.subr.bf16.mxu1 %v7256_v48  ;;  %v7305_v44 = vld [vmem:[#allocation9 + $0x280] ss:$16 sps:$4 sm:$0xff]   ;;  %v7310_v45 = vld [vmem:[#allocation9 + $0x44] ss:$16 sps:$4 sm:$0xff]   ;;  %p8309_p10 = pneg %p8308_p13 }
  0xd3   : > { %v7311_v48 = vld [vmem:[#allocation9 + $0x260] ss:$16 sps:$4 sm:$0xff]   ;;  %v7319_v51 = vld [vmem:[#allocation9 + $0x244] ss:$16 sps:$4 sm:$0xff]   ;;  %p8315_p12 = por %p8314_p4, %p8313_p2 }
  0xd4   : > { %1012 = vmatpush1.bf16.msra.mxu0 %v7251_v46  ;;  %1065 = vmatpush1.bf16.msra.mxu1 %v7254_v47  ;;  %v7308_v46 = vld [vmem:[#allocation9 + $0x40] ss:$16 sps:$4 sm:$0xff]   ;;  %v7313_v47 = vld [vmem:[#allocation9 + $0x264] ss:$16 sps:$4 sm:$0xff]  }
  0xd5   : > { %6442 = vmatprep.subr.msk.bf16.mxu0 %vm593_vm0, %v7257_v49  ;;  %6445 = vmatprep.subr.msk.bf16.mxu1 %vm593_vm0, %v7259_v50  ;;  %v7316_v49 = vld [vmem:[#allocation9 + $0x24] ss:$16 sps:$4 sm:$0xff]   ;;  %v7314_v50 = vld [vmem:[#allocation9 + $0x20] ss:$16 sps:$4 sm:$0xff]   ;;  %p8316_p7 = pnand %p8315_p12, %p8309_p10 }
  0xd6   : > { %v7325_v55 = vld [vmem:[#allocation9 + $0x224] ss:$16 sps:$4 sm:$0xff]   ;;  %v7323_v56 = vld [vmem:[#allocation9 + $0x220] ss:$16 sps:$4 sm:$0xff]  }
  0xd7   : > { %6416 = vmatmul.mubr.msk.bf16.gmra.mxu0 %vm642_vm2, %v8666_v14  ;;  %6419 = vmatmul.mubr.msk.bf16.gmra.mxu1 %vm642_vm2, %v8666_v14  ;;  %v1128_v14 = vshrl.u32 %v8671_v20, 16  ;;  %v7328_v57 = vld [vmem:[#allocation9 + $0x1e4] ss:$16 sps:$4 sm:$0xff]   ;;  %v7341_v5 = vld [vmem:[#allocation9 + $0x3c0] ss:$16 sps:$4 sm:$0xff]  }
  0xd8   : > { %1029 = vmatprep.mubr.bf16.mxu0 %v9415_v0  ;;  %1082 = vmatprep.mubr.bf16.mxu1 %v9415_v0  ;;  %v7343_v4 = vld [vmem:[#allocation9 + $0x3c4] ss:$16 sps:$4 sm:$0xff]   ;;  %v7344_v7 = vld [vmem:[#allocation9 + $0x180] ss:$16 sps:$4 sm:$0xff]  }
  0xd9   : > { %v1130_v17 = vrot.slane %v1128_v14, 3  ;;  %v7346_v6 = vld [vmem:[#allocation9 + $0x184] ss:$16 sps:$4 sm:$0xff]   ;;  %v7350_v11 = vld [vmem:[#allocation9 + $0x160] ss:$16 sps:$4 sm:$0xff]  }
  0xda   : > { %v7349_v8 = vld [vmem:[#allocation9 + $0x3a4] ss:$16 sps:$4 sm:$0xff]   ;;  %v7356_v15 = vld [vmem:[#allocation9 + $0x140] ss:$16 sps:$4 sm:$0xff]  }
  0xdb   : > { %v1132_v26 = vor.u32 %v1131_v18, %v1130_v17  ;;  %v7352_v10 = vld [vmem:[#allocation9 + $0x164] ss:$16 sps:$4 sm:$0xff]   ;;  %v7359_v17 = vld [vmem:[#allocation9 + $0x360] ss:$16 sps:$4 sm:$0xff]  }
  0xdc   : > { %v7355_v12 = vld [vmem:[#allocation9 + $0x384] ss:$16 sps:$4 sm:$0xff]  }
  0xdd   : > { %v1137_v20 = vsel %vm8752_vm10, %v1125_v13, %v1132_v26  ;;  %v7353_v13 = vld [vmem:[#allocation9 + $0x380] ss:$16 sps:$4 sm:$0xff]   ;;  %v7358_v14 = vld [vmem:[#allocation9 + $0x144] ss:$16 sps:$4 sm:$0xff]  }
  0xde   : > { %v7364_v18 = vld [vmem:[#allocation9 + $0x124] ss:$16 sps:$4 sm:$0xff]   ;;  %v7371_v26 = vld [vmem:[#allocation9 + $0x320] ss:$16 sps:$4 sm:$0xff]  }
  0xdf   : > { %6429 = vmatmul.mubr.msk.bf16.vlgmr.msra.gmra.mxu0 %vm642_vm2, %v929_v58  ;;  %6432 = vmatmul.mubr.msk.bf16.vlgmr.msra.gmra.mxu1 %vm642_vm2, %v929_v58  ;;  %v7326_v58 = vld [vmem:[#allocation9 + $0x1e0] ss:$16 sps:$4 sm:$0xff]  }
  0xe0   : > { %1214 = vmatpush1.bf16.msra.mxu0 %v1190_v61  ;;  %1267 = vmatpush1.bf16.msra.mxu1 %v1196_v62  ;;  %v7334_v61 = vld [vmem:[#allocation9 + $0x1c4] ss:$16 sps:$4 sm:$0xff]   ;;  %v7332_v62 = vld [vmem:[#allocation9 + $0x1c0] ss:$16 sps:$4 sm:$0xff]  }
  0xe1   : > { %1039 = vmatprep.mubr.bf16.mxu0 %v9415_v0  ;;  %1092 = vmatprep.mubr.bf16.mxu1 %v9415_v0 }
  0xe2   : > { %1215 = vmatprep.subr.bf16.mxu0 %v7265_v59  ;;  %1268 = vmatprep.subr.bf16.mxu1 %v7268_v60  ;;  %v7331_v59 = vld [vmem:[#allocation9 + $0x204] ss:$16 sps:$4 sm:$0xff]   ;;  %v7329_v60 = vld [vmem:[#allocation9 + $0x200] ss:$16 sps:$4 sm:$0xff]  }
  0xe4   : > { %1216 = vmatpush1.bf16.msra.mxu0 %v7263_v63  ;;  %1269 = vmatpush1.bf16.msra.mxu1 %v7266_v1  ;;  %v7337_v63 = vld [vmem:[#allocation9 + $0x3e4] ss:$16 sps:$4 sm:$0xff]   ;;  %v7335_v1 = vld [vmem:[#allocation9 + $0x3e0] ss:$16 sps:$4 sm:$0xff]  }
  0xe5   : > { %6456 = vmatprep.subr.msk.bf16.mxu0 %vm593_vm0, %v7269_v2  ;;  %6459 = vmatprep.subr.msk.bf16.mxu1 %vm593_vm0, %v7271_v3  ;;  %v7340_v2 = vld [vmem:[#allocation9 + $0x1a4] ss:$16 sps:$4 sm:$0xff]   ;;  %v7338_v3 = vld [vmem:[#allocation9 + $0x1a0] ss:$16 sps:$4 sm:$0xff]  }
  0xe7   : > { %6430 = vmatmul.mubr.msk.bf16.gmra.mxu0 %vm642_vm2, %v934_v9  ;;  %6433 = vmatmul.mubr.msk.bf16.gmra.mxu1 %vm642_vm2, %v934_v9  ;;  %v7347_v9 = vld [vmem:[#allocation9 + $0x3a0] ss:$16 sps:$4 sm:$0xff]  }
  0xe8   : > { %1233 = vmatprep.mubr.bf16.mxu0 %v9415_v0  ;;  %1286 = vmatprep.mubr.bf16.mxu1 %v9415_v0 }
  0xef   : > { %6443 = vmatmul.mubr.msk.bf16.vlgmr.msra.gmra.mxu0 %vm642_vm2, %v1126_v16  ;;  %6446 = vmatmul.mubr.msk.bf16.vlgmr.msra.gmra.mxu1 %vm642_vm2, %v1126_v16  ;;  %v7361_v16 = vld [vmem:[#allocation9 + $0x364] ss:$16 sps:$4 sm:$0xff]  }
  0xf0   : > { %1404 = vmatpush1.bf16.msra.mxu0 %v1380_v22  ;;  %1457 = vmatpush1.bf16.msra.mxu1 %v1386_v23  ;;  %v7365_v22 = vld [vmem:[#allocation9 + $0x340] ss:$16 sps:$4 sm:$0xff]   ;;  %v7370_v23 = vld [vmem:[#allocation9 + $0x104] ss:$16 sps:$4 sm:$0xff]  }
  0xf1   : > { %1243 = vmatprep.mubr.bf16.mxu0 %v9415_v0  ;;  %1296 = vmatprep.mubr.bf16.mxu1 %v9415_v0 }
  0xf2   : > { %1405 = vmatprep.subr.bf16.mxu0 %v7277_v19  ;;  %1458 = vmatprep.subr.bf16.mxu1 %v7280_v21  ;;  %v7362_v19 = vld [vmem:[#allocation9 + $0x120] ss:$16 sps:$4 sm:$0xff]   ;;  %v7367_v21 = vld [vmem:[#allocation9 + $0x344] ss:$16 sps:$4 sm:$0xff]  }
  0xf4   : > { %1406 = vmatpush1.bf16.msra.mxu0 %v7275_v24  ;;  %1459 = vmatpush1.bf16.msra.mxu1 %v7278_v25  ;;  %v7368_v24 = vld [vmem:[#allocation9 + $0x100] ss:$16 sps:$4 sm:$0xff]   ;;  %v7373_v25 = vld [vmem:[#allocation9 + $0x324] ss:$16 sps:$4 sm:$0xff]  }
  0xf5   : > { %3737 = vmatprep.subr.bf16.mxu0 %v7283_v27  ;;  %3790 = vmatprep.subr.bf16.mxu1 %v7289_v31  ;;  %v7379_v27 = vld [vmem:[#allocation9 + $0x304] ss:$16 sps:$4 sm:$0xff]  }
  0xf7   : > { %6444 = vmatmul.mubr.msk.bf16.gmra.mxu0 %vm642_vm2, %v1137_v20  ;;  %6447 = vmatmul.mubr.msk.bf16.gmra.mxu1 %vm642_vm2, %v1137_v20  ;;  %v7376_v20 = vld [vmem:[#allocation9 + $0x4e4] ss:$16 sps:$4 sm:$0xff]  }
  0xf8   : > { %1423 = vmatprep.mubr.bf16.mxu0 %v9415_v0  ;;  %1476 = vmatprep.mubr.bf16.mxu1 %v9415_v0 }
  0xff   : > { %6457 = vmatmul.mubr.msk.bf16.vlgmr.msra.gmra.mxu0 %vm642_vm2, %v8711_v52  ;;  %6460 = vmatmul.mubr.msk.bf16.vlgmr.msra.gmra.mxu1 %vm642_vm2, %v8711_v52  ;;  %v7317_v52 = vld [vmem:[#allocation9 + $0x240] ss:$16 sps:$4 sm:$0xff]  }
 0x100   : > { %1433 = vmatprep.mubr.bf16.mxu0 %v9415_v0  ;;  %1486 = vmatprep.mubr.bf16.mxu1 %v9415_v0 }
 0x101   : > { %3738 = vmatpush1.bf16.msra.mxu0 %v7281_v28  ;;  %3791 = vmatpush1.bf16.msra.mxu1 %v7287_v32  ;;  %v7377_v28 = vld [vmem:[#allocation9 + $0x300] ss:$16 sps:$4 sm:$0xff]  }
 0x102   : > { %3739 = vmatprep.subr.bf16.mxu0 %v7286_v29  ;;  %3792 = vmatprep.subr.bf16.mxu1 %v7295_v35  ;;  %v7385_v29 = vld [vmem:[#allocation9 + $0x6e4] ss:$16 sps:$4 sm:$0xff]  }
 0x105   : > { %3740 = vmatpush1.bf16.msra.mxu0 %v7284_v30  ;;  %3793 = vmatpush1.bf16.msra.mxu1 %v7293_v36 }
 0x106   : > { %3741 = vmatprep.subr.bf16.mxu0 %v7292_v33  ;;  %3794 = vmatprep.subr.bf16.mxu1 %v7301_v39 }
 0x107   : > { %6458 = vmatmul.mubr.msk.bf16.gmra.mxu0 %vm642_vm2, %v8715_v53  ;;  %6461 = vmatmul.mubr.msk.bf16.gmra.mxu1 %vm642_vm2, %v8715_v53  ;;  %v7322_v53 = vld [vmem:[#allocation9 + $0x4] ss:$16 sps:$4 sm:$0xff]   ;;  %vm1649_vm2 = vcmask 1045508  }
 0x108   : > { %vm8982_vm4 = vmor %vm1648_vm1, %vm1649_vm2 }
 0x109   : > { %3742 = vmatpush1.bf16.msra.mxu0 %v7290_v34  ;;  %3795 = vmatpush1.bf16.msra.mxu1 %v7299_v40 }
 0x10a   : > { %3743 = vmatprep.subr.bf16.mxu0 %v7298_v37  ;;  %3796 = vmatprep.subr.bf16.mxu1 %v7307_v43 }
 0x10d   : > { %3744 = vmatpush1.bf16.msra.mxu0 %v7296_v38  ;;  %3797 = vmatpush1.bf16.msra.mxu1 %v7305_v44 }
 0x10e   : > { %3745 = vmatprep.subr.bf16.mxu0 %v7304_v41  ;;  %3798 = vmatprep.subr.bf16.mxu1 %v7313_v47 }
 0x111   : > { %3746 = vmatpush1.bf16.msra.mxu0 %v7302_v42  ;;  %3799 = vmatpush1.bf16.msra.mxu1 %v7311_v48 }
 0x112   : > { %3747 = vmatprep.subr.bf16.mxu0 %v7310_v45  ;;  %3800 = vmatprep.subr.bf16.mxu1 %v7319_v51 }
 0x115   : > { %3748 = vmatpush1.bf16.msra.mxu0 %v7308_v46  ;;  %3801 = vmatpush1.bf16.msra.mxu1 %v7317_v52 }
 0x116   : > { %3749 = vmatprep.subr.bf16.mxu0 %v7316_v49  ;;  %3802 = vmatprep.subr.bf16.mxu1 %v7325_v55 }
 0x119   : > { %3750 = vmatpush1.bf16.msra.mxu0 %v7314_v50  ;;  %3803 = vmatpush1.bf16.msra.mxu1 %v7323_v56 }
 0x11a   : > { %3751 = vmatprep.subr.bf16.mxu0 %v7322_v53  ;;  %3804 = vmatprep.subr.bf16.mxu1 %v7331_v59 }
 0x11d   : > { %3752 = vmatpush1.bf16.msra.mxu0 %v7320_v54  ;;  %3805 = vmatpush1.bf16.msra.mxu1 %v7329_v60 }
 0x11e   : > { %3753 = vmatprep.subr.bf16.mxu0 %v7328_v57  ;;  %3806 = vmatprep.subr.bf16.mxu1 %v7337_v63 }
 0x121   : > { %3754 = vmatpush2.bf16.msra.mxu0 %v7326_v58  ;;  %3807 = vmatpush2.bf16.msra.mxu1 %v7335_v1 }
 0x122   : > { %3755 = vmatprep.subr.bf16.mxu0 %v7334_v61  ;;  %3808 = vmatprep.subr.bf16.mxu1 %v7343_v4 }
 0x125   : > { %3756 = vmatpush2.bf16.msra.mxu0 %v7332_v62  ;;  %3809 = vmatpush2.bf16.msra.mxu1 %v7341_v5 }
 0x126   : > { %3757 = vmatprep.subr.bf16.mxu0 %v7340_v2  ;;  %3810 = vmatprep.subr.bf16.mxu1 %v7349_v8 }
 0x129   : > { %3758 = vmatpush2.bf16.msra.mxu0 %v7338_v3  ;;  %3811 = vmatpush2.bf16.msra.mxu1 %v7347_v9 }
 0x12a   : > { %3759 = vmatprep.subr.bf16.mxu0 %v7346_v6  ;;  %3812 = vmatprep.subr.bf16.mxu1 %v7355_v12 }
 0x12d   : > { %3760 = vmatpush2.bf16.msra.mxu0 %v7344_v7  ;;  %3813 = vmatpush2.bf16.msra.mxu1 %v7353_v13 }
 0x12e   : > { %3761 = vmatprep.subr.bf16.mxu0 %v7352_v10  ;;  %3814 = vmatprep.subr.bf16.mxu1 %v7361_v16 }
 0x131   : > { %3762 = vmatpush2.bf16.msra.mxu0 %v7350_v11  ;;  %3815 = vmatpush2.bf16.msra.mxu1 %v7359_v17 }
 0x132   : > { %3763 = vmatprep.subr.bf16.mxu0 %v7358_v14  ;;  %3816 = vmatprep.subr.bf16.mxu1 %v7367_v21 }
 0x135   : > { %3764 = vmatpush2.bf16.msra.mxu0 %v7356_v15  ;;  %3817 = vmatpush2.bf16.msra.mxu1 %v7365_v22  ;;  %v1569_v15 = vlaneseq }
 0x136   : > { %3765 = vmatprep.subr.bf16.mxu0 %v7364_v18  ;;  %3818 = vmatprep.subr.bf16.mxu1 %v7373_v25 }
 0x137   : > { %v8832_v21 = vshrl.u32 %v1569_v15, 7 }
 0x139   : > { %3766 = vmatpush2.bf16.msra.mxu0 %v7362_v19  ;;  %3819 = vmatpush2.bf16.msra.mxu1 %v7371_v26  ;;  %9457 = vst [vmem:[#allocation37_spill] sm:$0xff] %v8832_v21  ;;  %v1567_v26 = vld [vmem:[#allocation8] sm:$0x3] }
 0x13a   : > { %3767 = vmatprep.subr.bf16.mxu0 %v7370_v23  ;;  %3820 = vmatprep.subr.bf16.mxu1 %v7379_v27  ;;  %v8838_v27 = vsub.s32 1, %v8832_v21 }
 0x13c   : > { %9459 = vst [vmem:[#allocation39_spill] sm:$0xff] %v8838_v27 }
 0x13d   : > { %3768 = vmatpush2.bf16.msra.mxu0 %v7368_v24  ;;  %3821 = vmatpush2.bf16.msra.mxu1 %v7377_v28 }
 0x13e   : > { %3843 = vmatprep.subr.bf16.mxu0 %v7376_v20  ;;  %3896 = vmatprep.subr.bf16.mxu1 %v7385_v29  ;;  %v8835_v20 = vsub.s32 0, %v8832_v21 }
 0x140   : > { %9458 = vst [vmem:[#allocation38_spill] sm:$0xff] %v8835_v20 }
 0x17f   : > { %v8780_v30 = vpop.f32.mrf.mxu0  ;;  %v8782_v31 = vpop.f32.mrf.mxu1 }
 0x181   : > { %v8784_v32 = vpop.f32.mrf.mxu0  ;;  %v8786_v33 = vpop.f32.mrf.mxu1 }
 0x183   : > { %v8788_v34 = vpop.f32.mrf.mxu0  ;;  %v8790_v35 = vpop.f32.mrf.mxu1 }
 0x185   : > { %v8792_v36 = vpop.f32.mrf.mxu0  ;;  %v8794_v37 = vpop.f32.mrf.mxu1 }
 0x187   : > { %v8796_v38 = vpop.f32.mrf.mxu0  ;;  %v8798_v39 = vpop.f32.mrf.mxu1 }
 0x189   : > { %v8800_v40 = vpop.f32.mrf.mxu0  ;;  %v8802_v41 = vpop.f32.mrf.mxu1 }
 0x18b   : > { %v8804_v42 = vpop.f32.mrf.mxu0  ;;  %v8806_v43 = vpop.f32.mrf.mxu1 }
 0x18d   : > { %v8808_v44 = vpop.f32.mrf.mxu0  ;;  %v8810_v45 = vpop.f32.mrf.mxu1 }
 0x18f   : > { %v854_v46 = vpop.f32.mrf.mxu0  ;;  %v907_v47 = vpop.f32.mrf.mxu1 }
 0x190   : > { %v855_v15 = vadd.f32 %v854_v46, %v8780_v30 }
 0x191   : > { %v856_v48 = vpop.f32.mrf.mxu0  ;;  %v909_v49 = vpop.f32.mrf.mxu1 }
 0x192   : > { %v910_v21 = vadd.f32 %v909_v49, %v8786_v33 }
 0x193   : > { %v858_v50 = vpop.f32.mrf.mxu0  ;;  %v911_v51 = vpop.f32.mrf.mxu1 }
 0x194   : > { %v912_v30 = vadd.f32 %v911_v51, %v8790_v35 }
 0x195   : > { %v860_v52 = vpop.f32.mrf.mxu0  ;;  %v913_v53 = vpop.f32.mrf.mxu1 }
 0x197   : > { %v864_v54 = vpop.f32.mrf.mxu0  ;;  %v917_v55 = vpop.f32.mrf.mxu1 }
 0x198   : > { %v918_v33 = vadd.f32 %v917_v55, %v8798_v39 }
 0x199   : > { %v866_v56 = vpop.f32.mrf.mxu0  ;;  %v919_v57 = vpop.f32.mrf.mxu1 }
 0x19b   : > { %v868_v58 = vpop.f32.mrf.mxu0  ;;  %v921_v59 = vpop.f32.mrf.mxu1 }
 0x19c   : > { %v869_v51 = vadd.f32 %v868_v58, %v8804_v42 }
 0x19d   : > { %v8812_v60 = vpop.f32.mrf.mxu0  ;;  %v8814_v61 = vpop.f32.mrf.mxu1 }
 0x19e   : > { %v924_v58 = vadd.f32 %v8814_v61, %v8810_v45 }
 0x19f   : > { %v1031_v62 = vpop.f32.mrf.mxu0  ;;  %v1084_v63 = vpop.f32.mrf.mxu1 }
 0x1a0   : > { %v1103_v46 = vadd.f32 %v1031_v62, %v855_v15 }
 0x1a1   : > { %v1033_v1 = vpop.f32.mrf.mxu0  ;;  %v1086_v2 = vpop.f32.mrf.mxu1 }
 0x1a3   : > { %v1035_v3 = vpop.f32.mrf.mxu0  ;;  %v1088_v4 = vpop.f32.mrf.mxu1 }
 0x1a4   : > { %v1109_v62 = vadd.f32 %v1088_v4, %v912_v30 }
 0x1a5   : > { %v1037_v5 = vpop.f32.mrf.mxu0  ;;  %v1090_v6 = vpop.f32.mrf.mxu1 }
 0x1a7   : > { %v8816_v7 = vpop.f32.mrf.mxu0  ;;  %v8818_v8 = vpop.f32.mrf.mxu1 }
 0x1a9   : > { %v8820_v9 = vpop.f32.mrf.mxu0  ;;  %v8822_v10 = vpop.f32.mrf.mxu1 }
 0x1aa   : > { %9452 = vst [vmem:[#allocation32_spill] sm:$0xff] %v8822_v10  ;;  %v859_v10 = vadd.f32 %v858_v50, %v8788_v34  ;;  %v867_v34 = vadd.f32 %v866_v56, %v8800_v40  ;;  %v871_v56 = vadd.f32 %v8812_v60, %v8808_v44 }
 0x1ab   : > { %v8824_v11 = vpop.f32.mrf.mxu0  ;;  %v8826_v12 = vpop.f32.mrf.mxu1 }
 0x1ac   : > { %9453 = vst [vmem:[#allocation33_spill] sm:$0xff] %v8824_v11  ;;  %9454 = vst [vmem:[#allocation34_spill] sm:$0xff] %v8826_v12  ;;  %v8851_v12 = vrot.slane %v1567_v26, %v8835_v20  ;;  %v857_v11 = vadd.f32 %v856_v48, %v8784_v32  ;;  %v914_v20 = vadd.f32 %v913_v53, %v8794_v37 }
 0x1ad   : > { %v8828_v13 = vpop.f32.mrf.mxu0  ;;  %v8830_v14 = vpop.f32.mrf.mxu1  ;;  %v865_v32 = vadd.f32 %v864_v54, %v8796_v38  ;;  %v922_v37 = vadd.f32 %v921_v59, %v8806_v43  ;;  %v1112_v60 = vadd.f32 %v8820_v9, %v867_v34 }
 0x1ae   : > { %9455 = vst [vmem:[#allocation35_spill] sm:$0xff] %v8828_v13  ;;  %9456 = vst [vmem:[#allocation36_spill] sm:$0xff] %v8830_v14  ;;  %v908_v13 = vadd.f32 %v907_v47, %v8782_v31  ;;  %v861_v31 = vadd.f32 %v860_v52, %v8792_v36  ;;  %v1104_v50 = vadd.f32 %v1033_v1, %v857_v11 }
 0x1af   : > { %v1235_v16 = vpop.f32.mrf.mxu0  ;;  %v1288_v17 = vpop.f32.mrf.mxu1  ;;  %v920_v36 = vadd.f32 %v919_v57, %v8802_v41  ;;  %v1107_v52 = vadd.f32 %v1035_v3, %v859_v10  ;;  %v1110_v1 = vadd.f32 %v1090_v6, %v914_v20  ;;  %v1111_v59 = vadd.f32 %v8816_v7, %v865_v32 }
 0x1b0   : > { %v1105_v47 = vadd.f32 %v1084_v63, %v908_v13  ;;  %v1108_v63 = vadd.f32 %v1037_v5, %v861_v31  ;;  %v1113_v3 = vadd.f32 %v8818_v8, %v918_v33 }
 0x1b1   : > { %v1237_v18 = vpop.f32.mrf.mxu0  ;;  %v1290_v19 = vpop.f32.mrf.mxu1 }
 0x1b2   : > { %v1309_v35 = vadd.f32 %v1288_v17, %v1105_v47  ;;  %v1308_v39 = vadd.f32 %v1237_v18, %v1104_v50 }
 0x1b3   : > { %v1239_v22 = vpop.f32.mrf.mxu0  ;;  %v1292_v23 = vpop.f32.mrf.mxu1  ;;  %v9464_v18 = vld [vmem:[#allocation33_spill] sm:$0xff]  ;;  %v9467_v30 = vld [vmem:[#allocation34_spill] sm:$0xff] }
 0x1b4   : > { %v1311_v41 = vadd.f32 %v1239_v22, %v1107_v52  ;;  %v1313_v10 = vadd.f32 %v1292_v23, %v1109_v62  ;;  %v1117_v9 = vadd.f32 %v9467_v30, %v922_v37 }
 0x1b5   : > { %v1241_v24 = vpop.f32.mrf.mxu0  ;;  %v1294_v25 = vpop.f32.mrf.mxu1 }
 0x1b6   : > { %v1312_v4 = vadd.f32 %v1241_v24, %v1108_v63  ;;  %v1314_v5 = vadd.f32 %v1294_v25, %v1110_v1  ;;  %v9468_v24 = vld [vmem:[#allocation35_spill] sm:$0xff] }
 0x1b7   : > { %v8840_v28 = vpop.f32.mrf.mxu0  ;;  %v8842_v29 = vpop.f32.mrf.mxu1  ;;  %v1116_v25 = vadd.f32 %v9468_v24, %v871_v56 }
 0x1b8   : > { %9460 = vst [vmem:[#allocation40_spill] sm:$0xff] %v8840_v28  ;;  %9461 = vst [vmem:[#allocation41_spill] sm:$0xff] %v8842_v29 }
 0x1b9   : > { %v8844_v0 = vpop.f32.mrf.mxu0  ;;  %v8846_v14 = vpop.f32.mrf.mxu1 }
 0x1ba   : > { %9462 = vst [vmem:[#allocation42_spill] sm:$0xff] %v8844_v0  ;;  %v8861_v0 = vrot.slane %v1567_v26, %v8838_v27  ;;  %v1106_v26 = vadd.f32 %v1086_v2, %v910_v21  ;;  %v1307_v27 = vadd.f32 %v1235_v16, %v1103_v46  ;;  %v9463_v16 = vld [vmem:[#allocation32_spill] sm:$0xff] }
 0x1bb   : > { %v8856_v28 = vpop.f32.mrf.mxu0  ;;  %v8858_v29 = vpop.f32.mrf.mxu1  ;;  %v1114_v17 = vadd.f32 %v9463_v16, %v920_v36  ;;  %v9470_v36 = vld [vmem:[#allocation36_spill] sm:$0xff] }
 0x1bc   : > { %v1310_v54 = vadd.f32 %v1290_v19, %v1106_v26  ;;  %v1115_v19 = vadd.f32 %v9464_v18, %v869_v51  ;;  %v1118_v51 = vadd.f32 %v9470_v36, %v924_v58 }
 0x1bd   : > { %v8869_v48 = vpop.f32.mrf.mxu0  ;;  %v8871_v49 = vpop.f32.mrf.mxu1  ;;  %v1318_v34 = vadd.f32 %v8846_v14, %v1114_v17  ;;  %v1321_v14 = vadd.f32 %v8858_v29, %v1117_v9 }
 0x1be   : > { %v1319_v62 = vadd.f32 %v8856_v28, %v1115_v19  ;;  %v1320_v63 = vadd.f32 %v8869_v48, %v1116_v25 }
 0x1bf   : > { %v1425_v38 = vpop.f32.mrf.mxu0  ;;  %v1478_v53 = vpop.f32.mrf.mxu1  ;;  %v9465_v7 = vld [vmem:[#allocation40_spill] sm:$0xff]  ;;  %v9466_v8 = vld [vmem:[#allocation41_spill] sm:$0xff] }
 0x1c0   : > { %v1497_v40 = vadd.f32 %v1425_v38, %v1307_v27  ;;  %v1499_v55 = vadd.f32 %v1478_v53, %v1309_v35  ;;  %v1315_v20 = vadd.f32 %v9465_v7, %v1111_v59  ;;  %v1317_v23 = vadd.f32 %v9466_v8, %v1113_v3 }
 0x1c1   : > { %v1427_v2 = vpop.f32.mrf.mxu0  ;;  %v1480_v11 = vpop.f32.mrf.mxu1  ;;  %v9469_v31 = vld [vmem:[#allocation42_spill] sm:$0xff]  ;;  %v1322_v59 = vadd.f32 %v8871_v49, %v1118_v51 }
 0x1c2   : > { %v8878_v57 = vmax.f32 %v1497_v40, %v1499_v55  ;;  %v1498_v42 = vadd.f32 %v1427_v2, %v1308_v39  ;;  %v1500_v43 = vadd.f32 %v1480_v11, %v1310_v54  ;;  %v1316_v46 = vadd.f32 %v9469_v31, %v1112_v60 }
 0x1c3   : > { %v1429_v13 = vpop.f32.mrf.mxu0  ;;  %v1482_v44 = vpop.f32.mrf.mxu1 }
 0x1c4   : > { %v1501_v6 = vadd.f32 %v1429_v13, %v1311_v41  ;;  %v8887_v21 = vmax.f32 %v1498_v42, %v1500_v43  ;;  %v1503_v22 = vadd.f32 %v1482_v44, %v1313_v10  ;;  %v1530_v52 = vrot.slane %v8878_v57, 1 }
 0x1c5   : > { %v1431_v45 = vpop.f32.mrf.mxu0  ;;  %v1484_v61 = vpop.f32.mrf.mxu1  ;;  %v1552_v7 = vrot.slane %v8878_v57, 5 }
 0x1c6   : > { %v1502_v27 = vadd.f32 %v1431_v45, %v1312_v4  ;;  %v1504_v15 = vadd.f32 %v1484_v61, %v1314_v5  ;;  %v1515_v47 = vmax.f32 %v1501_v6, %v1503_v22  ;;  %v1533_v38 = vrot.slane %v8887_v21, 1 }
 0x1c7   : > { %v1435_v32 = vpop.f32.mrf.mxu0  ;;  %v1488_v33 = vpop.f32.mrf.mxu1  ;;  %v1553_v8 = vrot.slane %v8887_v21, 5 }
 0x1c8   : > { %v1516_v50 = vmax.f32 %v1502_v27, %v1504_v15  ;;  %v1505_v26 = vadd.f32 %v1435_v32, %v1315_v20  ;;  %v1507_v35 = vadd.f32 %v1488_v33, %v1317_v23  ;;  %v1531_v53 = vrot.slane %v1515_v47, 1 }
 0x1c9   : > { %v1437_v37 = vpop.f32.mrf.mxu0  ;;  %v1490_v39 = vpop.f32.mrf.mxu1 }
 0x1ca   : > { %v1534_v54 = vrot.slane %v1516_v50, 1  ;;  %v1517_v40 = vmax.f32 %v1505_v26, %v1507_v35  ;;  %v1506_v55 = vadd.f32 %v1437_v37, %v1316_v46  ;;  %v1508_v56 = vadd.f32 %v1490_v39, %v1318_v34  ;;  %v7412_v37 = vld [vmem:[#allocation9 + $0x424] ss:$16 sps:$4 sm:$0xff]  }
 0x1cb   : > { %v1532_v1 = vsel %vm926_vm6, %v1530_v52, %v1531_v53  ;;  %v1439_v2 = vpop.f32.mrf.mxu0  ;;  %v1492_v11 = vpop.f32.mrf.mxu1 }
 0x1cc   : > { %v1559_v41 = vmax.f32 %v8878_v57, %v1532_v1  ;;  %v1535_v42 = vsel %vm926_vm6, %v1533_v38, %v1534_v54  ;;  %v1536_v43 = vrot.slane %v1517_v40, 1  ;;  %v1518_v58 = vmax.f32 %v1506_v55, %v1508_v56  ;;  %v7374_v55 = vld [vmem:[#allocation9 + $0x4e0] ss:$16 sps:$4 sm:$0xff]  }
 0x1cd   : > { %v1560_v3 = vmax.f32 %v8887_v21, %v1535_v42  ;;  %v1509_v10 = vadd.f32 %v1439_v2, %v1319_v62  ;;  %v1511_v28 = vadd.f32 %v1492_v11, %v1321_v14  ;;  %v1441_v13 = vpop.f32.mrf.mxu0  ;;  %v1494_v29 = vpop.f32.mrf.mxu1  ;;  %v7382_v14 = vld [vmem:[#allocation9 + $0x4c4] ss:$16 sps:$4 sm:$0xff]   ;;  %v7380_v42 = vld [vmem:[#allocation9 + $0x4c0] ss:$16 sps:$4 sm:$0xff]  }
 0x1ce   : > { %v1579_v48 = vadd.f32 %v8851_v12, %v1559_v41  ;;  %v1537_v44 = vsel %vm926_vm6, %v1531_v53, %v1536_v43  ;;  %v1538_v60 = vrot.slane %v1518_v58, 1  ;;  %v1510_v4 = vadd.f32 %v1441_v13, %v1320_v63 }
 0x1cf   : > { %v1580_v5 = vadd.f32 %v8861_v0, %v1560_v3  ;;  %v1561_v6 = vmax.f32 %v1515_v47, %v1537_v44  ;;  %v1519_v16 = vmax.f32 %v1509_v10, %v1511_v28  ;;  %v1512_v17 = vadd.f32 %v1494_v29, %v1322_v59 }
 0x1d0   : > { %v1587_v18 = vmax.f32 %v1579_v48, 0.0  ;;  %v1539_v49 = vsel %vm926_vm6, %v1534_v54, %v1538_v60 }
 0x1d1   : > { %v1588_v19 = vmax.f32 %v1580_v5, 0.0  ;;  %v1581_v22 = vadd.f32 %v8851_v12, %v1561_v6  ;;  %v1562_v45 = vmax.f32 %v1516_v50, %v1539_v49  ;;  %v1540_v61 = vrot.slane %v1519_v16, 1 }
 0x1d2   : > { %v1520_v20 = vmax.f32 %v1510_v4, %v1512_v17 }
 0x1d3   : > { %v7019_v23 = vpack.c.bf16 %v1588_v19, %v1587_v18  ;;  %v1582_v27 = vadd.f32 %v8861_v0, %v1562_v45  ;;  %v1541_v15 = vsel %vm926_vm6, %v1536_v43, %v1540_v61  ;;  %v1589_v30 = vmax.f32 %v1581_v22, 0.0  ;;  %v7394_v22 = vld [vmem:[#allocation9 + $0x484] ss:$16 sps:$4 sm:$0xff]  }
 0x1d4   : > { %v1557_v9 = vsel %vm1556_vm11, %v1540_v61, %v1552_v7  ;;  %v1563_v24 = vmax.f32 %v1517_v40, %v1541_v15  ;;  %v1542_v25 = vrot.slane %v1520_v20, 1  ;;  %v7383_v61 = vld [vmem:[#allocation9 + $0x6e0] ss:$16 sps:$4 sm:$0xff]   ;;  %v7430_v43 = vld [vmem:[#allocation9 + $0x5c4] ss:$16 sps:$4 sm:$0xff]  }
 0x1d5   : > { %1619 = vst [vmem:[#allocation2] sm:$0xff] %v7019_v23  ;;  %v1645_v31 = vrot.slane %v7019_v23, 7  ;;  %v1651_v46 = vrot.slane %v7019_v23, 6  ;;  %1667 = vst [vmem:[#allocation2 + $0x10] sm:$0x33] %v7019_v23  ;;  %v1590_v47 = vmax.f32 %v1582_v27, 0.0  ;;  %v1565_v57 = vmax.f32 %v1519_v16, %v1557_v9 }
 0x1d6   : > { %v1626_v32 = vrot.slane %v7019_v23, 5  ;;  %v1543_v33 = vsel %vm926_vm6, %v1538_v60, %v1542_v25  ;;  %v1558_v21 = vsel %vm1556_vm11, %v1542_v25, %v1553_v8  ;;  %v1583_v26 = vadd.f32 %v8851_v12, %v1563_v24  ;;  %v7386_v16 = vld [vmem:[#allocation9 + $0x4a0] ss:$16 sps:$4 sm:$0xff]   ;;  %v7391_v8 = vld [vmem:[#allocation9 + $0x6c4] ss:$16 sps:$4 sm:$0xff]  }
 0x1d7   : > { %1647 = vst [vmem:[#allocation2 + $0x20] sm:$0x22] %v1645_v31  ;;  %v8918_v34 = vrot.slane %v1651_v46, 4  ;;  %1695 = vst [vmem:[#allocation2 + $0x68] sm:$0xcc] %v1651_v46  ;;  %v8920_v50 = vpack.c.bf16 %v1590_v47, %v1589_v30  ;;  %v1585_v35 = vadd.f32 %v8851_v12, %v1565_v57  ;;  %v1564_v51 = vmax.f32 %v1518_v58, %v1543_v33 }
 0x1d8   : > { %v1627_v36 = vrot.slane %v1626_v32, 4  ;;  %1688 = vst [vmem:[#allocation2 + $0x98] sm:$0x88] %v1626_v32  ;;  %v1566_v52 = vmax.f32 %v1520_v20, %v1558_v21  ;;  %v1671_v38 = vrot.slane %v1645_v31, 4  ;;  %v8933_v12 = vpack.c.bf16 %v1589_v30, %v1587_v18  ;;  %v7388_v58 = vld [vmem:[#allocation9 + $0x4a4] ss:$16 sps:$4 sm:$0xff]  }
 0x1d9   : > { %1696 = vst [vmem:[#allocation2 + $0x70] sm:$0x33] %v8918_v34  ;;  %v1672_v53 = vrot.slane %v8920_v50, 7  ;;  %v1584_v39 = vadd.f32 %v8861_v0, %v1564_v51  ;;  %v8935_v40 = vpack.c.bf16 %v1590_v47, %v1588_v19  ;;  %v1591_v56 = vmax.f32 %v1583_v26, 0.0  ;;  %v7392_v15 = vld [vmem:[#allocation9 + $0x480] ss:$16 sps:$4 sm:$0xff]  }
 0x1da   : > { %1689 = vst [vmem:[#allocation2 + $0x18] sm:$0x33] %v1627_v36  ;;  %v1586_v54 = vadd.f32 %v8861_v0, %v1566_v52  ;;  %v1593_v62 = vmax.f32 %v1585_v35, 0.0  ;;  %v1628_v63 = vrot.slane %v8920_v50, 5  ;;  %v1653_v59 = vrot.slane %v8920_v50, 6 }
 0x1db   : > { %v1592_v1 = vmax.f32 %v1584_v39, 0.0  ;;  %v8940_v11 = vsel %vm8927_vm14, %v1671_v38, %v1672_v53  ;;  %3769 = vmatprep.mubr.bf16.mxu0 %v8935_v40  ;;  %v1674_v13 = vrot.slane %v1672_v53, 4  ;;  %v8959_v48 = vpack.c.bf16 %v1591_v56, %v1589_v30  ;;  %v7400_v25 = vld [vmem:[#allocation9 + $0x464] ss:$16 sps:$4 sm:$0xff]   ;;  %v7398_v21 = vld [vmem:[#allocation9 + $0x460] ss:$16 sps:$4 sm:$0xff]  }
 0x1dc   : > { %v1594_v2 = vmax.f32 %v1586_v54, 0.0  ;;  %3770 = vmatmul.mubr.bf16.vlgmr.msra.gmra.mxu0 %v8933_v12  ;;  %v1630_v3 = vrot.slane %v1628_v63, 4  ;;  %v1629_v60 = vsel %vm8949_vm3, %v1627_v36, %v1628_v63  ;;  %v1655_v7 = vrot.slane %v1653_v59, 4  ;;  %v7397_v32 = vld [vmem:[#allocation9 + $0x6a4] ss:$16 sps:$4 sm:$0xff]  }
 0x1dd   : > { %v8944_v0 = vpack.c.bf16 %v1592_v1, %v1591_v56  ;;  %3844 = vmatpush1.bf16.msra.mxu0 %v7374_v55  ;;  %v8961_v44 = vpack.c.bf16 %v1592_v1, %v1590_v47  ;;  %v9475_v27 = vmov 0  ;;  %v7389_v47 = vld [vmem:[#allocation9 + $0x6c0] ss:$16 sps:$4 sm:$0xff]   ;;  %v9003_v57 = vsel %vm8982_vm4, %v8918_v34, %v1653_v59  ;;  %v7406_v35 = vld [vmem:[#allocation9 + $0x444] ss:$16 sps:$4 sm:$0xff]  }
 0x1de   : > { %v8946_v41 = vpack.c.bf16 %v1594_v2, %v1593_v62  ;;  %3845 = vmatprep.subr.bf16.mxu0 %v7382_v14  ;;  %v9476_v27 = vsel %vm8982_vm4, 4294967295, %v9475_v27  ;;  %v7395_v36 = vld [vmem:[#allocation9 + $0x6a0] ss:$16 sps:$4 sm:$0xff]   ;;  %v7403_v52 = vld [vmem:[#allocation9 + $0x684] ss:$16 sps:$4 sm:$0xff]  }
 0x1df   : > { %v1631_v10 = vrot.slane %v8944_v0, 5  ;;  %v1675_v29 = vrot.slane %v8944_v0, 7  ;;  %v1656_v6 = vrot.slane %v8944_v0, 6  ;;  %9477 = vst [vmem:[#allocation32_spill] sm:$0xff] %v9476_v27  ;;  %v7404_v53 = vld [vmem:[#allocation9 + $0x440] ss:$16 sps:$4 sm:$0xff]  }
 0x1e0   : > { %1622 = vst [vmem:[#allocation2 + $0x78] sm:$0x33] %v8946_v41  ;;  %v1634_v28 = vrot.slane %v8946_v41, 5  ;;  %1692 = vst [vmem:[#allocation2 + $0x68] sm:$0x33] %v8946_v41  ;;  %v1678_v49 = vrot.slane %v8946_v41, 7 }
 0x1e1   : > { %v1632_v4 = vsel %vm8949_vm3, %v1630_v3, %v1631_v10  ;;  %3846 = vmatpush1.bf16.msra.mxu0 %v7380_v42  ;;  %v1676_v17 = vsel %vm8927_vm14, %v1674_v13, %v1675_v29  ;;  %v1677_v18 = vrot.slane %v1675_v29, 4  ;;  %v1633_v30 = vrot.slane %v1631_v10, 4  ;;  %v7401_v39 = vld [vmem:[#allocation9 + $0x680] ss:$16 sps:$4 sm:$0xff]   ;;  %v7409_v54 = vld [vmem:[#allocation9 + $0x664] ss:$16 sps:$4 sm:$0xff]  }
 0x1e2   : > { %v1636_v5 = vrot.slane %v1634_v28, 4  ;;  %v8971_v19 = vcombine.low %v1629_v60, %v1632_v4  ;;  %3847 = vmatprep.subr.bf16.mxu0 %v7388_v58  ;;  %v8973_v45 = vcombine.high %v1629_v60, %v1632_v4  ;;  %v8978_v23 = vcombine.low %v8940_v11, %v1676_v17  ;;  %v7410_v55 = vld [vmem:[#allocation9 + $0x420] ss:$16 sps:$4 sm:$0xff]   ;;  %v7418_v56 = vld [vmem:[#allocation9 + $0x404] ss:$16 sps:$4 sm:$0xff]  }
 0x1e3   : > { %v1679_v20 = vsel %vm8927_vm14, %v1677_v18, %v1678_v49  ;;  %v8991_v9 = vsel %vm8982_vm4, %v1655_v7, %v1656_v6  ;;  %v1635_v50 = vsel %vm8949_vm3, %v1633_v30, %v1634_v28  ;;  %v9020_v38 = vcombine.high %v8940_v11, %v1676_v17  ;;  %v7407_v62 = vld [vmem:[#allocation9 + $0x660] ss:$16 sps:$4 sm:$0xff]   ;;  %v7415_v14 = vld [vmem:[#allocation9 + $0x644] ss:$16 sps:$4 sm:$0xff]  }
 0x1e4   : > { %1644 = vst [vmem:[#allocation2 + $0x20] sm:$0x11] %v1636_v5  ;;  %1685 = vst [vmem:[#allocation2 + $0x98] sm:$0x77] %v1679_v20  ;;  %3822 = vmatprep.mubr.bf16.mxu1 %v8973_v45  ;;  %v9008_v33 = vcombine.high %v9003_v57, %v8991_v9  ;;  %v7416_v63 = vld [vmem:[#allocation9 + $0x400] ss:$16 sps:$4 sm:$0xff]  }
 0x1e5   : > { %3848 = vmatpush1.bf16.msra.mxu0 %v7386_v16  ;;  %3823 = vmatmul.mubr.bf16.vlgmr.msra.gmra.mxu1 %v8971_v19  ;;  %v7424_v1 = vld [vmem:[#allocation9 + $0x5e4] ss:$16 sps:$4 sm:$0xff]   ;;  %v7413_v2 = vld [vmem:[#allocation9 + $0x640] ss:$16 sps:$4 sm:$0xff]  }
 0x1e6   : > { %3849 = vmatprep.subr.bf16.mxu0 %v7394_v22  ;;  %3897 = vmatpush1.bf16.msra.mxu1 %v7383_v61  ;;  %v7421_v11 = vld [vmem:[#allocation9 + $0x624] ss:$16 sps:$4 sm:$0xff]   ;;  %v7422_v42 = vld [vmem:[#allocation9 + $0x5e0] ss:$16 sps:$4 sm:$0xff]  }
 0x1e7   : > { %v1712_v24 = vld [vmem:[#allocation2 + $0x78] sm:$0x33]  ;;  %3898 = vmatprep.subr.bf16.mxu1 %v7391_v8  ;;  %v7419_v58 = vld [vmem:[#allocation9 + $0x620] ss:$16 sps:$4 sm:$0xff]  }
 0x1e8   : > { %v8995_v31 = vcombine.high %v8944_v0, %v1712_v24  ;;  %v8998_v46 = vcombine.low %v8944_v0, %v1712_v24  ;;  %v7427_v59 = vld [vmem:[#allocation9 + $0x604] ss:$16 sps:$4 sm:$0xff]   ;;  %v7428_v3 = vld [vmem:[#allocation9 + $0x5c0] ss:$16 sps:$4 sm:$0xff]   ;;  %v9031_v0 = vcombine.low %v9003_v57, %v8991_v9  ;;  %v7481_v57 = vld [vmem:[#allocation9 + $0xec] ss:$16 sps:$4 sm:$0xff]  }
 0x1e9   : > { %3850 = vmatpush1.bf16.msra.mxu0 %v7392_v15  ;;  %v7436_v10 = vld [vmem:[#allocation9 + $0x5a4] ss:$16 sps:$4 sm:$0xff]   ;;  %v7425_v28 = vld [vmem:[#allocation9 + $0x600] ss:$16 sps:$4 sm:$0xff]  }
 0x1ea   : > { %3779 = vmatprep.mubr.bf16.mxu0 %v8995_v31  ;;  %3851 = vmatprep.subr.bf16.mxu0 %v7400_v25  ;;  %v7433_v13 = vld [vmem:[#allocation9 + $0x7e4] ss:$16 sps:$4 sm:$0xff]   ;;  %v7434_v29 = vld [vmem:[#allocation9 + $0x5a0] ss:$16 sps:$4 sm:$0xff]  }
 0x1eb   : > { %3780 = vmatmul.mubr.bf16.gmra.mxu0 %v8998_v46  ;;  %v1713_v26 = vld [vmem:[#allocation2 + $0x20] sm:$0x33]  ;;  %3899 = vmatpush1.bf16.msra.mxu1 %v7389_v47  ;;  %v7442_v60 = vld [vmem:[#allocation9 + $0x584] ss:$16 sps:$4 sm:$0xff]  }
 0x1ec   : > { %v9013_v34 = vcombine.high %v1635_v50, %v1713_v26  ;;  %3875 = vmatprep.mubr.bf16.mxu0 %v9008_v33  ;;  %v9016_v51 = vcombine.low %v1635_v50, %v1713_v26  ;;  %3900 = vmatprep.subr.bf16.mxu1 %v7397_v32  ;;  %v7431_v4 = vld [vmem:[#allocation9 + $0x7e0] ss:$16 sps:$4 sm:$0xff]   ;;  %v7439_v5 = vld [vmem:[#allocation9 + $0x7c4] ss:$16 sps:$4 sm:$0xff]  }
 0x1ed   : > { %3852 = vmatpush1.bf16.msra.mxu0 %v7398_v21  ;;  %v7440_v16 = vld [vmem:[#allocation9 + $0x580] ss:$16 sps:$4 sm:$0xff]   ;;  %v7448_v17 = vld [vmem:[#allocation9 + $0x564] ss:$16 sps:$4 sm:$0xff]   ;;  %v1658_v21 = vrot.slane %v1656_v6, 4 }
 0x1ee   : > { %3832 = vmatprep.mubr.bf16.mxu1 %v9013_v34  ;;  %3853 = vmatprep.subr.bf16.mxu0 %v7406_v35  ;;  %v7437_v18 = vld [vmem:[#allocation9 + $0x7c0] ss:$16 sps:$4 sm:$0xff]   ;;  %v7445_v49 = vld [vmem:[#allocation9 + $0x7a4] ss:$16 sps:$4 sm:$0xff]   ;;  %v1659_v35 = vrot.slane %v8946_v41, 6 }
 0x1ef   : > { %3833 = vmatmul.mubr.bf16.gmra.mxu1 %v9016_v51  ;;  %v7446_v22 = vld [vmem:[#allocation9 + $0x560] ss:$16 sps:$4 sm:$0xff]   ;;  %v7454_v61 = vld [vmem:[#allocation9 + $0x544] ss:$16 sps:$4 sm:$0xff]  }
 0x1f0   : > { %3901 = vmatpush1.bf16.msra.mxu1 %v7395_v36  ;;  %3928 = vmatprep.mubr.bf16.mxu1 %v9020_v38  ;;  %v7443_v7 = vld [vmem:[#allocation9 + $0x7a0] ss:$16 sps:$4 sm:$0xff]   ;;  %v7451_v20 = vld [vmem:[#allocation9 + $0x784] ss:$16 sps:$4 sm:$0xff]  }
 0x1f1   : > { %3902 = vmatprep.subr.bf16.mxu1 %v7403_v52  ;;  %3854 = vmatpush1.bf16.msra.mxu0 %v7404_v53  ;;  %v7452_v8 = vld [vmem:[#allocation9 + $0x540] ss:$16 sps:$4 sm:$0xff]   ;;  %v7460_v15 = vld [vmem:[#allocation9 + $0x524] ss:$16 sps:$4 sm:$0xff]   ;;  %v1660_v53 = vsel %vm8982_vm4, %v1658_v21, %v1659_v35  ;;  %v7523_v21 = vld [vmem:[#allocation9 + $0xc] ss:$16 sps:$4 sm:$0xff]  }
 0x1f2   : > { %3855 = vmatprep.subr.bf16.mxu0 %v7412_v37  ;;  %v7449_v30 = vld [vmem:[#allocation9 + $0x780] ss:$16 sps:$4 sm:$0xff]   ;;  %v7457_v24 = vld [vmem:[#allocation9 + $0x764] ss:$16 sps:$4 sm:$0xff]   ;;  %v7521_v35 = vld [vmem:[#allocation9 + $0x8] ss:$16 sps:$4 sm:$0xff]  }
 0x1f3   : > { %v7458_v25 = vld [vmem:[#allocation9 + $0x520] ss:$16 sps:$4 sm:$0xff]   ;;  %v7466_v47 = vld [vmem:[#allocation9 + $0x504] ss:$16 sps:$4 sm:$0xff]  }
 0x1f4   : > { %3903 = vmatpush1.bf16.msra.mxu1 %v7401_v39  ;;  %v7455_v32 = vld [vmem:[#allocation9 + $0x760] ss:$16 sps:$4 sm:$0xff]   ;;  %v7463_v50 = vld [vmem:[#allocation9 + $0x744] ss:$16 sps:$4 sm:$0xff]  }
 0x1f5   : > { %3904 = vmatprep.subr.bf16.mxu1 %v7409_v54  ;;  %3856 = vmatpush1.bf16.msra.mxu0 %v7410_v55  ;;  %v7464_v26 = vld [vmem:[#allocation9 + $0x500] ss:$16 sps:$4 sm:$0xff]   ;;  %v7472_v36 = vld [vmem:[#allocation9 + $0x8e4] ss:$16 sps:$4 sm:$0xff]  }
 0x1f6   : > { %3857 = vmatprep.subr.bf16.mxu0 %v7418_v56  ;;  %v7461_v52 = vld [vmem:[#allocation9 + $0x740] ss:$16 sps:$4 sm:$0xff]   ;;  %v7469_v37 = vld [vmem:[#allocation9 + $0x724] ss:$16 sps:$4 sm:$0xff]  }
 0x1f7   : > { %v7470_v39 = vld [vmem:[#allocation9 + $0x8e0] ss:$16 sps:$4 sm:$0xff]   ;;  %v7478_v54 = vld [vmem:[#allocation9 + $0x8c4] ss:$16 sps:$4 sm:$0xff]  }
 0x1f8   : > { %3905 = vmatpush1.bf16.msra.mxu1 %v7407_v62  ;;  %v1714_v6 = vld [vmem:[#allocation2 + $0x10] sm:$0x33]  ;;  %v7475_v56 = vld [vmem:[#allocation9 + $0x704] ss:$16 sps:$4 sm:$0xff]  }
 0x1f9   : > { %3906 = vmatprep.subr.bf16.mxu1 %v7415_v14  ;;  %3858 = vmatpush1.bf16.msra.mxu0 %v7416_v63  ;;  %v7467_v41 = vld [vmem:[#allocation9 + $0x720] ss:$16 sps:$4 sm:$0xff]   ;;  %v9033_v55 = vcombine.high %v1660_v53, %v1714_v6  ;;  %v7484_v14 = vld [vmem:[#allocation9 + $0x8a4] ss:$16 sps:$4 sm:$0xff]  }
 0x1fa   : > { %3859 = vmatprep.subr.bf16.mxu0 %v7424_v1  ;;  %v7476_v62 = vld [vmem:[#allocation9 + $0x8c0] ss:$16 sps:$4 sm:$0xff]   ;;  %v9037_v1 = vcombine.low %v1660_v53, %v1714_v6  ;;  %v7538_v53 = vld [vmem:[#allocation9 + $0x984] ss:$16 sps:$4 sm:$0xff]  }
 0x1fb   : > { %v7473_v9 = vld [vmem:[#allocation9 + $0x700] ss:$16 sps:$4 sm:$0xff]  }
 0x1fc   : > { %3907 = vmatpush1.bf16.msra.mxu1 %v7413_v2  ;;  %v7482_v63 = vld [vmem:[#allocation9 + $0x8a0] ss:$16 sps:$4 sm:$0xff]   ;;  %v1710_v2 = vld [vmem:[#allocation2 + $0x98] sm:$0xff] }
 0x1fd   : > { %3908 = vmatprep.subr.bf16.mxu1 %v7421_v11  ;;  %3860 = vmatpush2.bf16.msra.mxu0 %v7422_v42  ;;  %v7490_v11 = vld [vmem:[#allocation9 + $0x884] ss:$16 sps:$4 sm:$0xff]   ;;  %v7479_v42 = vld [vmem:[#allocation9 + $0xe8] ss:$16 sps:$4 sm:$0xff]   ;;  %v7536_v6 = vld [vmem:[#allocation9 + $0x980] ss:$16 sps:$4 sm:$0xff]  }
 0x1fe   : > { %3861 = vmatprep.subr.bf16.mxu0 %v7430_v43  ;;  %v1715_v43 = vld [vmem:[#allocation2 + $0x18] sm:$0x33] }
 0x200   : > { %3909 = vmatpush1.bf16.msra.mxu1 %v7419_v58  ;;  %v7487_v58 = vld [vmem:[#allocation9 + $0xcc] ss:$16 sps:$4 sm:$0xff]  }
 0x201   : > { %3910 = vmatprep.subr.bf16.mxu1 %v7427_v59  ;;  %3862 = vmatpush2.bf16.msra.mxu0 %v7428_v3  ;;  %v9040_v59 = vcombine.high %v1710_v2, %v1715_v43  ;;  %v7488_v3 = vld [vmem:[#allocation9 + $0x880] ss:$16 sps:$4 sm:$0xff]  }
 0x202   : > { %3863 = vmatprep.subr.bf16.mxu0 %v7436_v10  ;;  %v7496_v10 = vld [vmem:[#allocation9 + $0x864] ss:$16 sps:$4 sm:$0xff]  }
 0x204   : > { %3911 = vmatpush1.bf16.msra.mxu1 %v7425_v28  ;;  %v7485_v28 = vld [vmem:[#allocation9 + $0xc8] ss:$16 sps:$4 sm:$0xff]  }
 0x205   : > { %3912 = vmatprep.subr.bf16.mxu1 %v7433_v13  ;;  %3864 = vmatpush2.bf16.msra.mxu0 %v7434_v29  ;;  %v7493_v13 = vld [vmem:[#allocation9 + $0xac] ss:$16 sps:$4 sm:$0xff]   ;;  %v7494_v29 = vld [vmem:[#allocation9 + $0x860] ss:$16 sps:$4 sm:$0xff]  }
 0x206   : > { %3865 = vmatprep.subr.bf16.mxu0 %v7442_v60  ;;  %v7502_v60 = vld [vmem:[#allocation9 + $0x844] ss:$16 sps:$4 sm:$0xff]  }
 0x208   : > { %3913 = vmatpush2.bf16.msra.mxu1 %v7431_v4  ;;  %v7491_v4 = vld [vmem:[#allocation9 + $0xa8] ss:$16 sps:$4 sm:$0xff]  }
 0x209   : > { %3914 = vmatprep.subr.bf16.mxu1 %v7439_v5  ;;  %3866 = vmatpush2.bf16.msra.mxu0 %v7440_v16  ;;  %v9045_v5 = vcombine.low %v1710_v2, %v1715_v43  ;;  %v7499_v16 = vld [vmem:[#allocation9 + $0x8c] ss:$16 sps:$4 sm:$0xff]   ;;  %v7556_v2 = vld [vmem:[#allocation9 + $0x924] ss:$16 sps:$4 sm:$0xff]   ;;  %v7554_v43 = vld [vmem:[#allocation9 + $0x920] ss:$16 sps:$4 sm:$0xff]  }
 0x20a   : > { %3867 = vmatprep.subr.bf16.mxu0 %v7448_v17  ;;  %v7500_v17 = vld [vmem:[#allocation9 + $0x840] ss:$16 sps:$4 sm:$0xff]  }
 0x20c   : > { %3915 = vmatpush2.bf16.msra.mxu1 %v7437_v18  ;;  %v7508_v18 = vld [vmem:[#allocation9 + $0x824] ss:$16 sps:$4 sm:$0xff]  }
 0x20d   : > { %3916 = vmatprep.subr.bf16.mxu1 %v7445_v49  ;;  %3868 = vmatpush2.bf16.msra.mxu0 %v7446_v22  ;;  %v7497_v49 = vld [vmem:[#allocation9 + $0x88] ss:$16 sps:$4 sm:$0xff]   ;;  %v7505_v22 = vld [vmem:[#allocation9 + $0x6c] ss:$16 sps:$4 sm:$0xff]  }
 0x20e   : > { %3869 = vmatprep.subr.bf16.mxu0 %v7454_v61  ;;  %v7506_v61 = vld [vmem:[#allocation9 + $0x820] ss:$16 sps:$4 sm:$0xff]  }
 0x210   : > { %3917 = vmatpush2.bf16.msra.mxu1 %v7443_v7  ;;  %v7514_v7 = vld [vmem:[#allocation9 + $0x804] ss:$16 sps:$4 sm:$0xff]  }
 0x211   : > { %3918 = vmatprep.subr.bf16.mxu1 %v7451_v20  ;;  %3870 = vmatpush2.bf16.msra.mxu0 %v7452_v8  ;;  %v7503_v20 = vld [vmem:[#allocation9 + $0x68] ss:$16 sps:$4 sm:$0xff]   ;;  %v7511_v8 = vld [vmem:[#allocation9 + $0x4c] ss:$16 sps:$4 sm:$0xff]  }
 0x212   : > { %3871 = vmatprep.subr.bf16.mxu0 %v7460_v15  ;;  %v7512_v15 = vld [vmem:[#allocation9 + $0x800] ss:$16 sps:$4 sm:$0xff]  }
 0x214   : > { %3919 = vmatpush2.bf16.msra.mxu1 %v7449_v30  ;;  %v7520_v30 = vld [vmem:[#allocation9 + $0x9e4] ss:$16 sps:$4 sm:$0xff]  }
 0x215   : > { %3920 = vmatprep.subr.bf16.mxu1 %v7457_v24  ;;  %3872 = vmatpush2.bf16.msra.mxu0 %v7458_v25  ;;  %v7509_v24 = vld [vmem:[#allocation9 + $0x48] ss:$16 sps:$4 sm:$0xff]   ;;  %v7517_v25 = vld [vmem:[#allocation9 + $0x2c] ss:$16 sps:$4 sm:$0xff]  }
 0x216   : > { %3873 = vmatprep.subr.bf16.mxu0 %v7466_v47  ;;  %v7526_v47 = vld [vmem:[#allocation9 + $0x9c4] ss:$16 sps:$4 sm:$0xff]  }
 0x218   : > { %3921 = vmatpush2.bf16.msra.mxu1 %v7455_v32  ;;  %v7515_v32 = vld [vmem:[#allocation9 + $0x28] ss:$16 sps:$4 sm:$0xff]  }
 0x219   : > { %3922 = vmatprep.subr.bf16.mxu1 %v7463_v50  ;;  %3874 = vmatpush2.bf16.msra.mxu0 %v7464_v26  ;;  %v7524_v50 = vld [vmem:[#allocation9 + $0x9c0] ss:$16 sps:$4 sm:$0xff]   ;;  %v7532_v26 = vld [vmem:[#allocation9 + $0x9a4] ss:$16 sps:$4 sm:$0xff]  }
 0x21a   : > { %3949 = vmatprep.subr.bf16.mxu0 %v7472_v36  ;;  %v7529_v36 = vld [vmem:[#allocation9 + $0x1ec] ss:$16 sps:$4 sm:$0xff]  }
 0x21c   : > { %3923 = vmatpush2.bf16.msra.mxu1 %v7461_v52  ;;  %3876 = vmatmul.mubr.bf16.vlgmr.msra.gmra.mxu0 %v9031_v0  ;;  %v7530_v52 = vld [vmem:[#allocation9 + $0x9a0] ss:$16 sps:$4 sm:$0xff]  }
 0x21d   : > { %3924 = vmatprep.subr.bf16.mxu1 %v7469_v37  ;;  %3885 = vmatprep.mubr.bf16.mxu0 %v9033_v55  ;;  %v7527_v37 = vld [vmem:[#allocation9 + $0x1e8] ss:$16 sps:$4 sm:$0xff]  }
 0x21e   : > { %3950 = vmatpush1.bf16.msra.mxu0 %v7470_v39  ;;  %v7535_v39 = vld [vmem:[#allocation9 + $0x1cc] ss:$16 sps:$4 sm:$0xff]  }
 0x21f   : > { %3951 = vmatprep.subr.bf16.mxu0 %v7478_v54  ;;  %v7544_v54 = vld [vmem:[#allocation9 + $0x964] ss:$16 sps:$4 sm:$0xff]  }
 0x220   : > { %3925 = vmatpush2.bf16.msra.mxu1 %v7467_v41  ;;  %v7533_v41 = vld [vmem:[#allocation9 + $0x1c8] ss:$16 sps:$4 sm:$0xff]  }
 0x221   : > { %3926 = vmatprep.subr.bf16.mxu1 %v7475_v56  ;;  %v7541_v56 = vld [vmem:[#allocation9 + $0x1ac] ss:$16 sps:$4 sm:$0xff]  }
 0x222   : > { %3952 = vmatpush1.bf16.msra.mxu0 %v7476_v62  ;;  %v7542_v62 = vld [vmem:[#allocation9 + $0x960] ss:$16 sps:$4 sm:$0xff]  }
 0x223   : > { %3953 = vmatprep.subr.bf16.mxu0 %v7484_v14  ;;  %v7550_v14 = vld [vmem:[#allocation9 + $0x944] ss:$16 sps:$4 sm:$0xff]  }
 0x224   : > { %3927 = vmatpush2.bf16.msra.mxu1 %v7473_v9  ;;  %3886 = vmatmul.mubr.bf16.gmra.mxu0 %v9037_v1  ;;  %v7539_v9 = vld [vmem:[#allocation9 + $0x1a8] ss:$16 sps:$4 sm:$0xff]  }
 0x225   : > { %4002 = vmatprep.subr.bf16.mxu1 %v7481_v57  ;;  %3981 = vmatprep.mubr.bf16.mxu0 %v8961_v44  ;;  %v7547_v57 = vld [vmem:[#allocation9 + $0x18c] ss:$16 sps:$4 sm:$0xff]  }
 0x226   : > { %3954 = vmatpush1.bf16.msra.mxu0 %v7482_v63  ;;  %v7548_v63 = vld [vmem:[#allocation9 + $0x940] ss:$16 sps:$4 sm:$0xff]  }
 0x227   : > { %3929 = vmatmul.mubr.bf16.vlgmr.msra.gmra.mxu1 %v8978_v23  ;;  %3955 = vmatprep.subr.bf16.mxu0 %v7490_v11  ;;  %v7545_v11 = vld [vmem:[#allocation9 + $0x188] ss:$16 sps:$4 sm:$0xff]  }
 0x228   : > { %3938 = vmatprep.mubr.bf16.mxu1 %v9040_v59  ;;  %4003 = vmatpush1.bf16.msra.mxu1 %v7479_v42  ;;  %v7553_v42 = vld [vmem:[#allocation9 + $0x16c] ss:$16 sps:$4 sm:$0xff]  }
 0x229   : > { %4004 = vmatprep.subr.bf16.mxu1 %v7487_v58  ;;  %v7562_v58 = vld [vmem:[#allocation9 + $0x904] ss:$16 sps:$4 sm:$0xff]  }
 0x22a   : > { %3956 = vmatpush1.bf16.msra.mxu0 %v7488_v3  ;;  %v7551_v3 = vld [vmem:[#allocation9 + $0x168] ss:$16 sps:$4 sm:$0xff]  }
 0x22b   : > { %3957 = vmatprep.subr.bf16.mxu0 %v7496_v10  ;;  %v7559_v10 = vld [vmem:[#allocation9 + $0x14c] ss:$16 sps:$4 sm:$0xff]  }
 0x22c   : > { %4005 = vmatpush1.bf16.msra.mxu1 %v7485_v28  ;;  %v7560_v28 = vld [vmem:[#allocation9 + $0x900] ss:$16 sps:$4 sm:$0xff]  }
 0x22d   : > { %4006 = vmatprep.subr.bf16.mxu1 %v7493_v13  ;;  %v7568_v13 = vld [vmem:[#allocation9 + $0x2ec] ss:$16 sps:$4 sm:$0xff]  }
 0x22e   : > { %3958 = vmatpush1.bf16.msra.mxu0 %v7494_v29  ;;  %v7557_v29 = vld [vmem:[#allocation9 + $0x148] ss:$16 sps:$4 sm:$0xff]  }
 0x22f   : > { %3939 = vmatmul.mubr.bf16.gmra.mxu1 %v9045_v5  ;;  %3959 = vmatprep.subr.bf16.mxu0 %v7502_v60  ;;  %v7565_v60 = vld [vmem:[#allocation9 + $0x12c] ss:$16 sps:$4 sm:$0xff]  }
 0x230   : > { %4007 = vmatpush1.bf16.msra.mxu1 %v7491_v4  ;;  %4034 = vmatprep.mubr.bf16.mxu1 %v8935_v40  ;;  %v7518_v40 = vld [vmem:[#allocation9 + $0x9e0] ss:$16 sps:$4 sm:$0xff]   ;;  %v7566_v4 = vld [vmem:[#allocation9 + $0x2e8] ss:$16 sps:$4 sm:$0xff]  }
 0x231   : > { %4008 = vmatprep.subr.bf16.mxu1 %v7499_v16  ;;  %v7576_v16 = vld [vmem:[#allocation9 + $0x2cc] ss:$16 sps:$4 sm:$0xff]  }
 0x232   : > { %3960 = vmatpush1.bf16.msra.mxu0 %v7500_v17  ;;  %v7563_v17 = vld [vmem:[#allocation9 + $0x128] ss:$16 sps:$4 sm:$0xff]  }
 0x233   : > { %3961 = vmatprep.subr.bf16.mxu0 %v7508_v18  ;;  %v9049_v18 = vld [vmem:[#allocation2 + $0x6c] ss:$8 sps:$4 sm:$0x3f]  }
 0x234   : > { %4009 = vmatpush1.bf16.msra.mxu1 %v7497_v49  ;;  %v7573_v49 = vld [vmem:[#allocation9 + $0x10c] ss:$16 sps:$4 sm:$0xff]  }
 0x235   : > { %4010 = vmatprep.subr.bf16.mxu1 %v7505_v22  ;;  %v7574_v22 = vld [vmem:[#allocation9 + $0x2c8] ss:$16 sps:$4 sm:$0xff]  }
 0x236   : > { %3962 = vmatpush1.bf16.msra.mxu0 %v7506_v61  ;;  %v7583_v61 = vld [vmem:[#allocation9 + $0x2ac] ss:$16 sps:$4 sm:$0xff]  }
 0x237   : > { %3963 = vmatprep.subr.bf16.mxu0 %v7514_v7  ;;  %v7571_v7 = vld [vmem:[#allocation9 + $0x108] ss:$16 sps:$4 sm:$0xff]  }
 0x238   : > { %4011 = vmatpush1.bf16.msra.mxu1 %v7503_v20  ;;  %v7579_v20 = vld [vmem:[#allocation9 + $0x4ec] ss:$16 sps:$4 sm:$0xff]  }
 0x239   : > { %4012 = vmatprep.subr.bf16.mxu1 %v7511_v8  ;;  %v7581_v8 = vld [vmem:[#allocation9 + $0x2a8] ss:$16 sps:$4 sm:$0xff]  }
 0x23a   : > { %3964 = vmatpush1.bf16.msra.mxu0 %v7512_v15  ;;  %v9053_v15 = vld [vmem:[#allocation2 + $0x68] ss:$8 sps:$4 sm:$0x3f]  }
 0x23b   : > { %3965 = vmatprep.subr.bf16.mxu0 %v7520_v30  ;;  %v7589_v30 = vld [vmem:[#allocation9 + $0x28c] ss:$16 sps:$4 sm:$0xff]  }
 0x23c   : > { %4013 = vmatpush1.bf16.msra.mxu1 %v7509_v24  ;;  %v7577_v24 = vld [vmem:[#allocation9 + $0x4e8] ss:$16 sps:$4 sm:$0xff]  }
 0x23d   : > { %4014 = vmatprep.subr.bf16.mxu1 %v7517_v25  ;;  %v7586_v25 = vld [vmem:[#allocation9 + $0x4cc] ss:$16 sps:$4 sm:$0xff]  }
 0x23e   : > { %3966 = vmatpush2.bf16.msra.mxu0 %v7518_v40  ;;  %v7587_v40 = vld [vmem:[#allocation9 + $0x288] ss:$16 sps:$4 sm:$0xff]  }
 0x23f   : > { %3967 = vmatprep.subr.bf16.mxu0 %v7526_v47  ;;  %v7595_v47 = vld [vmem:[#allocation9 + $0x26c] ss:$16 sps:$4 sm:$0xff]  }
 0x240   : > { %4015 = vmatpush1.bf16.msra.mxu1 %v7515_v32  ;;  %v7584_v32 = vld [vmem:[#allocation9 + $0x4c8] ss:$16 sps:$4 sm:$0xff]  }
 0x241   : > { %4016 = vmatprep.subr.bf16.mxu1 %v7523_v21  ;;  %v7592_v21 = vld [vmem:[#allocation9 + $0x4ac] ss:$16 sps:$4 sm:$0xff]  }
 0x242   : > { %3968 = vmatpush2.bf16.msra.mxu0 %v7524_v50  ;;  %v7593_v50 = vld [vmem:[#allocation9 + $0x268] ss:$16 sps:$4 sm:$0xff]  }
 0x243   : > { %3969 = vmatprep.subr.bf16.mxu0 %v7532_v26  ;;  %v7601_v26 = vld [vmem:[#allocation9 + $0x24c] ss:$16 sps:$4 sm:$0xff]  }
 0x244   : > { %4017 = vmatpush1.bf16.msra.mxu1 %v7521_v35  ;;  %v7590_v35 = vld [vmem:[#allocation9 + $0x4a8] ss:$16 sps:$4 sm:$0xff]  }
 0x245   : > { %4018 = vmatprep.subr.bf16.mxu1 %v7529_v36  ;;  %v7598_v36 = vld [vmem:[#allocation9 + $0x48c] ss:$16 sps:$4 sm:$0xff]  }
 0x246   : > { %3970 = vmatpush2.bf16.msra.mxu0 %v7530_v52  ;;  %v7604_v52 = vld [vmem:[#allocation9 + $0x46c] ss:$16 sps:$4 sm:$0xff]  }
 0x247   : > { %3971 = vmatprep.subr.bf16.mxu0 %v7538_v53  ;;  %v7605_v53 = vld [vmem:[#allocation9 + $0x228] ss:$16 sps:$4 sm:$0xff]  }
 0x248   : > { %4019 = vmatpush2.bf16.msra.mxu1 %v7527_v37  ;;  %v7613_v37 = vld [vmem:[#allocation9 + $0x20c] ss:$16 sps:$4 sm:$0xff]  }
 0x249   : > { %4020 = vmatprep.subr.bf16.mxu1 %v7535_v39  ;;  %v7602_v39 = vld [vmem:[#allocation9 + $0x468] ss:$16 sps:$4 sm:$0xff]  }
 0x24a   : > { %3972 = vmatpush2.bf16.msra.mxu0 %v7536_v6  ;;  %v7610_v6 = vld [vmem:[#allocation9 + $0x44c] ss:$16 sps:$4 sm:$0xff]  }
 0x24b   : > { %3973 = vmatprep.subr.bf16.mxu0 %v7544_v54  ;;  %v7611_v54 = vld [vmem:[#allocation9 + $0x208] ss:$16 sps:$4 sm:$0xff]  }
 0x24c   : > { %4021 = vmatpush2.bf16.msra.mxu1 %v7533_v41  ;;  %v7608_v41 = vld [vmem:[#allocation9 + $0x448] ss:$16 sps:$4 sm:$0xff]  }
 0x24d   : > { %4022 = vmatprep.subr.bf16.mxu1 %v7541_v56  ;;  %v7616_v56 = vld [vmem:[#allocation9 + $0x42c] ss:$16 sps:$4 sm:$0xff]  }
 0x24e   : > { %3974 = vmatpush2.bf16.msra.mxu0 %v7542_v62  ;;  %v7625_v62 = vld [vmem:[#allocation9 + $0x3cc] ss:$16 sps:$4 sm:$0xff]  }
 0x24f   : > { %3975 = vmatprep.subr.bf16.mxu0 %v7550_v14  ;;  %v7614_v14 = vld [vmem:[#allocation9 + $0x428] ss:$16 sps:$4 sm:$0xff]  }
 0x250   : > { %4023 = vmatpush2.bf16.msra.mxu1 %v7539_v9  ;;  %v7622_v9 = vld [vmem:[#allocation9 + $0x40c] ss:$16 sps:$4 sm:$0xff]  }
 0x251   : > { %4024 = vmatprep.subr.bf16.mxu1 %v7547_v57  ;;  %v7623_v57 = vld [vmem:[#allocation9 + $0x3c8] ss:$16 sps:$4 sm:$0xff]  }
 0x252   : > { %3976 = vmatpush2.bf16.msra.mxu0 %v7548_v63  ;;  %v7631_v63 = vld [vmem:[#allocation9 + $0x3ac] ss:$16 sps:$4 sm:$0xff]  }
 0x253   : > { %3977 = vmatprep.subr.bf16.mxu0 %v7556_v2  ;;  %v7620_v2 = vld [vmem:[#allocation9 + $0x408] ss:$16 sps:$4 sm:$0xff]  }
 0x254   : > { %4025 = vmatpush2.bf16.msra.mxu1 %v7545_v11  ;;  %v7628_v11 = vld [vmem:[#allocation9 + $0x5ec] ss:$16 sps:$4 sm:$0xff]  }
 0x255   : > { %4026 = vmatprep.subr.bf16.mxu1 %v7553_v42  ;;  %v7629_v42 = vld [vmem:[#allocation9 + $0x3a8] ss:$16 sps:$4 sm:$0xff]  }
 0x256   : > { %3978 = vmatpush2.bf16.msra.mxu0 %v7554_v43  ;;  %v7637_v43 = vld [vmem:[#allocation9 + $0x38c] ss:$16 sps:$4 sm:$0xff]  }
 0x257   : > { %3979 = vmatprep.subr.bf16.mxu0 %v7562_v58  ;;  %v7626_v58 = vld [vmem:[#allocation9 + $0x5e8] ss:$16 sps:$4 sm:$0xff]  }
 0x258   : > { %4027 = vmatpush2.bf16.msra.mxu1 %v7551_v3  ;;  %v7634_v3 = vld [vmem:[#allocation9 + $0x5cc] ss:$16 sps:$4 sm:$0xff]  }
 0x259   : > { %4028 = vmatprep.subr.bf16.mxu1 %v7559_v10  ;;  %v7635_v10 = vld [vmem:[#allocation9 + $0x388] ss:$16 sps:$4 sm:$0xff]  }
 0x25a   : > { %3980 = vmatpush2.bf16.msra.mxu0 %v7560_v28  ;;  %v7643_v28 = vld [vmem:[#allocation9 + $0x36c] ss:$16 sps:$4 sm:$0xff]  }
 0x25b   : > { %4055 = vmatprep.subr.bf16.mxu0 %v7568_v13  ;;  %v7632_v13 = vld [vmem:[#allocation9 + $0x5c8] ss:$16 sps:$4 sm:$0xff]  }
 0x25c   : > { %4029 = vmatpush2.bf16.msra.mxu1 %v7557_v29  ;;  %v7640_v29 = vld [vmem:[#allocation9 + $0x5ac] ss:$16 sps:$4 sm:$0xff]  }
 0x25d   : > { %4030 = vmatprep.subr.bf16.mxu1 %v7565_v60  ;;  %3982 = vmatmul.mubr.bf16.vlgmr.msra.gmra.mxu0 %v8959_v48  ;;  %v7641_v60 = vld [vmem:[#allocation9 + $0x368] ss:$16 sps:$4 sm:$0xff]  }
 0x25e   : > { %3991 = vmatprep.mubr.bf16.mxu0 %v9049_v18  ;;  %4056 = vmatpush1.bf16.msra.mxu0 %v7566_v4  ;;  %v7649_v4 = vld [vmem:[#allocation9 + $0x34c] ss:$16 sps:$4 sm:$0xff]  }
 0x25f   : > { %4057 = vmatprep.subr.bf16.mxu0 %v7576_v16  ;;  %v7638_v16 = vld [vmem:[#allocation9 + $0x5a8] ss:$16 sps:$4 sm:$0xff]  }
 0x260   : > { %4031 = vmatpush2.bf16.msra.mxu1 %v7563_v17  ;;  %v7646_v17 = vld [vmem:[#allocation9 + $0x58c] ss:$16 sps:$4 sm:$0xff]  }
 0x261   : > { %4032 = vmatprep.subr.bf16.mxu1 %v7573_v49  ;;  %v7647_v49 = vld [vmem:[#allocation9 + $0x348] ss:$16 sps:$4 sm:$0xff]  }
 0x262   : > { %4058 = vmatpush1.bf16.msra.mxu0 %v7574_v22  ;;  %v7655_v22 = vld [vmem:[#allocation9 + $0x32c] ss:$16 sps:$4 sm:$0xff]  }
 0x263   : > { %4059 = vmatprep.subr.bf16.mxu0 %v7583_v61  ;;  %v7644_v61 = vld [vmem:[#allocation9 + $0x588] ss:$16 sps:$4 sm:$0xff]  }
 0x264   : > { %4033 = vmatpush2.bf16.msra.mxu1 %v7571_v7  ;;  %v7652_v7 = vld [vmem:[#allocation9 + $0x56c] ss:$16 sps:$4 sm:$0xff]  }
 0x265   : > { %4108 = vmatprep.subr.bf16.mxu1 %v7579_v20  ;;  %3992 = vmatmul.mubr.bf16.gmra.mxu0 %v9053_v15  ;;  %v7653_v20 = vld [vmem:[#allocation9 + $0x328] ss:$16 sps:$4 sm:$0xff]  }
 0x266   : > { %4060 = vmatpush1.bf16.msra.mxu0 %v7581_v8  ;;  %4087 = vmatprep.mubr.bf16.mxu0 %v8973_v45  ;;  %v7599_v45 = vld [vmem:[#allocation9 + $0x248] ss:$16 sps:$4 sm:$0xff]   ;;  %v7661_v8 = vld [vmem:[#allocation9 + $0x30c] ss:$16 sps:$4 sm:$0xff]  }
 0x267   : > { %4035 = vmatmul.mubr.bf16.vlgmr.msra.gmra.mxu1 %v8933_v12  ;;  %4061 = vmatprep.subr.bf16.mxu0 %v7589_v30  ;;  %v7607_v12 = vld [vmem:[#allocation9 + $0x22c] ss:$16 sps:$4 sm:$0xff]   ;;  %v7650_v30 = vld [vmem:[#allocation9 + $0x568] ss:$16 sps:$4 sm:$0xff]  }
 0x268   : > { %4044 = vmatprep.mubr.bf16.mxu1 %v8995_v31  ;;  %4109 = vmatpush1.bf16.msra.mxu1 %v7577_v24  ;;  %v7596_v31 = vld [vmem:[#allocation9 + $0x488] ss:$16 sps:$4 sm:$0xff]   ;;  %v7658_v24 = vld [vmem:[#allocation9 + $0x54c] ss:$16 sps:$4 sm:$0xff]  }
 0x269   : > { %4110 = vmatprep.subr.bf16.mxu1 %v7586_v25  ;;  %v7659_v25 = vld [vmem:[#allocation9 + $0x308] ss:$16 sps:$4 sm:$0xff]  }
 0x26a   : > { %4062 = vmatpush1.bf16.msra.mxu0 %v7587_v40  ;;  %v7667_v40 = vld [vmem:[#allocation9 + $0x6ec] ss:$16 sps:$4 sm:$0xff]  }
 0x26b   : > { %4063 = vmatprep.subr.bf16.mxu0 %v7595_v47  ;;  %v7656_v47 = vld [vmem:[#allocation9 + $0x548] ss:$16 sps:$4 sm:$0xff]  }
 0x26c   : > { %4111 = vmatpush1.bf16.msra.mxu1 %v7584_v32  ;;  %v7664_v32 = vld [vmem:[#allocation9 + $0x52c] ss:$16 sps:$4 sm:$0xff]  }
 0x26d   : > { %4112 = vmatprep.subr.bf16.mxu1 %v7592_v21  ;;  %v7665_v21 = vld [vmem:[#allocation9 + $0x6e8] ss:$16 sps:$4 sm:$0xff]  }
 0x26e   : > { %4064 = vmatpush1.bf16.msra.mxu0 %v7593_v50  ;;  %v7673_v50 = vld [vmem:[#allocation9 + $0x6cc] ss:$16 sps:$4 sm:$0xff]  }
 0x26f   : > { %4045 = vmatmul.mubr.bf16.gmra.mxu1 %v8998_v46  ;;  %4065 = vmatprep.subr.bf16.mxu0 %v7601_v26  ;;  %v7619_v46 = vld [vmem:[#allocation9 + $0x3ec] ss:$16 sps:$4 sm:$0xff]   ;;  %v7662_v26 = vld [vmem:[#allocation9 + $0x528] ss:$16 sps:$4 sm:$0xff]  }
 0x270   : > { %4113 = vmatpush1.bf16.msra.mxu1 %v7590_v35  ;;  %4140 = vmatprep.mubr.bf16.mxu1 %v9008_v33  ;;  %v7617_v33 = vld [vmem:[#allocation9 + $0x3e8] ss:$16 sps:$4 sm:$0xff]   ;;  %v7670_v35 = vld [vmem:[#allocation9 + $0x50c] ss:$16 sps:$4 sm:$0xff]  }
 0x271   : > { %4114 = vmatprep.subr.bf16.mxu1 %v7598_v36  ;;  %v7671_v36 = vld [vmem:[#allocation9 + $0x6c8] ss:$16 sps:$4 sm:$0xff]  }
 0x272   : > { %4066 = vmatpush1.bf16.msra.mxu0 %v7599_v45  ;;  %v7679_v45 = vld [vmem:[#allocation9 + $0x6ac] ss:$16 sps:$4 sm:$0xff]  }
 0x273   : > { %4067 = vmatprep.subr.bf16.mxu0 %v7607_v12  ;;  %v7668_v12 = vld [vmem:[#allocation9 + $0x508] ss:$16 sps:$4 sm:$0xff]  }
 0x274   : > { %4115 = vmatpush1.bf16.msra.mxu1 %v7596_v31  ;;  %v7676_v31 = vld [vmem:[#allocation9 + $0x8ec] ss:$16 sps:$4 sm:$0xff]  }
 0x275   : > { %4116 = vmatprep.subr.bf16.mxu1 %v7604_v52  ;;  %v7677_v52 = vld [vmem:[#allocation9 + $0x6a8] ss:$16 sps:$4 sm:$0xff]  }
 0x276   : > { %4068 = vmatpush1.bf16.msra.mxu0 %v7605_v53  ;;  %v7685_v53 = vld [vmem:[#allocation9 + $0x68c] ss:$16 sps:$4 sm:$0xff]  }
 0x277   : > { %4069 = vmatprep.subr.bf16.mxu0 %v7613_v37  ;;  %v7674_v37 = vld [vmem:[#allocation9 + $0x8e8] ss:$16 sps:$4 sm:$0xff]  }
 0x278   : > { %4117 = vmatpush1.bf16.msra.mxu1 %v7602_v39 }
 0x279   : > { %4118 = vmatprep.subr.bf16.mxu1 %v7610_v6 }
 0x27a   : > { %4070 = vmatpush1.bf16.msra.mxu0 %v7611_v54  ;;  %v7691_v54 = vld [vmem:[#allocation9 + $0x66c] ss:$16 sps:$4 sm:$0xff]  }
 0x27b   : > { %4071 = vmatprep.subr.bf16.mxu0 %v7619_v46 }
 0x27c   : > { %4119 = vmatpush1.bf16.msra.mxu1 %v7608_v41  ;;  %v7680_v41 = vld [vmem:[#allocation9 + $0x8c8] ss:$16 sps:$4 sm:$0xff]  }
 0x27d   : > { %4120 = vmatprep.subr.bf16.mxu1 %v7616_v56  ;;  %v7688_v56 = vld [vmem:[#allocation9 + $0x8ac] ss:$16 sps:$4 sm:$0xff]  }
 0x27e   : > { %4072 = vmatpush2.bf16.msra.mxu0 %v7617_v33  ;;  %v7697_v33 = vld [vmem:[#allocation9 + $0x64c] ss:$16 sps:$4 sm:$0xff]  }
 0x27f   : > { %4073 = vmatprep.subr.bf16.mxu0 %v7625_v62  ;;  %v7694_v62 = vld [vmem:[#allocation9 + $0x88c] ss:$16 sps:$4 sm:$0xff]  }
 0x280   : > { %4121 = vmatpush1.bf16.msra.mxu1 %v7614_v14  ;;  %v7703_v14 = vld [vmem:[#allocation9 + $0x62c] ss:$16 sps:$4 sm:$0xff]  }
 0x281   : > { %4122 = vmatprep.subr.bf16.mxu1 %v7622_v9  ;;  %v7700_v9 = vld [vmem:[#allocation9 + $0x86c] ss:$16 sps:$4 sm:$0xff]  }
 0x282   : > { %4074 = vmatpush2.bf16.msra.mxu0 %v7623_v57  ;;  %v7701_v57 = vld [vmem:[#allocation9 + $0x628] ss:$16 sps:$4 sm:$0xff]  }
 0x283   : > { %4075 = vmatprep.subr.bf16.mxu0 %v7631_v63  ;;  %v7709_v63 = vld [vmem:[#allocation9 + $0x60c] ss:$16 sps:$4 sm:$0xff]  }
 0x284   : > { %4123 = vmatpush1.bf16.msra.mxu1 %v7620_v2  ;;  %v7698_v2 = vld [vmem:[#allocation9 + $0x868] ss:$16 sps:$4 sm:$0xff]  }
 0x285   : > { %4124 = vmatprep.subr.bf16.mxu1 %v7628_v11  ;;  %v7706_v11 = vld [vmem:[#allocation9 + $0x84c] ss:$16 sps:$4 sm:$0xff]  }
 0x286   : > { %4076 = vmatpush2.bf16.msra.mxu0 %v7629_v42  ;;  %v4348_v42 = vld [vmem:[#allocation3] sm:$0xff] }
 0x287   : > { %4077 = vmatprep.subr.bf16.mxu0 %v7637_v43  ;;  %v4351_v43 = vld [vmem:[#allocation3 + $0x18] sm:$0xf]  ;;  %4354 = vperm.xlu0 %7216, %v4348_v42  }
 0x288   : > { %4125 = vmatpush2.bf16.msra.mxu1 %v7626_v58  ;;  %v7715_v58 = vld [vmem:[#allocation9 + $0x7ec] ss:$16 sps:$4 sm:$0xff]   ;;  %4369 = vperm.xlu1 %7217, %v4351_v43  }
 0x289   : > { %4126 = vmatprep.subr.bf16.mxu1 %v7634_v3  ;;  %v7704_v3 = vld [vmem:[#allocation9 + $0x848] ss:$16 sps:$4 sm:$0xff]  }
 0x28a   : > { %4078 = vmatpush2.bf16.msra.mxu0 %v7635_v10  ;;  %v4350_v10 = vld [vmem:[#allocation3 + $0x10] sm:$0xff]  ;;  %v7802_v42 = vld [vmem:[#allocation12 + $0x114] ss:$8 sps:$4 sm:$0xff]  }
 0x28b   : > { %4079 = vmatprep.subr.bf16.mxu0 %v7643_v28  ;;  %v7712_v28 = vld [vmem:[#allocation9 + $0x82c] ss:$16 sps:$4 sm:$0xff]  }
 0x28c   : > { %4127 = vmatpush2.bf16.msra.mxu1 %v7632_v13  ;;  %v7713_v13 = vld [vmem:[#allocation9 + $0x7e8] ss:$16 sps:$4 sm:$0xff]   ;;  %4364 = vperm.xlu1 %7217, %v4350_v10  }
 0x28d   : > { %4128 = vmatprep.subr.bf16.mxu1 %v7640_v29  ;;  %v7721_v29 = vld [vmem:[#allocation9 + $0x7cc] ss:$16 sps:$4 sm:$0xff]  }
 0x28e   : > { %4080 = vmatpush2.bf16.msra.mxu0 %v7641_v60  ;;  %v7710_v60 = vld [vmem:[#allocation9 + $0x828] ss:$16 sps:$4 sm:$0xff]  }
 0x28f   : > { %4081 = vmatprep.subr.bf16.mxu0 %v7649_v4  ;;  %v7718_v4 = vld [vmem:[#allocation9 + $0x80c] ss:$16 sps:$4 sm:$0xff]  }
 0x290   : > { %4129 = vmatpush2.bf16.msra.mxu1 %v7638_v16  ;;  %v7719_v16 = vld [vmem:[#allocation9 + $0x7c8] ss:$16 sps:$4 sm:$0xff]  }
 0x291   : > { %4130 = vmatprep.subr.bf16.mxu1 %v7646_v17  ;;  %v7727_v17 = vld [vmem:[#allocation9 + $0x7ac] ss:$16 sps:$4 sm:$0xff]  }
 0x292   : > { %4082 = vmatpush2.bf16.msra.mxu0 %v7647_v49  ;;  %v7716_v49 = vld [vmem:[#allocation9 + $0x808] ss:$16 sps:$4 sm:$0xff]  }
 0x293   : > { %4083 = vmatprep.subr.bf16.mxu0 %v7655_v22  ;;  %v7724_v22 = vld [vmem:[#allocation9 + $0x9ec] ss:$16 sps:$4 sm:$0xff]  }
 0x294   : > { %4131 = vmatpush2.bf16.msra.mxu1 %v7644_v61  ;;  %v7725_v61 = vld [vmem:[#allocation9 + $0x7a8] ss:$16 sps:$4 sm:$0xff]  }
 0x295   : > { %4132 = vmatprep.subr.bf16.mxu1 %v7652_v7  ;;  %v7733_v7 = vld [vmem:[#allocation9 + $0x78c] ss:$16 sps:$4 sm:$0xff]  }
 0x296   : > { %4084 = vmatpush2.bf16.msra.mxu0 %v7653_v20  ;;  %v7722_v20 = vld [vmem:[#allocation9 + $0x9e8] ss:$16 sps:$4 sm:$0xff]  }
 0x297   : > { %4085 = vmatprep.subr.bf16.mxu0 %v7661_v8  ;;  %v7730_v8 = vld [vmem:[#allocation9 + $0x9cc] ss:$16 sps:$4 sm:$0xff]  }
 0x298   : > { %4133 = vmatpush2.bf16.msra.mxu1 %v7650_v30  ;;  %v7731_v30 = vld [vmem:[#allocation9 + $0x788] ss:$16 sps:$4 sm:$0xff]  }
 0x299   : > { %4134 = vmatprep.subr.bf16.mxu1 %v7658_v24  ;;  %v7739_v24 = vld [vmem:[#allocation9 + $0x76c] ss:$16 sps:$4 sm:$0xff]  }
 0x29a   : > { %4086 = vmatpush2.bf16.msra.mxu0 %v7659_v25  ;;  %v7728_v25 = vld [vmem:[#allocation9 + $0x9c8] ss:$16 sps:$4 sm:$0xff]  }
 0x29b   : > { %4161 = vmatprep.subr.bf16.mxu0 %v7667_v40  ;;  %v7736_v40 = vld [vmem:[#allocation9 + $0x9ac] ss:$16 sps:$4 sm:$0xff]  }
 0x29c   : > { %4135 = vmatpush2.bf16.msra.mxu1 %v7656_v47  ;;  %v3771_v39 = vpop.f32.mrf.mxu0  ;;  %v7737_v47 = vld [vmem:[#allocation9 + $0x768] ss:$16 sps:$4 sm:$0xff]  }
 0x29d   : > { %4136 = vmatprep.subr.bf16.mxu1 %v7664_v32  ;;  %4088 = vmatmul.mubr.bf16.vlgmr.msra.gmra.mxu0 %v8971_v19  ;;  %v7682_v19 = vld [vmem:[#allocation9 + $0x8cc] ss:$16 sps:$4 sm:$0xff]  }
 0x29e   : > { %4097 = vmatprep.mubr.bf16.mxu0 %v9013_v34  ;;  %4162 = vmatpush1.bf16.msra.mxu0 %v7665_v21  ;;  %v7683_v34 = vld [vmem:[#allocation9 + $0x688] ss:$16 sps:$4 sm:$0xff]   ;;  %v7745_v32 = vld [vmem:[#allocation9 + $0x74c] ss:$16 sps:$4 sm:$0xff]  }
 0x29f   : > { %4163 = vmatprep.subr.bf16.mxu0 %v7673_v50  ;;  %v7734_v21 = vld [vmem:[#allocation9 + $0x9a8] ss:$16 sps:$4 sm:$0xff]   ;;  %v7742_v50 = vld [vmem:[#allocation9 + $0x98c] ss:$16 sps:$4 sm:$0xff]  }
 0x2a0   : > { %4137 = vmatpush2.bf16.msra.mxu1 %v7662_v26  ;;  %v7743_v26 = vld [vmem:[#allocation9 + $0x748] ss:$16 sps:$4 sm:$0xff]  }
 0x2a1   : > { %4138 = vmatprep.subr.bf16.mxu1 %v7670_v35  ;;  %v7751_v35 = vld [vmem:[#allocation9 + $0x72c] ss:$16 sps:$4 sm:$0xff]  }
 0x2a2   : > { %4164 = vmatpush1.bf16.msra.mxu0 %v7671_v36  ;;  %v7740_v36 = vld [vmem:[#allocation9 + $0x988] ss:$16 sps:$4 sm:$0xff]  }
 0x2a3   : > { %4165 = vmatprep.subr.bf16.mxu0 %v7679_v45  ;;  %v7748_v45 = vld [vmem:[#allocation9 + $0x96c] ss:$16 sps:$4 sm:$0xff]  }
 0x2a4   : > { %4139 = vmatpush2.bf16.msra.mxu1 %v7668_v12  ;;  %v7749_v12 = vld [vmem:[#allocation9 + $0x728] ss:$16 sps:$4 sm:$0xff]  }
 0x2a5   : > { %4214 = vmatprep.subr.bf16.mxu1 %v7676_v31  ;;  %4098 = vmatmul.mubr.bf16.gmra.mxu0 %v9016_v51  ;;  %v3824_v6 = vpop.f32.mrf.mxu1  ;;  %v7689_v51 = vld [vmem:[#allocation9 + $0x668] ss:$16 sps:$4 sm:$0xff]   ;;  %v7757_v31 = vld [vmem:[#allocation9 + $0x70c] ss:$16 sps:$4 sm:$0xff]  }
 0x2a6   : > { %4166 = vmatpush1.bf16.msra.mxu0 %v7677_v52  ;;  %4193 = vmatprep.mubr.bf16.mxu0 %v9020_v38  ;;  %v9066_v46 = vadd.f32 %v3824_v6, %v3771_v39  ;;  %v7686_v38 = vld [vmem:[#allocation9 + $0x8a8] ss:$16 sps:$4 sm:$0xff]   ;;  %v7763_v6 = vld [vmem:[#allocation9 + $0x90c] ss:$16 sps:$4 sm:$0xff]  }
 0x2a7   : > { %4141 = vmatmul.mubr.bf16.vlgmr.msra.gmra.mxu1 %v9031_v0  ;;  %4167 = vmatprep.subr.bf16.mxu0 %v7685_v53  ;;  %v7695_v0 = vld [vmem:[#allocation9 + $0x648] ss:$16 sps:$4 sm:$0xff]   ;;  %v7754_v53 = vld [vmem:[#allocation9 + $0x94c] ss:$16 sps:$4 sm:$0xff]  }
 0x2a8   : > { %4150 = vmatprep.mubr.bf16.mxu1 %v9033_v55  ;;  %4215 = vmatpush1.bf16.msra.mxu1 %v7674_v37  ;;  %v7692_v55 = vld [vmem:[#allocation9 + $0x888] ss:$16 sps:$4 sm:$0xff]  }
 0x2a9   : > { %4216 = vmatprep.subr.bf16.mxu1 %v7682_v19  ;;  %v7746_v52 = vld [vmem:[#allocation9 + $0x968] ss:$16 sps:$4 sm:$0xff]  }
 0x2aa   : > { %4168 = vmatpush1.bf16.msra.mxu0 %v7683_v34  ;;  %v7755_v37 = vld [vmem:[#allocation9 + $0x708] ss:$16 sps:$4 sm:$0xff]   ;;  %v7760_v34 = vld [vmem:[#allocation9 + $0x92c] ss:$16 sps:$4 sm:$0xff]  }
 0x2ab   : > { %4169 = vmatprep.subr.bf16.mxu0 %v7691_v54  ;;  %v7752_v19 = vld [vmem:[#allocation9 + $0x948] ss:$16 sps:$4 sm:$0xff]  }
 0x2ac   : > { %4217 = vmatpush1.bf16.msra.mxu1 %v7680_v41  ;;  %v7758_v39 = vld [vmem:[#allocation9 + $0x928] ss:$16 sps:$4 sm:$0xff]  }
 0x2ad   : > { %4218 = vmatprep.subr.bf16.mxu1 %v7688_v56  ;;  %v7761_v54 = vld [vmem:[#allocation9 + $0x908] ss:$16 sps:$4 sm:$0xff]  }
 0x2ae   : > { %4170 = vmatpush1.bf16.msra.mxu0 %v7689_v51  ;;  %v7764_v41 = vld [vmem:[#allocation12 + $0x170] ss:$8 sps:$4 sm:$0xff]   ;;  %v7766_v56 = vld [vmem:[#allocation12 + $0x174] ss:$8 sps:$4 sm:$0xff]   ;;  %v7797_v10 = vld [vmem:[#allocation12 + $0x20] ss:$8 sps:$4 sm:$0xff]  }
 0x2af   : > { %4151 = vmatmul.mubr.bf16.gmra.mxu1 %v9037_v1  ;;  %4171 = vmatprep.subr.bf16.mxu0 %v7697_v33  ;;  %v7707_v1 = vld [vmem:[#allocation9 + $0x608] ss:$16 sps:$4 sm:$0xff]  }
 0x2b0   : > { %4219 = vmatpush1.bf16.msra.mxu1 %v7686_v38  ;;  %4246 = vmatprep.mubr.bf16.mxu1 %v8961_v44  ;;  %v4349_v44 = vld [vmem:[#allocation3 + $0x8] sm:$0xff]  ;;  %v7767_v51 = vld [vmem:[#allocation12 + $0x70] ss:$8 sps:$4 sm:$0xff]   ;;  %v7769_v33 = vld [vmem:[#allocation12 + $0x74] ss:$8 sps:$4 sm:$0xff]  }
 0x2b1   : > { %4220 = vmatprep.subr.bf16.mxu1 %v7694_v62  ;;  %4359 = vperm.xlu0 %7216, %v4349_v44   ;;  %v7775_v38 = vld [vmem:[#allocation12 + $0x64] ss:$8 sps:$4 sm:$0xff]   ;;  %v7773_v62 = vld [vmem:[#allocation12 + $0x60] ss:$8 sps:$4 sm:$0xff]   ;;  %v7800_v43 = vld [vmem:[#allocation12 + $0x110] ss:$8 sps:$4 sm:$0xff]  }
 0x2b2   : > { %4172 = vmatpush1.bf16.msra.mxu0 %v7695_v0  ;;  %v7784_v0 = vld [vmem:[#allocation12 + $0x144] ss:$8 sps:$4 sm:$0xff]  }
 0x2b3   : > { %4173 = vmatprep.subr.bf16.mxu0 %v7703_v14  ;;  %v7787_v14 = vld [vmem:[#allocation12 + $0x44] ss:$8 sps:$4 sm:$0xff]  }
 0x2b4   : > { %4221 = vmatpush1.bf16.msra.mxu1 %v7692_v55  ;;  %v7782_v55 = vld [vmem:[#allocation12 + $0x140] ss:$8 sps:$4 sm:$0xff]   ;;  %v7808_v44 = vld [vmem:[#allocation12 + $0x104] ss:$8 sps:$4 sm:$0xff]  }
 0x2b5   : > { %4222 = vmatprep.subr.bf16.mxu1 %v7700_v9  ;;  %v7785_v9 = vld [vmem:[#allocation12 + $0x40] ss:$8 sps:$4 sm:$0xff]  }
 0x2b6   : > { %4174 = vmatpush1.bf16.msra.mxu0 %v7701_v57  ;;  %v7790_v57 = vld [vmem:[#allocation12 + $0x134] ss:$8 sps:$4 sm:$0xff]  }
 0x2b7   : > { %4175 = vmatprep.subr.bf16.mxu0 %v7709_v63  ;;  %v7788_v63 = vld [vmem:[#allocation12 + $0x130] ss:$8 sps:$4 sm:$0xff]  }
 0x2b8   : > { %4223 = vmatpush1.bf16.msra.mxu1 %v7698_v2  ;;  %v7796_v2 = vld [vmem:[#allocation12 + $0x124] ss:$8 sps:$4 sm:$0xff]  }
 0x2b9   : > { %4224 = vmatprep.subr.bf16.mxu1 %v7706_v11  ;;  %v7794_v11 = vld [vmem:[#allocation12 + $0x120] ss:$8 sps:$4 sm:$0xff]  }
 0x2ba   : > { %4176 = vmatpush1.bf16.msra.mxu0 %v7707_v1  ;;  %v7791_v1 = vld [vmem:[#allocation12 + $0x30] ss:$8 sps:$4 sm:$0xff]  }
 0x2bb   : > { %4177 = vmatprep.subr.bf16.mxu0 %v7715_v58  ;;  %v7793_v58 = vld [vmem:[#allocation12 + $0x34] ss:$8 sps:$4 sm:$0xff]  }
 0x2bc   : > { %4225 = vmatpush1.bf16.msra.mxu1 %v7704_v3  ;;  %v7806_v3 = vld [vmem:[#allocation12 + $0x100] ss:$8 sps:$4 sm:$0xff]  }
 0x2bd   : > { %4226 = vmatprep.subr.bf16.mxu1 %v7712_v28  ;;  %v7799_v28 = vld [vmem:[#allocation12 + $0x24] ss:$8 sps:$4 sm:$0xff]  }
 0x2be   : > { %4178 = vmatpush2.bf16.msra.mxu0 %v7713_v13  ;;  %v7814_v13 = vld [vmem:[#allocation12 + $0x1f4] ss:$8 sps:$4 sm:$0xff]  }
 0x2bf   : > { %4179 = vmatprep.subr.bf16.mxu0 %v7721_v29  ;;  %v7812_v29 = vld [vmem:[#allocation12 + $0x1f0] ss:$8 sps:$4 sm:$0xff]  }
 0x2c0   : > { %4227 = vmatpush1.bf16.msra.mxu1 %v7710_v60  ;;  %v7805_v60 = vld [vmem:[#allocation12 + $0x14] ss:$8 sps:$4 sm:$0xff]  }
 0x2c1   : > { %4228 = vmatprep.subr.bf16.mxu1 %v7718_v4  ;;  %v7803_v4 = vld [vmem:[#allocation12 + $0x10] ss:$8 sps:$4 sm:$0xff]  }
 0x2c2   : > { %4180 = vmatpush2.bf16.msra.mxu0 %v7719_v16  ;;  %v7820_v16 = vld [vmem:[#allocation12 + $0x1e4] ss:$8 sps:$4 sm:$0xff]  }
 0x2c3   : > { %4181 = vmatprep.subr.bf16.mxu0 %v7727_v17  ;;  %v7818_v17 = vld [vmem:[#allocation12 + $0x1e0] ss:$8 sps:$4 sm:$0xff]  }
 0x2c4   : > { %4229 = vmatpush1.bf16.msra.mxu1 %v7716_v49  ;;  %v9077_v49 = vpop.f32.mrf.mxu0 }
 0x2c5   : > { %4230 = vmatprep.subr.bf16.mxu1 %v7724_v22  ;;  %v7811_v22 = vld [vmem:[#allocation12 + $0x4] ss:$8 sps:$4 sm:$0xff]  }
 0x2c6   : > { %4182 = vmatpush2.bf16.msra.mxu0 %v7725_v61  ;;  %v7809_v61 = vld [vmem:[#allocation12] ss:$8 sps:$4 sm:$0xff]  }
 0x2c7   : > { %4183 = vmatprep.subr.bf16.mxu0 %v7733_v7  ;;  %v7826_v7 = vld [vmem:[#allocation12 + $0x1d4] ss:$8 sps:$4 sm:$0xff]  }
 0x2c8   : > { %4231 = vmatpush2.bf16.msra.mxu1 %v7722_v20  ;;  %v7824_v20 = vld [vmem:[#allocation12 + $0x1d0] ss:$8 sps:$4 sm:$0xff]  }
 0x2c9   : > { %4232 = vmatprep.subr.bf16.mxu1 %v7730_v8  ;;  %v9079_v8 = vpop.f32.mrf.mxu0 }
 0x2ca   : > { %4184 = vmatpush2.bf16.msra.mxu0 %v7731_v30  ;;  %v7817_v30 = vld [vmem:[#allocation12 + $0xf4] ss:$8 sps:$4 sm:$0xff]  }
 0x2cb   : > { %4185 = vmatprep.subr.bf16.mxu0 %v7739_v24  ;;  %v7815_v24 = vld [vmem:[#allocation12 + $0xf0] ss:$8 sps:$4 sm:$0xff]  }
 0x2cc   : > { %4233 = vmatpush2.bf16.msra.mxu1 %v7728_v25  ;;  %v7832_v25 = vld [vmem:[#allocation12 + $0x1c4] ss:$8 sps:$4 sm:$0xff]  }
 0x2cd   : > { %4234 = vmatprep.subr.bf16.mxu1 %v7736_v40  ;;  %v7830_v40 = vld [vmem:[#allocation12 + $0x1c0] ss:$8 sps:$4 sm:$0xff]  }
 0x2ce   : > { %4186 = vmatpush2.bf16.msra.mxu0 %v7737_v47  ;;  %v9081_v47 = vpop.f32.mrf.mxu0 }
 0x2cf   : > { %4187 = vmatprep.subr.bf16.mxu0 %v7745_v32  ;;  %v9083_v32 = vpop.f32.mrf.mxu1 }
 0x2d0   : > { %4235 = vmatpush2.bf16.msra.mxu1 %v7734_v21  ;;  %v7823_v21 = vld [vmem:[#allocation12 + $0xe4] ss:$8 sps:$4 sm:$0xff]   ;;  %v3827_v27 = vadd.f32 %v9083_v32, %v9077_v49 }
 0x2d1   : > { %4236 = vmatprep.subr.bf16.mxu1 %v7742_v50  ;;  %v7821_v50 = vld [vmem:[#allocation12 + $0xe0] ss:$8 sps:$4 sm:$0xff]  }
 0x2d2   : > { %4188 = vmatpush2.bf16.msra.mxu0 %v7743_v26  ;;  %v9085_v26 = vpop.f32.mrf.mxu0 }
 0x2d3   : > { %4189 = vmatprep.subr.bf16.mxu0 %v7751_v35  ;;  %v7838_v35 = vld [vmem:[#allocation12 + $0x1b4] ss:$8 sps:$4 sm:$0xff]  }
 0x2d4   : > { %4237 = vmatpush2.bf16.msra.mxu1 %v7740_v36  ;;  %v7836_v36 = vld [vmem:[#allocation12 + $0x1b0] ss:$8 sps:$4 sm:$0xff]  }
 0x2d5   : > { %4238 = vmatprep.subr.bf16.mxu1 %v7748_v45  ;;  %v9087_v45 = vpop.f32.mrf.mxu1 }
 0x2d6   : > { %4190 = vmatpush2.bf16.msra.mxu0 %v7749_v12  ;;  %v7829_v12 = vld [vmem:[#allocation12 + $0xd4] ss:$8 sps:$4 sm:$0xff]  }
 0x2d7   : > { %4191 = vmatprep.subr.bf16.mxu0 %v7757_v31  ;;  %v7827_v31 = vld [vmem:[#allocation12 + $0xd0] ss:$8 sps:$4 sm:$0xff]  }
 0x2d8   : > { %4239 = vmatpush2.bf16.msra.mxu1 %v7746_v52  ;;  %v9089_v52 = vpop.f32.mrf.mxu0 }
 0x2d9   : > { %4240 = vmatprep.subr.bf16.mxu1 %v7754_v53  ;;  %v7844_v53 = vld [vmem:[#allocation12 + $0x1a4] ss:$8 sps:$4 sm:$0xff]  }
 0x2da   : > { %4192 = vmatpush2.bf16.msra.mxu0 %v7755_v37  ;;  %v7842_v37 = vld [vmem:[#allocation12 + $0x1a0] ss:$8 sps:$4 sm:$0xff]  }
 0x2db   : > { %5080 = vmatprep.subr.bf16.mxu0 %v7769_v33 }
 0x2dc   : > { %4241 = vmatpush2.bf16.msra.mxu1 %v7752_v19  ;;  %v9091_v19 = vpop.f32.mrf.mxu1 }
 0x2dd   : > { %4242 = vmatprep.subr.bf16.mxu1 %v7760_v34  ;;  %4194 = vmatmul.mubr.bf16.vlgmr.msra.gmra.mxu0 %v8978_v23  ;;  %v7772_v23 = vld [vmem:[#allocation12 + $0x164] ss:$8 sps:$4 sm:$0xff]  }
 0x2de   : > { %4203 = vmatprep.mubr.bf16.mxu0 %v9040_v59  ;;  %v7770_v59 = vld [vmem:[#allocation12 + $0x160] ss:$8 sps:$4 sm:$0xff]   ;;  %5081 = vmatpush1.bf16.msra.mxu0 %v7767_v51  ;;  %v7835_v34 = vld [vmem:[#allocation12 + $0xc4] ss:$8 sps:$4 sm:$0xff]   ;;  %v7841_v51 = vld [vmem:[#allocation12 + $0xb4] ss:$8 sps:$4 sm:$0xff]  }
 0x2df   : > { %5082 = vmatprep.subr.bf16.mxu0 %v7775_v38  ;;  %v7856_v38 = vld [vmem:[#allocation12 + $0x184] ss:$8 sps:$4 sm:$0xff]  }
 0x2e0   : > { %4243 = vmatpush2.bf16.msra.mxu1 %v7758_v39  ;;  %v9093_v39 = vpop.f32.mrf.mxu0 }
 0x2e1   : > { %4244 = vmatprep.subr.bf16.mxu1 %v7763_v6  ;;  %v7833_v6 = vld [vmem:[#allocation12 + $0xc0] ss:$8 sps:$4 sm:$0xff]  }
 0x2e2   : > { %5083 = vmatpush1.bf16.msra.mxu0 %v7773_v62  ;;  %v9097_v33 = vpop.f32.mrf.mxu0 }
 0x2e4   : > { %4245 = vmatpush2.bf16.msra.mxu1 %v7761_v54  ;;  %v7850_v54 = vld [vmem:[#allocation12 + $0x194] ss:$8 sps:$4 sm:$0xff]  }
 0x2e5   : > { %4204 = vmatmul.mubr.bf16.gmra.mxu0 %v9045_v5  ;;  %5131 = vmatprep.subr.bf16.mxu1 %v7766_v56  ;;  %v7778_v5 = vld [vmem:[#allocation12 + $0x154] ss:$8 sps:$4 sm:$0xff]   ;;  %v9095_v56 = vpop.f32.mrf.mxu1 }
 0x2e7   : > { %4247 = vmatmul.mubr.bf16.vlgmr.msra.gmra.mxu1 %v8959_v48  ;;  %v7781_v48 = vld [vmem:[#allocation12 + $0x54] ss:$8 sps:$4 sm:$0xff]   ;;  %v9099_v62 = vpop.f32.mrf.mxu1 }
 0x2e8   : > { %4256 = vmatprep.mubr.bf16.mxu1 %v9049_v18  ;;  %5132 = vmatpush1.bf16.msra.mxu1 %v7764_v41  ;;  %v7776_v18 = vld [vmem:[#allocation12 + $0x150] ss:$8 sps:$4 sm:$0xff]  }
 0x2e9   : > { %5133 = vmatprep.subr.bf16.mxu1 %v7772_v23  ;;  %5084 = vmatprep.subr.bf16.mxu0 %v7781_v48  ;;  %v7848_v41 = vld [vmem:[#allocation12 + $0x190] ss:$8 sps:$4 sm:$0xff]   ;;  %v7847_v48 = vld [vmem:[#allocation12 + $0xa4] ss:$8 sps:$4 sm:$0xff]  }
 0x2ea   : > { %v7839_v23 = vld [vmem:[#allocation12 + $0xb0] ss:$8 sps:$4 sm:$0xff]  }
 0x2ec   : > { %5134 = vmatpush1.bf16.msra.mxu1 %v7770_v59  ;;  %v7854_v59 = vld [vmem:[#allocation12 + $0x180] ss:$8 sps:$4 sm:$0xff]  }
 0x2ed   : > { %5135 = vmatprep.subr.bf16.mxu1 %v7778_v5  ;;  %v9101_v5 = vpop.f32.mrf.mxu0 }
 0x2ee   : > { %v3878_v32 = vadd.f32 %v9101_v5, %v9066_v46 }
 0x2ef   : > { %4257 = vmatmul.mubr.bf16.gmra.mxu1 %v9053_v15  ;;  %v7779_v15 = vld [vmem:[#allocation12 + $0x50] ss:$8 sps:$4 sm:$0xff]  }
 0x2f0   : > { %5136 = vmatpush1.bf16.msra.mxu1 %v7776_v18  ;;  %5085 = vmatpush1.bf16.msra.mxu0 %v7779_v15  ;;  %v7845_v18 = vld [vmem:[#allocation12 + $0xa0] ss:$8 sps:$4 sm:$0xff]   ;;  %v9103_v15 = vpop.f32.mrf.mxu1 }
 0x2f1   : > { %5137 = vmatprep.subr.bf16.mxu1 %v7784_v0  ;;  %5086 = vmatprep.subr.bf16.mxu0 %v7787_v14  ;;  %v9105_v0 = vpop.f32.mrf.mxu0  ;;  %v7853_v14 = vld [vmem:[#allocation12 + $0x94] ss:$8 sps:$4 sm:$0xff]  }
 0x2f4   : > { %5138 = vmatpush1.bf16.msra.mxu1 %v7782_v55  ;;  %5087 = vmatpush1.bf16.msra.mxu0 %v7785_v9  ;;  %v7851_v55 = vld [vmem:[#allocation12 + $0x90] ss:$8 sps:$4 sm:$0xff]   ;;  %v9107_v9 = vpop.f32.mrf.mxu1 }
 0x2f5   : > { %5139 = vmatprep.subr.bf16.mxu1 %v7790_v57  ;;  %5088 = vmatprep.subr.bf16.mxu0 %v7793_v58  ;;  %v9109_v57 = vpop.f32.mrf.mxu0  ;;  %v3841_v49 = vadd.f32 %v9107_v9, %v9097_v33 }
 0x2f8   : > { %5140 = vmatpush1.bf16.msra.mxu1 %v7788_v63  ;;  %5089 = vmatpush1.bf16.msra.mxu0 %v7791_v1  ;;  %v7859_v63 = vld [vmem:[#allocation12 + $0x84] ss:$8 sps:$4 sm:$0xff]  }
 0x2f9   : > { %5141 = vmatprep.subr.bf16.mxu1 %v7796_v2  ;;  %5090 = vmatprep.subr.bf16.mxu0 %v7799_v28  ;;  %v9111_v2 = vpop.f32.mrf.mxu1 }
 0x2fb   : > { %v9115_v1 = vpop.f32.mrf.mxu1 }
 0x2fc   : > { %5142 = vmatpush1.bf16.msra.mxu1 %v7794_v11  ;;  %5091 = vmatpush1.bf16.msra.mxu0 %v7797_v10  ;;  %v7857_v11 = vld [vmem:[#allocation12 + $0x80] ss:$8 sps:$4 sm:$0xff]  }
 0x2fd   : > { %5143 = vmatprep.subr.bf16.mxu1 %v7802_v42  ;;  %5092 = vmatprep.subr.bf16.mxu0 %v7805_v60  ;;  %v9113_v42 = vpop.f32.mrf.mxu0 }
 0x2ff   : > { %v3887_v58 = vpop.f32.mrf.mxu0 }
 0x300   : > { %5144 = vmatpush1.bf16.msra.mxu1 %v7800_v43  ;;  %5093 = vmatpush1.bf16.msra.mxu0 %v7803_v4  ;;  %v7862_v43 = vld [vmem:[#allocation12 + $0x274] ss:$8 sps:$4 sm:$0xff]  }
 0x301   : > { %5145 = vmatprep.subr.bf16.mxu1 %v7808_v44  ;;  %5094 = vmatprep.subr.bf16.mxu0 %v7811_v22  ;;  %v9117_v44 = vpop.f32.mrf.mxu1 }
 0x303   : > { %v9119_v10 = vpop.f32.mrf.mxu1 }
 0x304   : > { %5146 = vmatpush1.bf16.msra.mxu1 %v7806_v3  ;;  %5095 = vmatpush1.bf16.msra.mxu0 %v7809_v61  ;;  %v3889_v3 = vpop.f32.mrf.mxu0 }
 0x305   : > { %5147 = vmatprep.subr.bf16.mxu1 %v7814_v13  ;;  %5096 = vmatprep.subr.bf16.mxu0 %v7817_v30  ;;  %v9123_v13 = vpop.f32.mrf.mxu1 }
 0x306   : > { %v9121_v28 = vpop.f32.mrf.mxu0 }
 0x307   : > { %v9127_v60 = vpop.f32.mrf.mxu1 }
 0x308   : > { %5148 = vmatpush2.bf16.msra.mxu1 %v7812_v29  ;;  %5097 = vmatpush2.bf16.msra.mxu0 %v7815_v24  ;;  %v9125_v29 = vpop.f32.mrf.mxu0 }
 0x309   : > { %5149 = vmatprep.subr.bf16.mxu1 %v7820_v16  ;;  %5098 = vmatprep.subr.bf16.mxu0 %v7823_v21  ;;  %v9131_v16 = vpop.f32.mrf.mxu1 }
 0x30b   : > { %v9135_v22 = vpop.f32.mrf.mxu1 }
 0x30c   : > { %5150 = vmatpush2.bf16.msra.mxu1 %v7818_v17  ;;  %5099 = vmatpush2.bf16.msra.mxu0 %v7821_v50 }
 0x30d   : > { %5151 = vmatprep.subr.bf16.mxu1 %v7826_v7  ;;  %5100 = vmatprep.subr.bf16.mxu0 %v7829_v12 }
 0x310   : > { %5152 = vmatpush2.bf16.msra.mxu1 %v7824_v20  ;;  %5101 = vmatpush2.bf16.msra.mxu0 %v7827_v31 }
 0x311   : > { %5153 = vmatprep.subr.bf16.mxu1 %v7832_v25  ;;  %5102 = vmatprep.subr.bf16.mxu0 %v7835_v34 }
 0x314   : > { %5154 = vmatpush2.bf16.msra.mxu1 %v7830_v40  ;;  %5103 = vmatpush2.bf16.msra.mxu0 %v7833_v6 }
 0x315   : > { %5155 = vmatprep.subr.bf16.mxu1 %v7838_v35  ;;  %5104 = vmatprep.subr.bf16.mxu0 %v7841_v51 }
 0x318   : > { %5156 = vmatpush2.bf16.msra.mxu1 %v7836_v36  ;;  %5105 = vmatpush2.bf16.msra.mxu0 %v7839_v23 }
 0x319   : > { %5157 = vmatprep.subr.bf16.mxu1 %v7844_v53  ;;  %5106 = vmatprep.subr.bf16.mxu0 %v7847_v48 }
 0x31c   : > { %5158 = vmatpush2.bf16.msra.mxu1 %v7842_v37  ;;  %5107 = vmatpush2.bf16.msra.mxu0 %v7845_v18 }
 0x31d   : > { %5159 = vmatprep.subr.bf16.mxu1 %v7850_v54  ;;  %5108 = vmatprep.subr.bf16.mxu0 %v7853_v14  ;;  %v9129_v4 = vpop.f32.mrf.mxu0 }
 0x31f   : > { %v9133_v17 = vpop.f32.mrf.mxu0 }
 0x320   : > { %5160 = vmatpush2.bf16.msra.mxu1 %v7848_v41  ;;  %5109 = vmatpush2.bf16.msra.mxu0 %v7851_v55 }
 0x321   : > { %5161 = vmatprep.subr.bf16.mxu1 %v7856_v38  ;;  %5110 = vmatprep.subr.bf16.mxu0 %v7859_v63  ;;  %v9137_v61 = vpop.f32.mrf.mxu0 }
 0x323   : > { %v9139_v20 = vpop.f32.mrf.mxu0 }
 0x324   : > { %5162 = vmatpush2.bf16.msra.mxu1 %v7854_v59  ;;  %5111 = vmatpush2.bf16.msra.mxu0 %v7857_v11  ;;  %9478 = vst [vmem:[#allocation33_spill] sm:$0xff] %v9139_v20  ;;  %v3839_v20 = vadd.f32 %v9103_v15, %v9093_v39 }
 0x325   : > { %5182 = vmatprep.subr.bf16.mxu0 %v7862_v43  ;;  %v9141_v24 = vpop.f32.mrf.mxu0 }
 0x326   : > { %9479 = vst [vmem:[#allocation40_spill] sm:$0xff] %v9141_v24  ;;  %v3835_v24 = vadd.f32 %v9095_v56, %v9085_v26 }
 0x327   : > { %v4036_v7 = vpop.f32.mrf.mxu1  ;;  %v9143_v40 = vpop.f32.mrf.mxu0 }
 0x328   : > { %9480 = vst [vmem:[#allocation41_spill] sm:$0xff] %v9143_v40  ;;  %v3831_v40 = vadd.f32 %v9091_v19, %v9081_v47 }
 0x329   : > { %v4038_v30 = vpop.f32.mrf.mxu1  ;;  %v9145_v50 = vpop.f32.mrf.mxu0 }
 0x32a   : > { %9481 = vst [vmem:[#allocation34_spill] sm:$0xff] %v9145_v50  ;;  %v3884_v56 = vadd.f32 %v9113_v42, %v3831_v40 }
 0x32b   : > { %v4040_v25 = vpop.f32.mrf.mxu1  ;;  %v9147_v36 = vpop.f32.mrf.mxu0 }
 0x32c   : > { %9482 = vst [vmem:[#allocation35_spill] sm:$0xff] %v9147_v36 }
 0x32d   : > { %v4042_v21 = vpop.f32.mrf.mxu1 }
 0x32f   : > { %v4046_v35 = vpop.f32.mrf.mxu1 }
 0x331   : > { %v9149_v12 = vpop.f32.mrf.mxu1 }
 0x333   : > { %v9151_v53 = vpop.f32.mrf.mxu1 }
 0x334   : > { %9483 = vst [vmem:[#allocation42_spill] sm:$0xff] %v9151_v53 }
 0x335   : > { %v9153_v34 = vpop.f32.mrf.mxu1 }
 0x336   : > { %9484 = vst [vmem:[#allocation36_spill] sm:$0xff] %v9153_v34  ;;  %v3829_v34 = vadd.f32 %v9087_v45, %v9079_v8  ;;  %v3880_v45 = vadd.f32 %v9105_v0, %v3827_v27  ;;  %v3892_v27 = vadd.f32 %v9121_v28, %v3839_v20  ;;  %v3937_v0 = vadd.f32 %v9119_v10, %v3884_v56 }
 0x338   : > { %v3882_v47 = vadd.f32 %v9109_v57, %v3829_v34  ;;  %v3933_v33 = vadd.f32 %v9115_v1, %v3880_v45  ;;  %v3894_v57 = vadd.f32 %v9125_v29, %v3841_v49 }
 0x33a   : > { %v3935_v5 = vadd.f32 %v9117_v44, %v3882_v47  ;;  %v3947_v29 = vadd.f32 %v9135_v22, %v3894_v57 }
 0x33c   : > { %v3988_v34 = vadd.f32 %v9137_v61, %v3935_v5 }
 0x33d   : > { %v9490_v49 = vld [vmem:[#allocation36_spill] sm:$0xff] }
 0x35d   : > { %v4089_v31 = vpop.f32.mrf.mxu0 }
 0x35e   : > { %v4090_v53 = vadd.f32 %v4089_v31, %v4036_v7 }
 0x35f   : > { %v4091_v37 = vpop.f32.mrf.mxu0 }
 0x360   : > { %v4092_v19 = vadd.f32 %v4091_v37, %v4038_v30 }
 0x361   : > { %v4093_v6 = vpop.f32.mrf.mxu0 }
 0x362   : > { %v4094_v9 = vadd.f32 %v4093_v6, %v4040_v25  ;;  %v3945_v25 = vadd.f32 %v9131_v16, %v3892_v27 }
 0x363   : > { %v4095_v41 = vpop.f32.mrf.mxu0 }
 0x364   : > { %v4096_v30 = vadd.f32 %v4095_v41, %v4042_v21  ;;  %v3986_v21 = vadd.f32 %v9133_v17, %v3933_v33  ;;  %v9488_v17 = vld [vmem:[#allocation40_spill] sm:$0xff] }
 0x365   : > { %v4099_v23 = vpop.f32.mrf.mxu0 }
 0x366   : > { %v4100_v28 = vadd.f32 %v4099_v23, %v4046_v35  ;;  %v9487_v23 = vld [vmem:[#allocation42_spill] sm:$0xff] }
 0x367   : > { %v4142_v54 = vpop.f32.mrf.mxu1  ;;  %v4101_v59 = vpop.f32.mrf.mxu0 }
 0x368   : > { %v4143_v26 = vadd.f32 %v4142_v54, %v4090_v53  ;;  %v4102_v6 = vadd.f32 %v4101_v59, %v9149_v12  ;;  %v4320_v59 = vld [vmem:[#allocation11] sm:$0x3] }
 0x369   : > { %v4144_v51 = vpop.f32.mrf.mxu1  ;;  %v4103_v18 = vpop.f32.mrf.mxu0 }
 0x36a   : > { %v4145_v31 = vadd.f32 %v4144_v51, %v4092_v19  ;;  %v9486_v51 = vld [vmem:[#allocation33_spill] sm:$0xff] }
 0x36b   : > { %v4146_v38 = vpop.f32.mrf.mxu1  ;;  %v9155_v55 = vpop.f32.mrf.mxu0  ;;  %v3990_v35 = vadd.f32 %v9486_v51, %v3937_v0  ;;  %v9493_v0 = vld [vmem:[#allocation34_spill] sm:$0xff] }
 0x36c   : > { %9485 = vst [vmem:[#allocation43_spill] sm:$0xff] %v9155_v55  ;;  %v3837_v55 = vadd.f32 %v9099_v62, %v9089_v52  ;;  %v3931_v52 = vadd.f32 %v9111_v2, %v3878_v32  ;;  %v3888_v62 = vadd.f32 %v3887_v58, %v3835_v24  ;;  %v4147_v2 = vadd.f32 %v4146_v38, %v4094_v9  ;;  %v9492_v9 = vld [vmem:[#allocation38_spill] sm:$0xff] }
 0x36d   : > { %v4148_v48 = vpop.f32.mrf.mxu1  ;;  %v3998_v57 = vadd.f32 %v9493_v0, %v3945_v25 }
 0x36e   : > { %v3890_v7 = vadd.f32 %v3889_v3, %v3837_v55  ;;  %v3941_v40 = vadd.f32 %v9123_v13, %v3888_v62  ;;  %v3984_v44 = vadd.f32 %v9129_v4, %v3931_v52  ;;  %v4149_v20 = vadd.f32 %v4148_v48, %v4096_v30 }
 0x36f   : > { %v4152_v14 = vpop.f32.mrf.mxu1 }
 0x370   : > { %v3943_v1 = vadd.f32 %v9127_v60, %v3890_v7  ;;  %v4153_v54 = vadd.f32 %v4152_v14, %v4100_v28  ;;  %v3994_v55 = vadd.f32 %v9488_v17, %v3941_v40  ;;  %v9489_v14 = vld [vmem:[#allocation41_spill] sm:$0xff] }
 0x371   : > { %v4154_v63 = vpop.f32.mrf.mxu1 }
 0x372   : > { %v4155_v38 = vadd.f32 %v4154_v63, %v4102_v6 }
 0x373   : > { %v9159_v36 = vpop.f32.mrf.mxu1  ;;  %v9491_v32 = vld [vmem:[#allocation43_spill] sm:$0xff] }
 0x375   : > { %v4158_v39 = vpop.f32.mrf.mxu1 }
 0x39d   : > { %v4195_v11 = vpop.f32.mrf.mxu0 }
 0x39e   : > { %v4196_v46 = vadd.f32 %v4195_v11, %v4143_v26 }
 0x39f   : > { %v4197_v43 = vpop.f32.mrf.mxu0 }
 0x3a0   : > { %v4198_v58 = vadd.f32 %v4197_v43, %v4145_v31  ;;  %v3996_v43 = vadd.f32 %v9489_v14, %v3943_v1  ;;  %v4325_v31 = vrot.slane %v4320_v59, %v9492_v9 }
 0x3a1   : > { %v4199_v50 = vpop.f32.mrf.mxu0 }
 0x3a2   : > { %v4200_v10 = vadd.f32 %v4199_v50, %v4147_v2  ;;  %v4104_v50 = vadd.f32 %v4103_v18, %v9487_v23 }
 0x3a3   : > { %v4201_v8 = vpop.f32.mrf.mxu0 }
 0x3a4   : > { %v4202_v60 = vadd.f32 %v4201_v8, %v4149_v20  ;;  %v4106_v8 = vadd.f32 %v9491_v32, %v9490_v49  ;;  %v4157_v45 = vadd.f32 %v9159_v36, %v4104_v50  ;;  %v4355_v20 = vpop.permute.xlu0 %4354 }
 0x3a5   : > { %v4205_v15 = vpop.f32.mrf.mxu0 }
 0x3a6   : > { %v4206_v61 = vadd.f32 %v4205_v15, %v4153_v54  ;;  %v4159_v62 = vadd.f32 %v4158_v39, %v4106_v8 }
 0x3a7   : > { %v4248_v42 = vpop.f32.mrf.mxu1  ;;  %v4207_v24 = vpop.f32.mrf.mxu0 }
 0x3a8   : > { %v4249_v3 = vadd.f32 %v4248_v42, %v4196_v46  ;;  %v4208_v47 = vadd.f32 %v4207_v24, %v4155_v38  ;;  %v4360_v14 = vpop.permute.xlu0 %4359 }
 0x3a9   : > { %v4250_v53 = vpop.f32.mrf.mxu1  ;;  %v4209_v4 = vpop.f32.mrf.mxu0 }
 0x3aa   : > { %v4251_v37 = vadd.f32 %v4250_v53, %v4198_v58  ;;  %v9192_v41 = vmax.f32 %v3984_v44, %v4249_v3  ;;  %v4210_v15 = vadd.f32 %v4209_v4, %v4157_v45  ;;  %v9494_v58 = vld [vmem:[#allocation39_spill] sm:$0xff] }
 0x3ab   : > { %v4252_v13 = vpop.f32.mrf.mxu1  ;;  %v4211_v56 = vpop.f32.mrf.mxu0  ;;  %v4329_v3 = vrot.slane %v4320_v59, %v9494_v58  ;;  %v9495_v44 = vld [vmem:[#allocation35_spill] sm:$0xff] }
 0x3ac   : > { %v4253_v16 = vadd.f32 %v4252_v13, %v4200_v10  ;;  %v9196_v48 = vmax.f32 %v3986_v21, %v4251_v37  ;;  %v4283_v18 = vrot.slane %v9192_v41, 2  ;;  %v4212_v42 = vadd.f32 %v4211_v56, %v4159_v62 }
 0x3ad   : > { %v4254_v22 = vpop.f32.mrf.mxu1  ;;  %v4000_v53 = vadd.f32 %v9495_v44, %v3947_v29 }
 0x3ae   : > { %v4269_v11 = vmax.f32 %v3988_v34, %v4253_v16  ;;  %v4255_v12 = vadd.f32 %v4254_v22, %v4202_v60  ;;  %v4286_v7 = vrot.slane %v9196_v48, 2  ;;  %v4305_v16 = vrot.slane %v9192_v41, 6 }
 0x3af   : > { %v4258_v19 = vpop.f32.mrf.mxu1  ;;  %v4306_v29 = vrot.slane %v9196_v48, 6 }
 0x3b0   : > { %v4284_v63 = vrot.slane %v4269_v11, 2  ;;  %v4270_v26 = vmax.f32 %v3990_v35, %v4255_v12  ;;  %v4259_v52 = vadd.f32 %v4258_v19, %v4206_v61 }
 0x3b1   : > { %v4260_v33 = vpop.f32.mrf.mxu1 }
 0x3b2   : > { %v4287_v46 = vrot.slane %v4270_v26, 2  ;;  %v4271_v5 = vmax.f32 %v3994_v55, %v4259_v52  ;;  %v4261_v27 = vadd.f32 %v4260_v33, %v4208_v47  ;;  %v4285_v36 = vsel %vm593_vm0, %v4283_v18, %v4284_v63 }
 0x3b3   : > { %v4262_v30 = vpop.f32.mrf.mxu1  ;;  %v4312_v2 = vmax.f32 %v9192_v41, %v4285_v36 }
 0x3b4   : > { %v4289_v39 = vrot.slane %v4271_v5, 2  ;;  %v4272_v24 = vmax.f32 %v3996_v43, %v4261_v27  ;;  %v4263_v40 = vadd.f32 %v4262_v30, %v4210_v15  ;;  %v4288_v1 = vsel %vm593_vm0, %v4286_v7, %v4287_v46 }
 0x3b5   : > { %v4264_v28 = vpop.f32.mrf.mxu1  ;;  %v4313_v10 = vmax.f32 %v9196_v48, %v4288_v1  ;;  %v4332_v37 = vadd.f32 %v4325_v31, %v4312_v2  ;;  %v7917_v1 = vld [vmem:[#allocation15 + $0x1c0] ss:$16 sps:$4 sm:$0xff]  }
 0x3b6   : > { %v4291_v21 = vrot.slane %v4272_v24, 2  ;;  %v4273_v25 = vmax.f32 %v3998_v57, %v4263_v40  ;;  %v4265_v34 = vadd.f32 %v4264_v28, %v4212_v42  ;;  %v4290_v6 = vsel %vm593_vm0, %v4284_v63, %v4289_v39 }
 0x3b7   : > { %v4333_v13 = vadd.f32 %v4329_v3, %v4313_v10  ;;  %v4340_v54 = vmax.f32 %v4332_v37, 0.0  ;;  %v4314_v60 = vmax.f32 %v4269_v11, %v4290_v6  ;;  %v4370_v11 = vpop.permute.xlu1 %4369 }
 0x3b8   : > { %v4293_v4 = vrot.slane %v4273_v25, 2  ;;  %v4274_v51 = vmax.f32 %v4000_v53, %v4265_v34  ;;  %v4292_v35 = vsel %vm593_vm0, %v4287_v46, %v4291_v21 }
 0x3b9   : > { %v4341_v23 = vmax.f32 %v4333_v13, 0.0  ;;  %v4315_v50 = vmax.f32 %v4270_v26, %v4292_v35  ;;  %v4334_v38 = vadd.f32 %v4325_v31, %v4314_v60  ;;  %v4372_v55 = vmul.f32 %v4355_v20, %v4340_v54 }
 0x3ba   : > { %v4310_v22 = vsel %vm1648_vm1, %v4293_v4, %v4305_v16  ;;  %v4295_v17 = vrot.slane %v4274_v51, 2  ;;  %v4294_v61 = vsel %vm593_vm0, %v4289_v39, %v4293_v4  ;;  %v7860_v16 = vld [vmem:[#allocation12 + $0x270] ss:$8 sps:$4 sm:$0xff]  }
 0x3bb   : > { %v4318_v12 = vmax.f32 %v4273_v25, %v4310_v22  ;;  %v4373_v59 = vmul.f32 %v4355_v20, %v4341_v23  ;;  %v4335_v41 = vadd.f32 %v4329_v3, %v4315_v50  ;;  %v4342_v43 = vmax.f32 %v4334_v38, 0.0  ;;  %v4365_v36 = vpop.permute.xlu1 %4364  ;;  %v7868_v38 = vld [vmem:[#allocation12 + $0x254] ss:$8 sps:$4 sm:$0xff]   ;;  %v7866_v22 = vld [vmem:[#allocation12 + $0x250] ss:$8 sps:$4 sm:$0xff]  }
 0x3bc   : > { %v4311_v49 = vsel %vm1648_vm1, %v4295_v17, %v4306_v29  ;;  %v4296_v32 = vsel %vm593_vm0, %v4291_v21, %v4295_v17  ;;  %v4316_v48 = vmax.f32 %v4271_v5, %v4294_v61  ;;  %v7863_v29 = vld [vmem:[#allocation12 + $0x260] ss:$8 sps:$4 sm:$0xff]   ;;  %v9497_v23 = vmov 0  }
 0x3bd   : > { %v4319_v8 = vmax.f32 %v4274_v51, %v4311_v49  ;;  %v7024_v45 = vpack.c.bf16 %v4373_v59, %v4372_v55  ;;  %v4338_v47 = vadd.f32 %v4325_v31, %v4318_v12  ;;  %v4343_v19 = vmax.f32 %v4335_v41, 0.0  ;;  %v7865_v51 = vld [vmem:[#allocation12 + $0x264] ss:$8 sps:$4 sm:$0xff]   ;;  %v7869_v12 = vld [vmem:[#allocation12 + $0x240] ss:$8 sps:$4 sm:$0xff]  }
 0x3be   : > { %v4374_v18 = vmul.f32 %v4360_v14, %v4342_v43  ;;  %v4317_v63 = vmax.f32 %v4272_v24, %v4296_v32  ;;  %v4336_v26 = vadd.f32 %v4325_v31, %v4316_v48  ;;  %v7875_v41 = vld [vmem:[#allocation12 + $0x220] ss:$8 sps:$4 sm:$0xff]   ;;  %v7880_v43 = vld [vmem:[#allocation12 + $0x214] ss:$8 sps:$4 sm:$0xff]   ;;  %v7878_v49 = vld [vmem:[#allocation12 + $0x210] ss:$8 sps:$4 sm:$0xff]  }
 0x3bf   : > { %v4402_v56 = vrot.slane %v7024_v45, 6  ;;  %4431 = vst [vmem:[#allocation2 + $0x10] sm:$0x33] %v7024_v45  ;;  %v4339_v52 = vadd.f32 %v4329_v3, %v4319_v8  ;;  %v4346_v62 = vmax.f32 %v4338_v47, 0.0  ;;  %v4375_v7 = vmul.f32 %v4360_v14, %v4343_v19  ;;  %v7877_v14 = vld [vmem:[#allocation12 + $0x224] ss:$8 sps:$4 sm:$0xff]  }
 0x3c0   : > { %v4337_v15 = vadd.f32 %v4329_v3, %v4317_v63  ;;  %v4344_v33 = vmax.f32 %v4336_v26, 0.0  ;;  %v8044_v2 = vpack.c.bf16 %v4374_v18, %v4372_v55  ;;  %v7871_v55 = vld [vmem:[#allocation12 + $0x244] ss:$8 sps:$4 sm:$0xff]   ;;  %v7881_v48 = vld [vmem:[#allocation12 + $0x200] ss:$8 sps:$4 sm:$0xff]   ;;  %vm6183_vm0 = vcmask 73728  }
 0x3c1   : > { %4414 = vst [vmem:[#allocation2] sm:$0xcc] %v4402_v56  ;;  %v4347_v46 = vmax.f32 %v4339_v52, 0.0  ;;  %v7025_v27 = vpack.c.bf16 %v4375_v7, %v4374_v18  ;;  %v4403_v0 = vrot.slane %v4402_v56, 4  ;;  %v4378_v5 = vmul.f32 %v4370_v11, %v4346_v62  ;;  %v7883_v32 = vld [vmem:[#allocation12 + $0x204] ss:$8 sps:$4 sm:$0xff]  }
 0x3c2   : > { %v4345_v57 = vmax.f32 %v4337_v15, 0.0  ;;  %v8045_v39 = vpack.c.bf16 %v4375_v7, %v4373_v59  ;;  %v4376_v24 = vmul.f32 %v4365_v36, %v4344_v33  ;;  %v7874_v59 = vld [vmem:[#allocation12 + $0x234] ss:$8 sps:$4 sm:$0xff]   ;;  %v7884_v45 = vld [vmem:[#allocation12 + $0x2f0] ss:$8 sps:$4 sm:$0xff]  }
 0x3c3   : > { %v4379_v42 = vmul.f32 %v4370_v11, %v4347_v46  ;;  %v4404_v30 = vrot.slane %v7025_v27, 6  ;;  %v7872_v11 = vld [vmem:[#allocation12 + $0x230] ss:$8 sps:$4 sm:$0xff]   ;;  %v7886_v8 = vld [vmem:[#allocation12 + $0x2f4] ss:$8 sps:$4 sm:$0xff]  }
 0x3c4   : > { %v4377_v31 = vmul.f32 %v4365_v36, %v4345_v57  ;;  %5163 = vmatprep.mubr.bf16.mxu1 %v8045_v39  ;;  %v7889_v47 = vld [vmem:[#allocation12 + $0x2e4] ss:$8 sps:$4 sm:$0xff]   ;;  %v7887_v19 = vld [vmem:[#allocation12 + $0x2e0] ss:$8 sps:$4 sm:$0xff]   ;;  %v7892_v18 = vld [vmem:[#allocation12 + $0x2d4] ss:$8 sps:$4 sm:$0xff]  }
 0x3c5   : > { %v7023_v40 = vpack.c.bf16 %v4379_v42, %v4378_v5  ;;  %v9223_v44 = vsel %vm8982_vm4, %v4403_v0, %v4404_v30  ;;  %5164 = vmatmul.mubr.bf16.vlgmr.msra.gmra.mxu1 %v8044_v2  ;;  %v4406_v53 = vrot.slane %v4404_v30, 4  ;;  %v7890_v63 = vld [vmem:[#allocation12 + $0x2d0] ss:$8 sps:$4 sm:$0xff]   ;;  %v7895_v26 = vld [vmem:[#allocation12 + $0x2c4] ss:$8 sps:$4 sm:$0xff]  }
 0x3c6   : > { %v7026_v3 = vpack.c.bf16 %v4377_v31, %v4376_v24  ;;  %v7893_v56 = vld [vmem:[#allocation12 + $0x2c0] ss:$8 sps:$4 sm:$0xff]   ;;  %v7898_v52 = vld [vmem:[#allocation12 + $0x2b4] ss:$8 sps:$4 sm:$0xff]   ;;  %v7896_v62 = vld [vmem:[#allocation12 + $0x2b0] ss:$8 sps:$4 sm:$0xff]  }
 0x3c7   : > { %4390 = vst [vmem:[#allocation2] sm:$0x33] %v7023_v40  ;;  %4424 = vst [vmem:[#allocation2 + $0x20] sm:$0x33] %v7023_v40  ;;  %v4425_v20 = vrot.slane %v7023_v40, 6 }
 0x3c8   : > { %v4407_v28 = vrot.slane %v7026_v3, 6  ;;  %v7901_v7 = vld [vmem:[#allocation12 + $0x2a4] ss:$8 sps:$4 sm:$0xff]   ;;  %v7899_v15 = vld [vmem:[#allocation12 + $0x2a0] ss:$8 sps:$4 sm:$0xff]  }
 0x3c9   : > { %v7904_v33 = vld [vmem:[#allocation12 + $0x294] ss:$8 sps:$4 sm:$0xff]   ;;  %v7902_v46 = vld [vmem:[#allocation12 + $0x290] ss:$8 sps:$4 sm:$0xff]   ;;  %v7907_v27 = vld [vmem:[#allocation12 + $0x284] ss:$8 sps:$4 sm:$0xff]  }
 0x3ca   : > { %v9227_v10 = vsel %vm8982_vm4, %v4406_v53, %v4407_v28  ;;  %v4409_v37 = vrot.slane %v4407_v28, 4  ;;  %v7905_v36 = vld [vmem:[#allocation12 + $0x280] ss:$8 sps:$4 sm:$0xff]   ;;  %v4443_v0 = vld [vmem:[#allocation2 + $0x10] sm:$0x33] }
 0x3cb   : > { %v6814_v21 = vcombine.low %v9223_v44, %v9227_v10  ;;  %v6815_v61 = vcombine.high %v9223_v44, %v9227_v10  ;;  %v7908_v42 = vld [vmem:[#allocation15 + $0xe0] ss:$16 sps:$4 sm:$0xff]   ;;  %v7910_v30 = vld [vmem:[#allocation15 + $0xe4] ss:$16 sps:$4 sm:$0xff]  }
 0x3cc   : > { %4417 = vst [vmem:[#allocation2 + $0x78] sm:$0x33] %v4409_v37  ;;  %v9233_v25 = vsel %vm8982_vm4, %v4409_v37, %v4425_v20  ;;  %v7911_v2 = vld [vmem:[#allocation15 + $0x1e0] ss:$16 sps:$4 sm:$0xff]   ;;  %v7913_v39 = vld [vmem:[#allocation15 + $0x1e4] ss:$16 sps:$4 sm:$0xff]  }
 0x3cd   : > { %v6821_v5 = vcombine.high %v9233_v25, %v4443_v0  ;;  %v6820_v57 = vcombine.low %v9233_v25, %v4443_v0  ;;  %v7916_v24 = vld [vmem:[#allocation15 + $0xc4] ss:$16 sps:$4 sm:$0xff]   ;;  %5488 = vmatprep.subr.bf16.mxu1 %v7913_v39  ;;  %v7914_v40 = vld [vmem:[#allocation15 + $0xc0] ss:$16 sps:$4 sm:$0xff]  }
 0x3ce   : > { %v4432_v34 = vld [vmem:[#allocation2] sm:$0xff]  ;;  %v7919_v31 = vld [vmem:[#allocation15 + $0x1c4] ss:$16 sps:$4 sm:$0xff]   ;;  %5489 = vmatpush1.bf16.msra.mxu1 %v7911_v2 }
 0x3cf   : > { %v4442_v6 = vld [vmem:[#allocation2 + $0x20] sm:$0x33]  ;;  %v6810_v13 = vcombine.low %v4432_v34, %v9223_v44  ;;  %v6811_v54 = vcombine.high %v4432_v34, %v9223_v44  ;;  %5490 = vmatprep.subr.bf16.mxu1 %v7919_v31  ;;  %v7922_v44 = vld [vmem:[#allocation15 + $0xa4] ss:$16 sps:$4 sm:$0xff]   ;;  %v7923_v28 = vld [vmem:[#allocation15 + $0x1a0] ss:$16 sps:$4 sm:$0xff]  }
 0x3d0   : > { %v6819_v60 = vcombine.high %v7026_v3, %v4442_v6  ;;  %v6818_v4 = vcombine.low %v7026_v3, %v4442_v6  ;;  %v7920_v3 = vld [vmem:[#allocation15 + $0xa0] ss:$16 sps:$4 sm:$0xff]   ;;  %v7925_v53 = vld [vmem:[#allocation15 + $0x1a4] ss:$16 sps:$4 sm:$0xff]  }
 0x3d1   : > { %5112 = vmatprep.mubr.bf16.mxu0 %v6811_v54  ;;  %v7928_v20 = vld [vmem:[#allocation15 + $0x84] ss:$16 sps:$4 sm:$0xff]   ;;  %v7932_v34 = vld [vmem:[#allocation15 + $0x60] ss:$16 sps:$4 sm:$0xff]  }
 0x3d2   : > { %5173 = vmatprep.mubr.bf16.mxu1 %v6819_v60  ;;  %5113 = vmatmul.mubr.bf16.vlgmr.msra.gmra.mxu0 %v6810_v13  ;;  %v7931_v37 = vld [vmem:[#allocation15 + $0x184] ss:$16 sps:$4 sm:$0xff]   ;;  %v7935_v13 = vld [vmem:[#allocation15 + $0x160] ss:$16 sps:$4 sm:$0xff]  }
 0x3d3   : > { %5174 = vmatmul.mubr.bf16.gmra.mxu1 %v6818_v4  ;;  %5183 = vmatpush1.bf16.msra.mxu0 %v7860_v16  ;;  %v4441_v35 = vld [vmem:[#allocation2 + $0x78] sm:$0x33] }
 0x3d4   : > { %5520 = vmatprep.mubr.bf16.mxu1 %v9497_v23  ;;  %v6817_v50 = vcombine.high %v9227_v10, %v4441_v35  ;;  %5184 = vmatprep.subr.bf16.mxu0 %v7865_v51  ;;  %v6816_v17 = vcombine.low %v9227_v10, %v4441_v35  ;;  %v7926_v10 = vld [vmem:[#allocation15 + $0x80] ss:$16 sps:$4 sm:$0xff]   ;;  %v7934_v25 = vld [vmem:[#allocation15 + $0x64] ss:$16 sps:$4 sm:$0xff]  }
 0x3d5   : > { %5491 = vmatpush1.bf16.msra.mxu1 %v7917_v1  ;;  %v7937_v6 = vld [vmem:[#allocation15 + $0x164] ss:$16 sps:$4 sm:$0xff]   ;;  %v7938_v60 = vld [vmem:[#allocation15 + $0x40] ss:$16 sps:$4 sm:$0xff]  }
 0x3d6   : > { %5122 = vmatprep.mubr.bf16.mxu0 %v6817_v50  ;;  %5492 = vmatprep.subr.bf16.mxu1 %v7925_v53  ;;  %v7940_v54 = vld [vmem:[#allocation15 + $0x44] ss:$16 sps:$4 sm:$0xff]   ;;  %v7941_v4 = vld [vmem:[#allocation15 + $0x140] ss:$16 sps:$4 sm:$0xff]  }
 0x3d7   : > { %5185 = vmatpush1.bf16.msra.mxu0 %v7863_v29  ;;  %v7943_v16 = vld [vmem:[#allocation15 + $0x144] ss:$16 sps:$4 sm:$0xff]   ;;  %v7944_v35 = vld [vmem:[#allocation15 + $0x20] ss:$16 sps:$4 sm:$0xff]  }
 0x3d8   : > { %5186 = vmatprep.subr.bf16.mxu0 %v7868_v38  ;;  %v7946_v51 = vld [vmem:[#allocation15 + $0x24] ss:$16 sps:$4 sm:$0xff]   ;;  %v7947_v50 = vld [vmem:[#allocation15 + $0x120] ss:$16 sps:$4 sm:$0xff]  }
 0x3d9   : > { %5493 = vmatpush1.bf16.msra.mxu1 %v7923_v28  ;;  %v7949_v29 = vld [vmem:[#allocation15 + $0x124] ss:$16 sps:$4 sm:$0xff]  }
 0x3da   : > { %5123 = vmatmul.mubr.bf16.gmra.mxu0 %v6816_v17  ;;  %5494 = vmatprep.subr.bf16.mxu1 %v7931_v37  ;;  %v7952_v38 = vld [vmem:[#allocation15 + $0x4] ss:$16 sps:$4 sm:$0xff]  }
 0x3db   : > { %5187 = vmatpush1.bf16.msra.mxu0 %v7866_v22  ;;  %5214 = vmatprep.mubr.bf16.mxu0 %v6815_v61  ;;  %v7950_v22 = vld [vmem:[#allocation15] ss:$16 sps:$4 sm:$0xff]   ;;  %v7955_v17 = vld [vmem:[#allocation15 + $0x104] ss:$16 sps:$4 sm:$0xff]   ;;  %v7958_v61 = vld [vmem:[#allocation15 + $0x1ec] ss:$16 sps:$4 sm:$0xff]  }
 0x3dc   : > { %5188 = vmatprep.subr.bf16.mxu0 %v7871_v55  ;;  %v7953_v55 = vld [vmem:[#allocation15 + $0x100] ss:$16 sps:$4 sm:$0xff]  }
 0x3df   : > { %5189 = vmatpush1.bf16.msra.mxu0 %v7869_v12 }
 0x3e0   : > { %5190 = vmatprep.subr.bf16.mxu0 %v7874_v59 }
 0x3e3   : > { %5191 = vmatpush1.bf16.msra.mxu0 %v7872_v11 }
 0x3e4   : > { %5192 = vmatprep.subr.bf16.mxu0 %v7877_v14 }
 0x3e7   : > { %5193 = vmatpush1.bf16.msra.mxu0 %v7875_v41 }
 0x3e8   : > { %5194 = vmatprep.subr.bf16.mxu0 %v7880_v43 }
 0x3eb   : > { %5195 = vmatpush1.bf16.msra.mxu0 %v7878_v49 }
 0x3ec   : > { %5196 = vmatprep.subr.bf16.mxu0 %v7883_v32 }
 0x3ef   : > { %5197 = vmatpush1.bf16.msra.mxu0 %v7881_v48 }
 0x3f0   : > { %5198 = vmatprep.subr.bf16.mxu0 %v7886_v8 }
 0x3f3   : > { %5199 = vmatpush2.bf16.msra.mxu0 %v7884_v45 }
 0x3f4   : > { %5200 = vmatprep.subr.bf16.mxu0 %v7889_v47 }
 0x3f7   : > { %5201 = vmatpush2.bf16.msra.mxu0 %v7887_v19 }
 0x3f8   : > { %5202 = vmatprep.subr.bf16.mxu0 %v7892_v18 }
 0x3fb   : > { %5203 = vmatpush2.bf16.msra.mxu0 %v7890_v63 }
 0x3fc   : > { %5204 = vmatprep.subr.bf16.mxu0 %v7895_v26 }
 0x3ff   : > { %5205 = vmatpush2.bf16.msra.mxu0 %v7893_v56 }
 0x400   : > { %5206 = vmatprep.subr.bf16.mxu0 %v7898_v52 }
 0x403   : > { %5207 = vmatpush2.bf16.msra.mxu0 %v7896_v62 }
 0x404   : > { %5208 = vmatprep.subr.bf16.mxu0 %v7901_v7 }
 0x407   : > { %5209 = vmatpush2.bf16.msra.mxu0 %v7899_v15 }
 0x408   : > { %5210 = vmatprep.subr.bf16.mxu0 %v7904_v33  ;;  %v8004_v33 = vld [vmem:[%s9404_s10 + $0x78] sm:$0xff]  }
 0x40b   : > { %5211 = vmatpush2.bf16.msra.mxu0 %v7902_v46 }
 0x40c   : > { %5212 = vmatprep.subr.bf16.mxu0 %v7907_v27 }
 0x40f   : > { %5213 = vmatpush2.bf16.msra.mxu0 %v7905_v36 }
 0x410   : > { %5730 = vmatprep.subr.bf16.mxu0 %v7910_v30 }
 0x412   : > { %5215 = vmatmul.mubr.bf16.vlgmr.msra.gmra.mxu0 %v6814_v21  ;;  %v7929_v21 = vld [vmem:[#allocation15 + $0x180] ss:$16 sps:$4 sm:$0xff]  }
 0x413   : > { %5224 = vmatprep.mubr.bf16.mxu0 %v6821_v5  ;;  %5731 = vmatpush1.bf16.msra.mxu0 %v7908_v42 }
 0x414   : > { %5732 = vmatprep.subr.bf16.mxu0 %v7916_v24  ;;  %5495 = vmatpush1.bf16.msra.mxu1 %v7929_v21 }
 0x415   : > { %5496 = vmatprep.subr.bf16.mxu1 %v7937_v6 }
 0x417   : > { %5733 = vmatpush1.bf16.msra.mxu0 %v7914_v40 }
 0x418   : > { %5734 = vmatprep.subr.bf16.mxu0 %v7922_v44  ;;  %5497 = vmatpush1.bf16.msra.mxu1 %v7935_v13 }
 0x419   : > { %5498 = vmatprep.subr.bf16.mxu1 %v7943_v16 }
 0x41a   : > { %5225 = vmatmul.mubr.bf16.gmra.mxu0 %v6820_v57 }
 0x41b   : > { %5762 = vmatprep.mubr.bf16.mxu0 %v9497_v23  ;;  %5735 = vmatpush1.bf16.msra.mxu0 %v7920_v3 }
 0x41c   : > { %5736 = vmatprep.subr.bf16.mxu0 %v7928_v20  ;;  %5499 = vmatpush1.bf16.msra.mxu1 %v7941_v4 }
 0x41d   : > { %5500 = vmatprep.subr.bf16.mxu1 %v7949_v29  ;;  %v8006_v29 = vld [vmem:[%s9404_s10 + $0x70] sm:$0xff]  }
 0x41f   : > { %5737 = vmatpush1.bf16.msra.mxu0 %v7926_v10 }
 0x420   : > { %5738 = vmatprep.subr.bf16.mxu0 %v7934_v25  ;;  %5501 = vmatpush1.bf16.msra.mxu1 %v7947_v50  ;;  %v7956_v50 = vld [vmem:[#allocation15 + $0x1e8] ss:$16 sps:$4 sm:$0xff]  }
 0x421   : > { %5502 = vmatprep.subr.bf16.mxu1 %v7955_v17  ;;  %v8007_v17 = vld [vmem:[%s9404_s10 + $0x30] sm:$0xff]  }
 0x423   : > { %5739 = vmatpush1.bf16.msra.mxu0 %v7932_v34  ;;  %v6918_v34 = vld [vmem:[#allocation14] ss:$0 sm:$0xff] }
 0x424   : > { %5740 = vmatprep.subr.bf16.mxu0 %v7940_v54  ;;  %5503 = vmatpush1.bf16.msra.mxu1 %v7953_v55  ;;  %v8008_v55 = vld [vmem:[%s9404_s10 + $0x68] sm:$0xff]  }
 0x425   : > { %5529 = vmatprep.subr.bf16.mxu1 %v7958_v61  ;;  %v7959_v61 = vld [vmem:[#allocation15 + $0x1c8] ss:$16 sps:$4 sm:$0xff]  }
 0x427   : > { %5741 = vmatpush1.bf16.msra.mxu0 %v7938_v60 }
 0x428   : > { %5742 = vmatprep.subr.bf16.mxu0 %v7946_v51  ;;  %v8005_v51 = vld [vmem:[%s9404_s10 + $0x38] sm:$0xff]  }
 0x42b   : > { %5743 = vmatpush1.bf16.msra.mxu0 %v7944_v35 }
 0x42c   : > { %5744 = vmatprep.subr.bf16.mxu0 %v7952_v38 }
 0x42f   : > { %5745 = vmatpush1.bf16.msra.mxu0 %v7950_v22  ;;  %v7961_v22 = vld [vmem:[#allocation15 + $0x1cc] ss:$16 sps:$4 sm:$0xff]  }
 0x430   : > { %7027 = vmatprep.subr.bf16.mxu0 %v8004_v33  ;;  %v7988_v33 = vld [vmem:[#allocation15 + $0xac] ss:$16 sps:$4 sm:$0xff]  }
 0x485   : > { %v5165_v12 = vpop.f32.mrf.mxu1 }
 0x487   : > { %v5167_v59 = vpop.f32.mrf.mxu1 }
 0x489   : > { %v5169_v11 = vpop.f32.mrf.mxu1 }
 0x48b   : > { %v5171_v14 = vpop.f32.mrf.mxu1 }
 0x492   : > { %v5114_v41 = vpop.f32.mrf.mxu0 }
 0x493   : > { %v5175_v43 = vpop.f32.mrf.mxu1  ;;  %v5166_v49 = vadd.f32 %v5165_v12, %v5114_v41  ;;  %v7964_v12 = vld [vmem:[#allocation15 + $0x1ac] ss:$16 sps:$4 sm:$0xff]  }
 0x494   : > { %v5116_v32 = vpop.f32.mrf.mxu0  ;;  %v7967_v41 = vld [vmem:[#allocation15 + $0x18c] ss:$16 sps:$4 sm:$0xff]  }
 0x495   : > { %v5177_v48 = vpop.f32.mrf.mxu1  ;;  %v5168_v8 = vadd.f32 %v5167_v59, %v5116_v32  ;;  %v8009_v59 = vld [vmem:[%s9404_s10 + $0x28] sm:$0xff]  }
 0x496   : > { %v5118_v45 = vpop.f32.mrf.mxu0  ;;  %v7965_v32 = vld [vmem:[#allocation15 + $0x188] ss:$16 sps:$4 sm:$0xff]  }
 0x497   : > { %v5179_v47 = vpop.f32.mrf.mxu1  ;;  %v5170_v19 = vadd.f32 %v5169_v11, %v5118_v45  ;;  %v8010_v11 = vld [vmem:[%s9404_s10 + $0x60] sm:$0xff]  }
 0x498   : > { %v5120_v18 = vpop.f32.mrf.mxu0  ;;  %v7968_v45 = vld [vmem:[#allocation15 + $0x168] ss:$16 sps:$4 sm:$0xff]   ;;  %v7973_v47 = vld [vmem:[#allocation15 + $0x14c] ss:$16 sps:$4 sm:$0xff]  }
 0x499   : > { %v5180_v63 = vpop.f32.mrf.mxu1  ;;  %v5172_v26 = vadd.f32 %v5171_v14, %v5120_v18  ;;  %v7962_v14 = vld [vmem:[#allocation15 + $0x1a8] ss:$16 sps:$4 sm:$0xff]   ;;  %v7976_v18 = vld [vmem:[#allocation15 + $0x12c] ss:$16 sps:$4 sm:$0xff]  }
 0x49a   : > { %v5124_v56 = vpop.f32.mrf.mxu0  ;;  %v7974_v63 = vld [vmem:[#allocation15 + $0x128] ss:$16 sps:$4 sm:$0xff]  }
 0x49b   : > { %v5176_v52 = vadd.f32 %v5175_v43, %v5124_v56  ;;  %v8011_v43 = vld [vmem:[%s9404_s10 + $0x20] sm:$0xff]  }
 0x49c   : > { %v5126_v62 = vpop.f32.mrf.mxu0  ;;  %v7977_v56 = vld [vmem:[#allocation15 + $0x108] ss:$16 sps:$4 sm:$0xff]  }
 0x49d   : > { %v5178_v24 = vadd.f32 %v5177_v48, %v5126_v62  ;;  %v7970_v48 = vld [vmem:[#allocation15 + $0x16c] ss:$16 sps:$4 sm:$0xff]   ;;  %v7980_v62 = vld [vmem:[#allocation15 + $0xe8] ss:$16 sps:$4 sm:$0xff]  }
 0x49e   : > { %v5128_v7 = vpop.f32.mrf.mxu0 }
 0x49f   : > { %v7985_v7 = vld [vmem:[#allocation15 + $0xcc] ss:$16 sps:$4 sm:$0xff]  }
 0x4a0   : > { %v5129_v15 = vpop.f32.mrf.mxu0 }
 0x4a1   : > { %v7983_v15 = vld [vmem:[#allocation15 + $0xc8] ss:$16 sps:$4 sm:$0xff]  }
 0x4d2   : > { %v5216_v46 = vpop.f32.mrf.mxu0 }
 0x4d3   : > { %v5217_v36 = vadd.f32 %v5216_v46, %v5166_v49  ;;  %v8012_v49 = vld [vmem:[%s9404_s10 + $0x58] sm:$0xff]  }
 0x4d4   : > { %v5218_v27 = vpop.f32.mrf.mxu0  ;;  %v7986_v46 = vld [vmem:[#allocation15 + $0xa8] ss:$16 sps:$4 sm:$0xff]  }
 0x4d5   : > { %v5219_v0 = vadd.f32 %v5218_v27, %v5168_v8  ;;  %v8013_v8 = vld [vmem:[%s9404_s10 + $0x18] sm:$0xff]   ;;  %v7991_v27 = vld [vmem:[#allocation15 + $0x8c] ss:$16 sps:$4 sm:$0xff]  }
 0x4d6   : > { %v5220_v5 = vpop.f32.mrf.mxu0 }
 0x4d7   : > { %v5233_v57 = vmax.f32 %v5217_v36, %v5219_v0  ;;  %v5221_v30 = vadd.f32 %v5220_v5, %v5170_v19  ;;  %v7971_v19 = vld [vmem:[#allocation15 + $0x148] ss:$16 sps:$4 sm:$0xff]   ;;  %v7994_v0 = vld [vmem:[#allocation15 + $0x6c] ss:$16 sps:$4 sm:$0xff]  }
 0x4d8   : > { %v5222_v42 = vpop.f32.mrf.mxu0  ;;  %v7989_v36 = vld [vmem:[#allocation15 + $0x88] ss:$16 sps:$4 sm:$0xff]  }
 0x4d9   : > { %v5223_v2 = vadd.f32 %v5222_v42, %v5172_v26  ;;  %v5239_v1 = vrot.slane %v5233_v57, 4  ;;  %v7979_v26 = vld [vmem:[#allocation15 + $0x10c] ss:$16 sps:$4 sm:$0xff]   ;;  %v7992_v5 = vld [vmem:[#allocation15 + $0x68] ss:$16 sps:$4 sm:$0xff]  }
 0x4da   : > { %v5226_v39 = vpop.f32.mrf.mxu0  ;;  %v7995_v42 = vld [vmem:[#allocation15 + $0x48] ss:$16 sps:$4 sm:$0xff]  }
 0x4db   : > { %v5234_v31 = vmax.f32 %v5221_v30, %v5223_v2  ;;  %v5227_v3 = vadd.f32 %v5226_v39, %v5176_v52  ;;  %v7982_v52 = vld [vmem:[#allocation15 + $0xec] ss:$16 sps:$4 sm:$0xff]   ;;  %v8001_v39 = vld [vmem:[#allocation15 + $0x8] ss:$16 sps:$4 sm:$0xff]  }
 0x4dc   : > { %v5228_v40 = vpop.f32.mrf.mxu0  ;;  %v8000_v30 = vld [vmem:[#allocation15 + $0x2c] ss:$16 sps:$4 sm:$0xff]  }
 0x4dd   : > { %v5240_v44 = vrot.slane %v5234_v31, 4  ;;  %v5229_v53 = vadd.f32 %v5228_v40, %v5178_v24  ;;  %v8003_v2 = vld [vmem:[#allocation15 + $0xc] ss:$16 sps:$4 sm:$0xff]   ;;  %v8016_v40 = vld [vmem:[%s9404_s10 + $0x48] sm:$0xff]  }
 0x4de   : > { %v5230_v28 = vpop.f32.mrf.mxu0  ;;  %v8014_v24 = vld [vmem:[%s9404_s10 + $0x50] sm:$0xff]  }
 0x4df   : > { %v5241_v20 = vsel %vm1326_vm5, %v5239_v1, %v5240_v44  ;;  %v5235_v10 = vmax.f32 %v5227_v3, %v5229_v53  ;;  %v8017_v1 = vld [vmem:[%s9404_s10 + $0x8] sm:$0xff]   ;;  %v8019_v3 = vld [vmem:[%s9404_s10] sm:$0xff]   ;;  %v8020_v53 = vld [vmem:[%s9404_s10 + $0xf8] sm:$0xff]  }
 0x4e0   : > { %v5246_v37 = vmax.f32 %v5233_v57, %v5241_v20  ;;  %v5231_v21 = vpop.f32.mrf.mxu0  ;;  %v7997_v57 = vld [vmem:[#allocation15 + $0x4c] ss:$16 sps:$4 sm:$0xff]   ;;  %v8021_v28 = vld [vmem:[%s9404_s10 + $0xb8] sm:$0xff]  }
 0x4e1   : > { %v5242_v25 = vrot.slane %v5235_v10, 4  ;;  %v8022_v20 = vld [vmem:[%s9404_s10 + $0xf0] sm:$0xff]   ;;  %v8025_v21 = vld [vmem:[%s9404_s10 + $0xa8] sm:$0xff]  }
 0x4e2   : > { %v5255_v54 = vadd.f32 %v6918_v34, %v5246_v37  ;;  %v8023_v10 = vld [vmem:[%s9404_s10 + $0xb0] sm:$0xff]   ;;  %v8024_v37 = vld [vmem:[%s9404_s10 + $0xe8] sm:$0xff]  }
 0x4e3   : > { %v5243_v6 = vsel %vm1326_vm5, %v5240_v44, %v5242_v25  ;;  %v8018_v44 = vld [vmem:[%s9404_s10 + $0x40] sm:$0xff]  }
 0x4e4   : > { %v5247_v13 = vmax.f32 %v5234_v31, %v5243_v6  ;;  %v5257_v16 = vmax.f32 %v5255_v54, 0.0  ;;  %v8015_v31 = vld [vmem:[%s9404_s10 + $0x10] sm:$0xff]   ;;  %v8026_v25 = vld [vmem:[%s9404_s10 + $0xe0] sm:$0xff]   ;;  %v8028_v6 = vld [vmem:[%s9404_s10 + $0xd8] sm:$0xff]  }
 0x4e5   : > { %v8030_v54 = vld [vmem:[%s9404_s10 + $0xd0] sm:$0xff]  }
 0x4e6   : > { %v5256_v60 = vadd.f32 %v6918_v34, %v5247_v13  ;;  %v8027_v34 = vld [vmem:[%s9404_s10 + $0xa0] sm:$0xff]   ;;  %v8029_v13 = vld [vmem:[%s9404_s10 + $0x98] sm:$0xff]  }
 0x4e8   : > { %v5258_v4 = vmax.f32 %v5256_v60, 0.0  ;;  %v8031_v60 = vld [vmem:[%s9404_s10 + $0x90] sm:$0xff]  }
 0x4ea   : > { %v9256_v35 = vpack.c.bf16 %v5258_v4, %v5257_v16  ;;  %v8032_v16 = vld [vmem:[%s9404_s10 + $0xc8] sm:$0xff]  }
 0x4eb   : > { %v8033_v4 = vld [vmem:[%s9404_s10 + $0x88] sm:$0xff]  }
 0x4ec   : > { %5763 = vmatmul.mubr.bf16.vlgmr.msra.gmra.mxu0 %v9256_v35  ;;  %v5326_v38 = vrot.slane %v9256_v35, 4 }
 0x4ed   : > { %7028 = vmatpush3.bf16.msra.mxu0 %v8005_v51  ;;  %v8034_v51 = vld [vmem:[%s9404_s10 + $0xc0] sm:$0xff]  }
 0x4ee   : > { %5521 = vmatmul.mubr.bf16.vlgmr.msra.gmra.mxu1 %v5326_v38  ;;  %7029 = vmatprep.subr.bf16.mxu0 %v8006_v29  ;;  %v5812_v29 = vld [vmem:[#allocation17] sm:$0xf] }
 0x4ef   : > { %5530 = vmatpush1.bf16.msra.mxu1 %v7956_v50  ;;  %5561 = vmatprep.mubr.bf16.mxu1 %v9497_v23 }
 0x4f0   : > { %5531 = vmatprep.subr.bf16.mxu1 %v7961_v22 }
 0x4f1   : > { %7030 = vmatpush3.bf16.msra.mxu0 %v8007_v17 }
 0x4f2   : > { %7031 = vmatprep.subr.bf16.mxu0 %v8008_v55 }
 0x4f3   : > { %5532 = vmatpush1.bf16.msra.mxu1 %v7959_v61  ;;  %v5821_v61 = vrot.slane %v5812_v29, %v9494_v58 }
 0x4f4   : > { %5533 = vmatprep.subr.bf16.mxu1 %v7964_v12 }
 0x4f5   : > { %7032 = vmatpush3.bf16.msra.mxu0 %v8009_v59 }
 0x4f6   : > { %7033 = vmatprep.subr.bf16.mxu0 %v8010_v11 }
 0x4f7   : > { %5534 = vmatpush1.bf16.msra.mxu1 %v7962_v14 }
 0x4f8   : > { %5535 = vmatprep.subr.bf16.mxu1 %v7967_v41 }
 0x4f9   : > { %7034 = vmatpush3.bf16.msra.mxu0 %v8011_v43 }
 0x4fa   : > { %7035 = vmatprep.subr.bf16.mxu0 %v8012_v49 }
 0x4fb   : > { %5536 = vmatpush1.bf16.msra.mxu1 %v7965_v32 }
 0x4fc   : > { %5537 = vmatprep.subr.bf16.mxu1 %v7970_v48 }
 0x4fd   : > { %7036 = vmatpush3.bf16.msra.mxu0 %v8013_v8 }
 0x4fe   : > { %7037 = vmatprep.subr.bf16.mxu0 %v8014_v24 }
 0x4ff   : > { %5538 = vmatpush1.bf16.msra.mxu1 %v7968_v45 }
 0x500   : > { %5539 = vmatprep.subr.bf16.mxu1 %v7973_v47 }
 0x501   : > { %7038 = vmatpush3.bf16.msra.mxu0 %v8015_v31 }
 0x502   : > { %7039 = vmatprep.subr.bf16.mxu0 %v8016_v40 }
 0x503   : > { %5540 = vmatpush1.bf16.msra.mxu1 %v7971_v19 }
 0x504   : > { %5541 = vmatprep.subr.bf16.mxu1 %v7976_v18 }
 0x505   : > { %7040 = vmatpush3.bf16.msra.mxu0 %v8017_v1  ;;  %v5910_v1 = vld [vmem:[#allocation18] sm:$0x1] }
 0x506   : > { %7041 = vmatprep.subr.bf16.mxu0 %v8018_v44 }
 0x507   : > { %5542 = vmatpush1.bf16.msra.mxu1 %v7974_v63 }
 0x508   : > { %5543 = vmatprep.subr.bf16.mxu1 %v7979_v26  ;;  %v9498_v26 = vld [vmem:[#allocation37_spill] sm:$0xff] }
 0x509   : > { %7042 = vmatpush3.bf16.msra.mxu0 %v8019_v3  ;;  %v5824_v58 = vsub.s32 2, %v9498_v26 }
 0x50b   : > { %5544 = vmatpush1.bf16.msra.mxu1 %v7977_v56  ;;  %v5828_v56 = vsub.s32 3, %v9498_v26 }
 0x50c   : > { %5771 = vmatprep.subr.bf16.mxu1 %v7982_v52  ;;  %v5825_v52 = vrot.slane %v5812_v29, %v5824_v58 }
 0x50e   : > { %5562 = vmatmul.mubr.bf16.vlgmr.msra.gmra.mxu1 %v5326_v38  ;;  %v5817_v38 = vrot.slane %v5812_v29, %v9492_v9 }
 0x50f   : > { %5772 = vmatpush1.bf16.msra.mxu1 %v7980_v62  ;;  %5803 = vmatprep.mubr.bf16.mxu1 %v9497_v23  ;;  %v7998_v23 = vld [vmem:[#allocation15 + $0x28] ss:$16 sps:$4 sm:$0xff]  }
 0x510   : > { %5773 = vmatprep.subr.bf16.mxu1 %v7985_v7 }
 0x513   : > { %5774 = vmatpush1.bf16.msra.mxu1 %v7983_v15  ;;  %v5829_v15 = vrot.slane %v5812_v29, %v5828_v56 }
 0x514   : > { %5775 = vmatprep.subr.bf16.mxu1 %v7988_v33 }
 0x517   : > { %5776 = vmatpush1.bf16.msra.mxu1 %v7986_v46 }
 0x518   : > { %5777 = vmatprep.subr.bf16.mxu1 %v7991_v27 }
 0x51b   : > { %5778 = vmatpush1.bf16.msra.mxu1 %v7989_v36 }
 0x51c   : > { %5779 = vmatprep.subr.bf16.mxu1 %v7994_v0 }
 0x51f   : > { %5780 = vmatpush1.bf16.msra.mxu1 %v7992_v5 }
 0x520   : > { %5781 = vmatprep.subr.bf16.mxu1 %v7997_v57 }
 0x523   : > { %5782 = vmatpush1.bf16.msra.mxu1 %v7995_v42 }
 0x524   : > { %5783 = vmatprep.subr.bf16.mxu1 %v8000_v30 }
 0x527   : > { %5784 = vmatpush1.bf16.msra.mxu1 %v7998_v23 }
 0x528   : > { %5785 = vmatprep.subr.bf16.mxu1 %v8003_v2 }
 0x52b   : > { %5786 = vmatpush1.bf16.msra.mxu1 %v8001_v39 }
 0x52c   : > { %7049 = vmatprep.subr.bf16.mxu1 %v8020_v53 }
 0x52e   : > { %5804 = vmatmul.mubr.bf16.vlgmr.msra.gmra.mxu1 %v9256_v35  ;;  %v8035_v35 = vld [vmem:[%s9404_s10 + $0x80] sm:$0xff]  }
 0x52f   : > { %7050 = vmatpush3.bf16.msra.mxu1 %v8021_v28 }
 0x530   : > { %7051 = vmatprep.subr.bf16.mxu1 %v8022_v20 }
 0x533   : > { %7052 = vmatpush3.bf16.msra.mxu1 %v8023_v10 }
 0x534   : > { %7053 = vmatprep.subr.bf16.mxu1 %v8024_v37 }
 0x537   : > { %7054 = vmatpush3.bf16.msra.mxu1 %v8025_v21 }
 0x538   : > { %7055 = vmatprep.subr.bf16.mxu1 %v8026_v25 }
 0x53b   : > { %7056 = vmatpush3.bf16.msra.mxu1 %v8027_v34 }
 0x53c   : > { %7057 = vmatprep.subr.bf16.mxu1 %v8028_v6 }
 0x53f   : > { %7058 = vmatpush3.bf16.msra.mxu1 %v8029_v13 }
 0x540   : > { %7059 = vmatprep.subr.bf16.mxu1 %v8030_v54 }
 0x543   : > { %7060 = vmatpush3.bf16.msra.mxu1 %v8031_v60 }
 0x544   : > { %7061 = vmatprep.subr.bf16.mxu1 %v8032_v16 }
 0x547   : > { %7062 = vmatpush3.bf16.msra.mxu1 %v8033_v4 }
 0x548   : > { %7063 = vmatprep.subr.bf16.mxu1 %v8034_v51 }
 0x54b   : > { %7064 = vmatpush3.bf16.msra.mxu1 %v8035_v35 }
 0x5ac   : > { %v5764_v50 = vpop.f32.mrf.mxu0 }
 0x5ae   : > { %v5522_v22 = vpop.f32.mrf.mxu1  ;;  %v5766_v17 = vpop.f32.mrf.mxu0 }
 0x5af   : > { %v5765_v55 = vadd.f32 %v5764_v50, %v5522_v22 }
 0x5b0   : > { %v5524_v12 = vpop.f32.mrf.mxu1  ;;  %v5768_v59 = vpop.f32.mrf.mxu0 }
 0x5b1   : > { %v5834_v11 = vadd.f32 %v5817_v38, %v5765_v55  ;;  %v5767_v14 = vadd.f32 %v5766_v17, %v5524_v12 }
 0x5b2   : > { %v5526_v41 = vpop.f32.mrf.mxu1  ;;  %v5769_v43 = vpop.f32.mrf.mxu0 }
 0x5b3   : > { %v5835_v49 = vadd.f32 %v5821_v61, %v5767_v14  ;;  %v5838_v32 = vmax.f32 %v5834_v11, 0.0 }
 0x5b4   : > { %v5527_v48 = vpop.f32.mrf.mxu1 }
 0x5b5   : > { %v5839_v8 = vmax.f32 %v5835_v49, 0.0  ;;  %v5842_v47 = vpack.c.bf16 %v5838_v32, %v5838_v32 }
 0x5b7   : > { %v5843_v45 = vpack.c.bf16 %v5839_v8, %v5839_v8 }
 0x5b9   : > { %6135 = vmatprep.mubr.bf16.mxu0 %v5843_v45 }
 0x5ba   : > { %6136 = vmatmul.mubr.bf16.vlgmr.msra.gmra.mxu0 %v5842_v47 }
 0x5ce   : > { %v5563_v9 = vpop.f32.mrf.mxu1 }
 0x5d0   : > { %v5565_v19 = vpop.f32.mrf.mxu1 }
 0x5d2   : > { %v5567_v18 = vpop.f32.mrf.mxu1 }
 0x5d4   : > { %v5568_v63 = vpop.f32.mrf.mxu1 }
 0x5ee   : > { %v5805_v62 = vpop.f32.mrf.mxu1 }
 0x5ef   : > { %v5806_v7 = vadd.f32 %v5805_v62, %v5563_v9 }
 0x5f0   : > { %v5807_v33 = vpop.f32.mrf.mxu1 }
 0x5f1   : > { %v5836_v46 = vadd.f32 %v5825_v52, %v5806_v7  ;;  %v5808_v27 = vadd.f32 %v5807_v33, %v5565_v19 }
 0x5f2   : > { %v5809_v36 = vpop.f32.mrf.mxu1 }
 0x5f3   : > { %v5837_v0 = vadd.f32 %v5829_v15, %v5808_v27  ;;  %v5840_v5 = vmax.f32 %v5836_v46, 0.0 }
 0x5f4   : > { %v5810_v57 = vpop.f32.mrf.mxu1 }
 0x5f5   : > { %v5841_v42 = vmax.f32 %v5837_v0, 0.0  ;;  %v5844_v23 = vpack.c.bf16 %v5840_v5, %v5840_v5 }
 0x5f7   : > { %v5845_v30 = vpack.c.bf16 %v5841_v42, %v5841_v42 }
 0x5f9   : > { %6175 = vmatprep.mubr.bf16.mxu1 %v5845_v30 }
 0x5fa   : > { %6176 = vmatmul.mubr.bf16.vlgmr.msra.gmra.mxu1 %v5844_v23 }
 0x67a   : > { %v7043_v2 = vpop.f32.mrf.mxu0 }
 0x67c   : > { %v7044_v39 = vpop.f32.mrf.mxu0 }
 0x67d   : > { %v7045_v40 = vadd.f32 %v7044_v39, %v7043_v2 }
 0x67e   : > { %v7046_v24 = vpop.f32.mrf.mxu0 }
 0x67f   : > { %v6138_v53 = vadd.f32 %v7045_v40, %v5910_v1 }
 0x680   : > { %v7047_v31 = vpop.f32.mrf.mxu0 }
 0x6ba   : > { %v7065_v44 = vpop.f32.mrf.mxu1 }
 0x6bc   : > { %v7066_v3 = vpop.f32.mrf.mxu1 }
 0x6bd   : > { %v7067_v28 = vadd.f32 %v7066_v3, %v7065_v44 }
 0x6be   : > { %v7068_v20 = vpop.f32.mrf.mxu1 }
 0x6bf   : > { %v6178_v10 = vadd.f32 %v7067_v28, %v6138_v53 }
 0x6c0   : > { %v7069_v37 = vpop.f32.mrf.mxu1 }
 0x6c1   : > { %v6184_v21 = vsel %vm6183_vm0, %v6178_v10, -inf }
 0x6c2   : > { %6185 = vmax.xlane.f32.xlu0 %v6184_v21 }
 0x74b   : > { %v6186_v25 = vpop.xlane.xlu0 %6185 }
 0x74c   : > { %v6187_v34 = vsub.f32 %v6178_v10, %v6186_v25 }
 0x74e   : > { %v6188_v6 = vmul.f32 1.442695, %v6187_v34 }
 0x750   : > { %8036 = vpow2.f32 %v6188_v6 }
 0x75d   : > { %v8037_v13 = vpop.eup %8036 }
 0x75e   : > { %v6190_v54 = vsel %vm6183_vm0, %v8037_v13, 0.0 }
 0x75f   : > { %6191 = vadd.xlane.f32.xlu1 %v6190_v54 }
 0x7e8   : > { %v6192_v60 = vpop.xlane.xlu1 %6191 }
 0x7e9   : > { %8038 = vlog2.f32 %v6192_v60 }
 0x7f6   : > { %v8039_v16 = vpop.eup %8038 }
 0x7f7   : > { %v6194_v4 = vmul.f32 0.6931472, %v8039_v16 }
 0x7f9   : > { %v6195_v51 = vsub.f32 %v6187_v34, %v6194_v4 }
 0x7fb   : > { %6196 = vst.msk [vmem:[%s541_s18] sm:$0x1] %vm6183_vm0, %v6195_v51 }
 0x7fc   : > { %8319 = shalt.err (!%p8316_p7)
}
 0x7fd   : > { %s8320_s16 = scalar_lea.hbm %s6208_s27, 16  ;;  %s8324_s17 = scalar_lea.hbm %s9406_s12, 32 }
 0x7fe   : > { %p8321_p11 = scmp.ne.s32.totalorder %s6208_s27, %s8320_s16  ;;  %p8325_p0 = scmp.lt.s32.totalorder %s6208_s27, %s9406_s12 }
 0x7ff   : > { %p8326_p6 = scmp.lt.s32.totalorder %s8324_s17, %s8320_s16 }
 0x800   : > { %p8322_p8 = pnand %p8321_p11, %p9499_p5 }
 0x801   : > { %p8327_p9 = por %p8326_p6, %p8325_p0 }
 0x802   : > { %p8323_p1 = pneg %p8322_p8 }
 0x804   : > { %p8328_p3 = pnand %p8327_p9, %p8323_p1 }
 0x806   : > { %8331 = shalt.err (!%p8328_p3)
}
 0x807   : > { %7111 = dma.vmem_to_hbm [thread:$0]  (%p9499_p5), %s6211_s26, 16, %s6208_s27, %s6198_s2  }
 0x808 PF: > { %s9500_s28 = sld [smem:[#allocation31_spill]]  ;;  %p7168_p13 = scmp.ge.s32.totalorder %s8390_s24, 2 }
 0x809   : > { %s6222_s30 = sand.u32 1, %s8378_s21  }
 0x80a   : > { %s6223_s29 = scalar_lea.sflag [#allocation5], %s6222_s30 }
 0x80e   : > { %p9501_p10 = scmp.ne.s32.totalorder %s9500_s28, 0 }
 0x810   : > { %p7145_p2 = pnand %p7168_p13, %p9501_p10 }
 0x812   : > { %p7146_p4 = pneg %p7145_p2 }
 0x814   : > { %8373 = dma.done.wait (%p7146_p4), %s6223_s29, 16  }
 0x815   : > { %8375 = vsyncadd (%p7146_p4), %s6223_s29, 4294967280  ;;  %s9502_s24 = sld [smem:[#allocation29_spill]]  ;;  %s9505_s21 = smov %s8382_s22 }
 0x816   : > { %s9503_s14 = sld [smem:[#allocation28_spill]] }
 0x817   : > { %s9504_s23 = sld [smem:[#allocation30_spill]] }
 0x81b   : > { %p28_p12 = scmp.ge.s32.totalorder %s9502_s24, 4  }
 0x81c   : > { %s9506_s22 = smov %s9503_s14 }
 0x81d   :  { %30 = sbr.rel (!%p28_p12) target bundleno = 11 (0xb), region = 149 }
 0x822   :  { %6227 = vsyncpa [#allocation4], 1 }
 0x823   :  { %6229 = vsyncpa [#allocation4 + $0x1], 1 }
 0x824   :  { %6230 = vsyncpa [#allocation7], 1 }
 0x825   :  { %6231 = vsyncpa [#allocation10], 1 }
 0x826   :  { %6232 = vsyncpa [#allocation13], 1 }
 0x827   :  { %6233 = vsyncpa [#allocation16], 1 }
 0x828   :  { %6234 = vsyncpa [#allocation19], 1 }
 0x829   :  { %6235 = vsyncpa [#allocation5], 1 }
 0x82a   :  { %6237 = vsyncpa [#allocation5 + $0x1], 1 }

</bundles_post_ra>
